<compile_context>
chip_gen: v6e
topology: v6e:2x2x1
jax: 0.10.0
libtpu: 0.0.40
codegen_flags: <defaults>
</compile_context>

<pallas_src>
import collections
import functools
import math

import jax
import jax.numpy as jnp
from jax.experimental import pallas as pl
from jax.experimental.pallas import tpu as pltpu

# ---------------- model hyper-parameters (small, deterministic, lane-dense) ----------------
VOCAB         = 128
MAX_LEN       = 16
HIDDEN        = 128
NUM_HEADS     = 4
HEAD_DIM      = HIDDEN // NUM_HEADS
FFN           = 256
IMG_FEAT      = 128
ANG_FEAT      = 8
NUM_NAV_TYPES = 3
FEAT_DROPOUT  = 0.4

# rows of the packed per-layer vector array `vecs` (shape (6, D))
VEC_BO, VEC_LN1G, VEC_LN1B, VEC_B2, VEC_LN2G, VEC_LN2B = range(6)
# rows of the packed panorama-embedding vector array `pano_vecs` (shape (6, D))
PV_IMG_B, PV_IMG_G, PV_IMG_BETA, PV_LOC_B, PV_LOC_G, PV_LOC_BETA = range(6)


# ================================ in-kernel building blocks ================================

def _ln(x, g, b, eps=1e-12):
    mu = jnp.mean(x, axis=-1, keepdims=True)
    var = jnp.mean(jnp.square(x - mu), axis=-1, keepdims=True)
    return (x - mu) * jax.lax.rsqrt(var + eps) * g + b


def _layer_forward(x3, kv3, bias_z, wqkv, bqkv, wo_h, vecs, w1, b1, w2, num_heads):
    """One transformer layer (MHA + residual + LN + GELU-FFN + residual + LN), whole batch.

    x3      : (B, Sq, D)  queries
    kv3     : (B, Skv, D) keys / values (== x3 for self-attention)
    bias_z  : (B*H, 1, Skv) additive attention bias (0 valid / -1e9 padded), precomputed once
    wqkv    : (3, H, D, dh) per-head q/k/v projection weights
    bqkv    : (3, H, 1, dh) per-head q/k/v biases
    wo_h    : (H, dh, D)    per-head rows of the output projection
    vecs    : (6, D)        [bo, ln1_g, ln1_b, b2, ln2_g, ln2_b]
    w1,b1,w2: FFN weights (D,F), (1,F), (F,D)
    """
    B, Sq, D = x3.shape
    Skv = kv3.shape[1]
    H = num_heads
    dh = D // H
    Z = B * H
    scale = 1.0 / math.sqrt(dh)

    def bcast_rows(a):   # (B, S, D) -> (Z, S, D): replicate activations over heads (major dims)
        return jnp.broadcast_to(a[:, None], (B, H) + a.shape[1:]).reshape((Z,) + a.shape[1:])

    def bcast_w(w):      # (H, a, b) -> (Z, a, b): replicate per-head weights over batch
        return jnp.broadcast_to(w[None], (B,) + w.shape).reshape((Z,) + w.shape[1:])

    def bmm(a, b):       # single-batch-dim batched matmul: (Z,m,k) x (Z,k,n) -> (Z,m,n)
        return jax.lax.dot_general(a, b, (((2,), (1,)), ((0,), (0,))),
                                   preferred_element_type=jnp.float32)

    xz = bcast_rows(x3)
    kvz = bcast_rows(kv3)

    q = (bmm(xz, bcast_w(wqkv[0])) + bcast_w(bqkv[0])) * scale   # (Z, Sq, dh)
    k = bmm(kvz, bcast_w(wqkv[1])) + bcast_w(bqkv[1])            # (Z, Skv, dh)
    v = bmm(kvz, bcast_w(wqkv[2])) + bcast_w(bqkv[2])            # (Z, Skv, dh)

    s = jax.lax.dot_general(q, k, (((2,), (2,)), ((0,), (0,))),
                            preferred_element_type=jnp.float32) + bias_z   # (Z, Sq, Skv)
    s = s - jnp.max(s, axis=-1, keepdims=True)
    p = jnp.exp(s)
    p = p / jnp.sum(p, axis=-1, keepdims=True)

    ctx = bmm(p, v)                                        # (Z, Sq, dh)
    out_h = bmm(ctx, bcast_w(wo_h))                        # (Z, Sq, D) per-head partial outputs
    attn = jnp.sum(out_h.reshape(B, H, Sq, D), axis=1)     # (B, Sq, D)  sum over heads

    x2 = x3.reshape(B * Sq, D)
    a2 = attn.reshape(B * Sq, D) + vecs[VEC_BO:VEC_BO + 1]
    h1 = _ln(x2 + a2, vecs[VEC_LN1G:VEC_LN1G + 1], vecs[VEC_LN1B:VEC_LN1B + 1])

    ff = jnp.dot(h1, w1, preferred_element_type=jnp.float32) + b1
    ff = jax.nn.gelu(ff, approximate=True)
    ff = jnp.dot(ff, w2, preferred_element_type=jnp.float32) + vecs[VEC_B2:VEC_B2 + 1]

    y2 = _ln(h1 + ff, vecs[VEC_LN2G:VEC_LN2G + 1], vecs[VEC_LN2B:VEC_LN2B + 1])
    return y2.reshape(B, Sq, D)


# ================================ fused per-mode kernels ================================

def language_kernel(ids_ref, wemb_ref, pos_ref, embln_ref, maskcol_ref, bias_ref,
                    wqkv_ref, bqkv_ref, wo_ref, vecs_ref, w1_ref, b1_ref, w2_ref,
                    txt_ref, nemb_ref, tok_ref, *, B, L, H):
    V, D = wemb_ref.shape

    # embedding lookup as a one-hot MXU matmul (exact equivalent of a gather)
    ids = ids_ref[...]                                                     # (B*L, 1) int32
    onehot = (ids == jax.lax.broadcasted_iota(jnp.int32, (B * L, V), 1)).astype(jnp.float32)
    emb2 = jnp.dot(onehot, wemb_ref[...], preferred_element_type=jnp.float32)   # (B*L, D)
    emb3 = emb2.reshape(B, L, D) + pos_ref[...][None]                      # + position embedding
    tok2 = _ln(emb3.reshape(B * L, D), embln_ref[0:1], embln_ref[1:2])
    tok3 = tok2.reshape(B, L, D)
    tok_ref[...] = tok3

    y3 = _layer_forward(tok3, tok3, bias_ref[...], wqkv_ref[...], bqkv_ref[...],
                        wo_ref[...], vecs_ref[...], w1_ref[...], b1_ref[...], w2_ref[...], H)
    txt_ref[...] = y3

    # masked mean pooling (in-kernel epilogue), expressed as a segment-sum matmul
    m = maskcol_ref[...]                                                   # (B, L, 1)
    col = jax.lax.broadcasted_iota(jnp.int32, (B, B * L), 1)
    row = jax.lax.broadcasted_iota(jnp.int32, (B, B * L), 0)
    seg = ((col >= row * L) & (col < (row + 1) * L)).astype(jnp.float32)   # (B, B*L)
    ssum = jnp.dot(seg, (y3 * m).reshape(B * L, D), preferred_element_type=jnp.float32)
    cnt = jnp.dot(seg, m.reshape(B * L, 1), preferred_element_type=jnp.float32)
    nemb_ref[...] = ssum / jnp.maximum(cnt, 1.0)


def panorama_kernel(img_ref, dropm_ref, loc_ref, navid_ref, imgw_ref, locw_ref,
                    navemb_ref, pvecs_ref, bias_ref,
                    wqkv_ref, bqkv_ref, wo_ref, vecs_ref, w1_ref, b1_ref, w2_ref,
                    out_ref, *, B, V, H, n_nav):
    D = imgw_ref.shape[1]

    # feature dropout (mask drawn outside with jax.random; scaled by 1/(1-p) already)
    img = img_ref[...] * dropm_ref[...]

    img_e = _ln(jnp.dot(img, imgw_ref[...], preferred_element_type=jnp.float32)
                + pvecs_ref[PV_IMG_B:PV_IMG_B + 1],
                pvecs_ref[PV_IMG_G:PV_IMG_G + 1], pvecs_ref[PV_IMG_BETA:PV_IMG_BETA + 1])
    loc_e = _ln(jnp.dot(loc_ref[...], locw_ref[...], preferred_element_type=jnp.float32)
                + pvecs_ref[PV_LOC_B:PV_LOC_B + 1],
                pvecs_ref[PV_LOC_G:PV_LOC_G + 1], pvecs_ref[PV_LOC_BETA:PV_LOC_BETA + 1])

    # nav-type embedding lookup via select-sum over the (tiny) number of types
    nav_e = jnp.zeros_like(img_e)
    for t in range(n_nav):
        sel = (navid_ref[...] == t).astype(jnp.float32)                    # (B*V, 1)
        nav_e = nav_e + sel * navemb_ref[t:t + 1]                          # -> (B*V, D)

    x3 = (img_e + loc_e + nav_e).reshape(B, V, D)
    out_ref[...] = _layer_forward(x3, x3, bias_ref[...], wqkv_ref[...], bqkv_ref[...],
                                  wo_ref[...], vecs_ref[...], w1_ref[...], b1_ref[...],
                                  w2_ref[...], H)


def navigation_kernel(pano_ref, txt_ref, bias_ref, pmask_ref, headw_ref, headb_ref,
                      wqkv_ref, bqkv_ref, wo_ref, vecs_ref, w1_ref, b1_ref, w2_ref,
                      logit_ref, *, H):
    fused = _layer_forward(pano_ref[...], txt_ref[...], bias_ref[...],
                           wqkv_ref[...], bqkv_ref[...], wo_ref[...], vecs_ref[...],
                           w1_ref[...], b1_ref[...], w2_ref[...], H)        # (B, V, D)
    logits = jnp.sum(fused * headw_ref[...], axis=-1) + headb_ref[...]      # (B, V)
    logit_ref[...] = jnp.where(pmask_ref[...] > 0.5, logits, -jnp.inf)


# ================================ parameters ================================

def _dense(key, fan_in, fan_out):
    return jax.random.normal(key, (fan_in, fan_out), jnp.float32) * 0.02


def _init_layer(key, d, f, h):
    dh = d // h
    ks = jax.random.split(key, 6)
    wq, wk, wv, wo = (_dense(ks[i], d, d) for i in range(4))
    to_heads = lambda w: w.reshape(d, h, dh).transpose(1, 0, 2)        # (h, d, dh)
    return dict(
        wqkv=jnp.stack([to_heads(wq), to_heads(wk), to_heads(wv)]),    # (3, h, d, dh)
        bqkv=jnp.zeros((3, h, 1, dh), jnp.float32),
        wo=wo.reshape(h, dh, d),                                       # (h, dh, d)
        vecs=jnp.stack([jnp.zeros(d), jnp.ones(d), jnp.zeros(d),
                        jnp.zeros(d), jnp.ones(d), jnp.zeros(d)]),     # (6, d)
        w1=_dense(ks[4], d, f), b1=jnp.zeros((1, f), jnp.float32),
        w2=_dense(ks[5], f, d))


def init_params(key):
    ks = jax.random.split(key, 10)
    d = HIDDEN
    return dict(
        word_emb=_dense(ks[0], VOCAB, d),
        pos_emb=_dense(ks[1], MAX_LEN, d),
        emb_ln=jnp.stack([jnp.ones(d), jnp.zeros(d)]),                 # (2, d): [gamma, beta]
        img_w=_dense(ks[2], IMG_FEAT, d),
        loc_w=_dense(ks[3], ANG_FEAT, d),
        nav_type_emb=_dense(ks[4], NUM_NAV_TYPES, d),
        pano_vecs=jnp.stack([jnp.zeros(d), jnp.ones(d), jnp.zeros(d),
                             jnp.zeros(d), jnp.ones(d), jnp.zeros(d)]),  # (6, d)
        txt_layer=_init_layer(ks[5], d, FFN, NUM_HEADS),
        pano_layer=_init_layer(ks[6], d, FFN, NUM_HEADS),
        cross_layer=_init_layer(ks[7], d, FFN, NUM_HEADS),
        head_w=_dense(ks[8], 1, d),                                    # action head as a (1, d) row
        head_b=jnp.zeros((1, 1), jnp.float32))


def _layer_args(lp):
    return (lp['wqkv'], lp['bqkv'], lp['wo'], lp['vecs'], lp['w1'], lp['b1'], lp['w2'])


def _vmem():
    return pl.BlockSpec(memory_space=pltpu.MemorySpace.VMEM)


# ================================ VLNBert ================================

class VLNBertPallas:
    """Mirrors VLNBert.forward(mode, batch) with one fused Pallas kernel per mode."""

    # TODO(synk): `get_vlnbert_models` source is not provided; this is a representative
    # single-layer DUET-style VLN-BERT, not a checkpoint reproduction.

    def __init__(self, params, feat_dropout=FEAT_DROPOUT, rng=None, training=True):
        self.p = params
        self.feat_dropout = float(feat_dropout)
        self.training = training
        self._rng = jax.random.PRNGKey(0) if rng is None else rng

    def __call__(self, mode, batch):
        batch = collections.defaultdict(lambda: None, batch)
        if mode == 'language':
            return self._language(batch['txt_ids'], batch['txt_masks'])
        elif mode == 'panorama':
            return self._panorama(batch['view_img_fts'], batch['loc_fts'],
                                  batch['nav_types'], batch['view_lens'])
        elif mode == 'navigation':
            return self._navigation(batch['txt_embeds'], batch['txt_masks'],
                                    batch['pano_embeds'], batch['pano_masks'])
        else:
            raise NotImplementedError('wrong mode: %s' % mode)

    # ---- small host-side helpers (index / mask bookkeeping only) ----
    @staticmethod
    def _attn_bias(mask_bool, num_heads):
        B, S = mask_bool.shape
        bias = (mask_bool.astype(jnp.float32) - 1.0) * 1e9            # (B, S): 0 valid / -1e9 pad
        return jnp.broadcast_to(bias[:, None, None, :],
                                (B, num_heads, 1, S)).reshape(B * num_heads, 1, S)

    # ---- modes ----
    def _language(self, txt_ids, txt_masks):
        p = self.p
        B, L = txt_ids.shape
        ids2 = txt_ids.reshape(B * L, 1).astype(jnp.int32)
        pos = p['pos_emb'][:L]
        maskcol = txt_masks.astype(jnp.float32)[:, :, None]            # (B, L, 1)
        bias_z = self._attn_bias(txt_masks, NUM_HEADS)

        args = (ids2, p['word_emb'], pos, p['emb_ln'], maskcol, bias_z) + _layer_args(p['txt_layer'])
        txt_embeds, n_embeds, token_embeds = pl.pallas_call(
            functools.partial(language_kernel, B=B, L=L, H=NUM_HEADS),
            out_shape=(jax.ShapeDtypeStruct((B, L, HIDDEN), jnp.float32),
                       jax.ShapeDtypeStruct((B, HIDDEN), jnp.float32),
                       jax.ShapeDtypeStruct((B, L, HIDDEN), jnp.float32)),
            in_specs=[_vmem()] * len(args),
            out_specs=(_vmem(), _vmem(), _vmem()),
        )(*args)
        return txt_embeds, n_embeds, token_embeds

    def _panorama(self, view_img_fts, loc_fts, nav_types, view_lens):
        p = self.p
        B, V, Fi = view_img_fts.shape
        img2 = view_img_fts.reshape(B * V, Fi)

        # drop_env(view_img_fts): Bernoulli keep-mask drawn with a fresh key each call
        # (pltpu.prng_seed is unavailable under TPU-interpret, so the bits come from jax.random).
        if self.training and self.feat_dropout > 0.0:
            self._rng, sub = jax.random.split(self._rng)
            keep = jax.random.bernoulli(sub, 1.0 - self.feat_dropout, (B * V, Fi))
            dropm = keep.astype(jnp.float32) / (1.0 - self.feat_dropout)
        else:
            dropm = jnp.ones((B * V, Fi), jnp.float32)

        loc2 = loc_fts.reshape(B * V, loc_fts.shape[-1])
        nav2 = nav_types.reshape(B * V, 1).astype(jnp.int32)
        pano_masks = jnp.arange(V, dtype=jnp.int32)[None, :] < view_lens[:, None]
        bias_z = self._attn_bias(pano_masks, NUM_HEADS)

        args = (img2, dropm, loc2, nav2, p['img_w'], p['loc_w'], p['nav_type_emb'],
                p['pano_vecs'], bias_z) + _layer_args(p['pano_layer'])
        pano_embeds = pl.pallas_call(
            functools.partial(panorama_kernel, B=B, V=V, H=NUM_HEADS, n_nav=NUM_NAV_TYPES),
            out_shape=jax.ShapeDtypeStruct((B, V, HIDDEN), jnp.float32),
            in_specs=[_vmem()] * len(args),
            out_specs=_vmem(),
        )(*args)
        return pano_embeds, pano_masks

    def _navigation(self, txt_embeds, txt_masks, pano_embeds, pano_masks):
        p = self.p
        B, V, D = pano_embeds.shape
        bias_z = self._attn_bias(txt_masks, NUM_HEADS)
        pmask = pano_masks.astype(jnp.float32)

        args = (pano_embeds, txt_embeds, bias_z, pmask, p['head_w'], p['head_b']) \
            + _layer_args(p['cross_layer'])
        logits = pl.pallas_call(
            functools.partial(navigation_kernel, H=NUM_HEADS),
            out_shape=jax.ShapeDtypeStruct((B, V), jnp.float32),
            in_specs=[_vmem()] * len(args),
            out_specs=_vmem(),
        )(*args)
        return logits


# ================================ pure-JAX reference (for correctness check) ================================

def _ref_ln(x, g, b, eps=1e-12):
    mu = x.mean(-1, keepdims=True)
    var = ((x - mu) ** 2).mean(-1, keepdims=True)
    return (x - mu) / jnp.sqrt(var + eps) * g + b


def _ref_layer(x, kv, kv_mask, lp):
    B, Sq, D = x.shape
    H, dh = NUM_HEADS, HEAD_DIM
    wq = lp['wqkv'][0].transpose(1, 0, 2).reshape(D, D)
    wk = lp['wqkv'][1].transpose(1, 0, 2).reshape(D, D)
    wv = lp['wqkv'][2].transpose(1, 0, 2).reshape(D, D)
    wo = lp['wo'].reshape(D, D)
    q = (x @ wq).reshape(B, Sq, H, dh).transpose(0, 2, 1, 3)
    k = (kv @ wk).reshape(B, -1, H, dh).transpose(0, 2, 1, 3)
    v = (kv @ wv).reshape(B, -1, H, dh).transpose(0, 2, 1, 3)
    bias = (kv_mask.astype(jnp.float32) - 1.0)[:, None, None, :] * 1e9
    s = (q @ jnp.swapaxes(k, -1, -2)) / math.sqrt(dh) + bias
    a = jax.nn.softmax(s, axis=-1)
    ctx = (a @ v).transpose(0, 2, 1, 3).reshape(B, Sq, D)
    attn = ctx @ wo + lp['vecs'][VEC_BO]
    h1 = _ref_ln(x + attn, lp['vecs'][VEC_LN1G], lp['vecs'][VEC_LN1B])
    ff = jax.nn.gelu(h1 @ lp['w1'] + lp['b1'], approximate=True) @ lp['w2'] + lp['vecs'][VEC_B2]
    return _ref_ln(h1 + ff, lp['vecs'][VEC_LN2G], lp['vecs'][VEC_LN2B])


def _ref_language(p, txt_ids, txt_masks):
    B, L = txt_ids.shape
    emb = p['word_emb'][txt_ids] + p['pos_emb'][:L][None]
    tok = _ref_ln(emb, p['emb_ln'][0], p['emb_ln'][1])
    y = _ref_layer(tok, tok, txt_masks, p['txt_layer'])
    m = txt_masks.astype(jnp.float32)[..., None]
    n = (y * m).sum(1) / jnp.maximum(m.sum(1), 1.0)
    return y, n, tok


def _ref_navigation(p, txt_embeds, txt_masks, pano_embeds, pano_masks):
    fused = _ref_layer(pano_embeds, txt_embeds, txt_masks, p['cross_layer'])
    logits = (fused * p['head_w'][0]).sum(-1) + p['head_b'][0, 0]
    return jnp.where(pano_masks, logits, -jnp.inf)


# ================================ main ================================

if __name__ == "__main__":
    key = jax.random.PRNGKey(0)
    k_param, k_txt, k_img, k_loc, k_nav, k_drop = jax.random.split(key, 6)

    params = init_params(k_param)
    model = VLNBertPallas(params, feat_dropout=FEAT_DROPOUT, rng=k_drop, training=True)

    B, L, V = 2, 8, 8
    txt_ids = jax.random.randint(k_txt, (B, L), 0, VOCAB, dtype=jnp.int32)
    txt_lens = jnp.array([L, 5], dtype=jnp.int32)
    txt_masks = jnp.arange(L, dtype=jnp.int32)[None, :] < txt_lens[:, None]

    view_img_fts = jax.random.normal(k_img, (B, V, IMG_FEAT), jnp.float32)
    loc_fts = jax.random.normal(k_loc, (B, V, ANG_FEAT), jnp.float32)
    nav_types = jax.random.randint(k_nav, (B, V), 0, NUM_NAV_TYPES, dtype=jnp.int32)
    view_lens = jnp.array([V, 6], dtype=jnp.int32)

    # mode = 'language'
    txt_embeds, n_embeds, token_embeds = model(
        'language', {'txt_ids': txt_ids, 'txt_masks': txt_masks})

    # mode = 'panorama'
    pano_embeds, pano_masks = model(
        'panorama', {'view_img_fts': view_img_fts, 'loc_fts': loc_fts,
                     'nav_types': nav_types, 'view_lens': view_lens})

    # mode = 'navigation'
    nav_logits = model(
        'navigation', {'txt_embeds': txt_embeds, 'txt_masks': txt_masks,
                       'pano_embeds': pano_embeds, 'pano_masks': pano_masks})

    jax.block_until_ready((txt_embeds, n_embeds, token_embeds,
                           pano_embeds, pano_masks, nav_logits))

    # ---- shape checks ----
    assert txt_embeds.shape == (B, L, HIDDEN)
    assert n_embeds.shape == (B, HIDDEN)
    assert token_embeds.shape == (B, L, HIDDEN)
    assert pano_embeds.shape == (B, V, HIDDEN)
    assert pano_masks.shape == (B, V)
    assert nav_logits.shape == (B, V)
    assert bool(jnp.all(jnp.isfinite(txt_embeds))) and bool(jnp.all(jnp.isfinite(pano_embeds)))

    # ---- numerical check against a pure-JAX reference (language + navigation paths) ----
    with jax.default_matmul_precision("highest"):
        ref_txt, ref_n, ref_tok = _ref_language(params, txt_ids, txt_masks)
        ref_nav = _ref_navigation(params, txt_embeds, txt_masks, pano_embeds, pano_masks)
    assert bool(jnp.allclose(txt_embeds, ref_txt, atol=2e-2, rtol=2e-2))
    assert bool(jnp.allclose(n_embeds, ref_n, atol=2e-2, rtol=2e-2))
    assert bool(jnp.allclose(token_embeds, ref_tok, atol=2e-2, rtol=2e-2))
    assert bool(jnp.allclose(jnp.where(pano_masks, nav_logits, 0.0),
                             jnp.where(pano_masks, ref_nav, 0.0), atol=2e-2, rtol=2e-2))
    assert bool(jnp.all(jnp.where(pano_masks, True, jnp.isneginf(nav_logits))))

    print("KERNEL_OK")
</pallas_src>

<mosaic_0001>
module attributes {stable_mosaic.version = 11 : i64} {
  func.func @language_kernel(%arg0: memref<16x1xi32, #tpu.memory_space<vmem>>, %arg1: memref<128x128xf32, #tpu.memory_space<vmem>>, %arg2: memref<8x128xf32, #tpu.memory_space<vmem>>, %arg3: memref<2x128xf32, #tpu.memory_space<vmem>>, %arg4: memref<2x8x1xf32, #tpu.memory_space<vmem>>, %arg5: memref<8x1x8xf32, #tpu.memory_space<vmem>>, %arg6: memref<3x4x128x32xf32, #tpu.memory_space<vmem>>, %arg7: memref<3x4x1x32xf32, #tpu.memory_space<vmem>>, %arg8: memref<4x32x128xf32, #tpu.memory_space<vmem>>, %arg9: memref<6x128xf32, #tpu.memory_space<vmem>>, %arg10: memref<128x256xf32, #tpu.memory_space<vmem>>, %arg11: memref<1x256xf32, #tpu.memory_space<vmem>>, %arg12: memref<256x128xf32, #tpu.memory_space<vmem>>, %arg13: memref<2x8x128xf32, #tpu.memory_space<vmem>>, %arg14: memref<2x128xf32, #tpu.memory_space<vmem>>, %arg15: memref<2x8x128xf32, #tpu.memory_space<vmem>>) attributes {dimension_semantics = [], scalar_prefetch = 0 : i64, scratch_operands = 0 : i64, tpu.core_type = #tpu.core_type<tc>} {
    %c0 = arith.constant 0 : index
    %c0_0 = arith.constant 0 : index
    %0 = vector.load %arg0[%c0, %c0_0] : memref<16x1xi32, #tpu.memory_space<vmem>>, vector<16x1xi32>
    %1 = tpu.iota {dimensions = array<i32: 1>} : vector<16x128xi32>
    %2 = vector.broadcast %0 : vector<16x1xi32> to vector<16x128xi32>
    %3 = arith.cmpi eq, %2, %1 : vector<16x128xi32>
    %4 = arith.extui %3 : vector<16x128xi1> to vector<16x128xi32>
    %5 = arith.sitofp %4 : vector<16x128xi32> to vector<16x128xf32>
    %c0_1 = arith.constant 0 : index
    %c0_2 = arith.constant 0 : index
    %6 = vector.load %arg1[%c0_1, %c0_2] : memref<128x128xf32, #tpu.memory_space<vmem>>, vector<128x128xf32>
    %cst = arith.constant dense<0.000000e+00> : vector<16x128xf32>
    %7 = tpu.matmul %5, %6, %cst {dimension_numbers = #tpu.dot_dimension_numbers<[1], [0], [0], [1], [0, 0, 1, 1], [], []>} : vector<16x128xf32>, vector<128x128xf32>, vector<16x128xf32> -> vector<16x128xf32>
    %8 = vector.shape_cast %7 : vector<16x128xf32> to vector<2x8x128xf32>
    %c0_3 = arith.constant 0 : index
    %c0_4 = arith.constant 0 : index
    %9 = vector.load %arg2[%c0_3, %c0_4] : memref<8x128xf32, #tpu.memory_space<vmem>>, vector<8x128xf32>
    %10 = vector.shape_cast %9 : vector<8x128xf32> to vector<1x8x128xf32>
    %11 = vector.broadcast %10 : vector<1x8x128xf32> to vector<2x8x128xf32>
    %12 = arith.addf %8, %11 : vector<2x8x128xf32>
    %13 = vector.shape_cast %12 : vector<2x8x128xf32> to vector<16x128xf32>
    %c0_5 = arith.constant 0 : index
    %c0_6 = arith.constant 0 : index
    %14 = vector.load %arg3[%c0_5, %c0_6] : memref<2x128xf32, #tpu.memory_space<vmem>>, vector<1x128xf32>
    %c1 = arith.constant 1 : index
    %c0_7 = arith.constant 0 : index
    %15 = vector.load %arg3[%c1, %c0_7] : memref<2x128xf32, #tpu.memory_space<vmem>>, vector<1x128xf32>
    %cst_8 = arith.constant dense<0.000000e+00> : vector<16xf32>
    %16 = vector.multi_reduction <add>, %13, %cst_8 [1] : vector<16x128xf32> to vector<16xf32>
    %17 = vector.shape_cast %16 : vector<16xf32> to vector<16x1xf32>
    %cst_9 = arith.constant 1.280000e+02 : f32
    %18 = vector.broadcast %cst_9 : f32 to vector<16x1xf32>
    %19 = arith.divf %17, %18 : vector<16x1xf32>
    %20 = vector.broadcast %19 : vector<16x1xf32> to vector<16x128xf32>
    %21 = arith.subf %13, %20 : vector<16x128xf32>
    %22 = arith.mulf %21, %21 : vector<16x128xf32>
    %cst_10 = arith.constant dense<0.000000e+00> : vector<16xf32>
    %23 = vector.multi_reduction <add>, %22, %cst_10 [1] : vector<16x128xf32> to vector<16xf32>
    %24 = vector.shape_cast %23 : vector<16xf32> to vector<16x1xf32>
    %cst_11 = arith.constant 1.280000e+02 : f32
    %25 = vector.broadcast %cst_11 : f32 to vector<16x1xf32>
    %26 = arith.divf %24, %25 : vector<16x1xf32>
    %27 = vector.broadcast %19 : vector<16x1xf32> to vector<16x128xf32>
    %28 = arith.subf %13, %27 : vector<16x128xf32>
    %cst_12 = arith.constant 9.99999996E-13 : f32
    %29 = vector.broadcast %cst_12 : f32 to vector<16x1xf32>
    %30 = arith.addf %26, %29 : vector<16x1xf32>
    %31 = math.rsqrt %30 : vector<16x1xf32>
    %32 = vector.broadcast %31 : vector<16x1xf32> to vector<16x128xf32>
    %33 = arith.mulf %28, %32 : vector<16x128xf32>
    %34 = vector.broadcast %14 : vector<1x128xf32> to vector<16x128xf32>
    %35 = arith.mulf %33, %34 : vector<16x128xf32>
    %36 = vector.broadcast %15 : vector<1x128xf32> to vector<16x128xf32>
    %37 = arith.addf %35, %36 : vector<16x128xf32>
    %38 = vector.shape_cast %37 : vector<16x128xf32> to vector<2x8x128xf32>
    %c0_13 = arith.constant 0 : index
    %c0_14 = arith.constant 0 : index
    %c0_15 = arith.constant 0 : index
    %39 = vector.load %arg15[%c0_13, %c0_14, %c0_15] : memref<2x8x128xf32, #tpu.memory_space<vmem>>, vector<2x8x128xf32>
    tpu.vector_store %arg15[%c0_13, %c0_14, %c0_15], %38 {strides = array<i32>} : memref<2x8x128xf32, #tpu.memory_space<vmem>>, vector<2x8x128xf32>,
    %c0_16 = arith.constant 0 : index
    %c0_17 = arith.constant 0 : index
    %c0_18 = arith.constant 0 : index
    %40 = vector.load %arg5[%c0_16, %c0_17, %c0_18] : memref<8x1x8xf32, #tpu.memory_space<vmem>>, vector<8x1x8xf32>
    %c0_19 = arith.constant 0 : index
    %c0_20 = arith.constant 0 : index
    %c0_21 = arith.constant 0 : index
    %c0_22 = arith.constant 0 : index
    %41 = vector.load %arg6[%c0_19, %c0_20, %c0_21, %c0_22] : memref<3x4x128x32xf32, #tpu.memory_space<vmem>>, vector<3x4x128x32xf32>
    %c0_23 = arith.constant 0 : index
    %c0_24 = arith.constant 0 : index
    %c0_25 = arith.constant 0 : index
    %c0_26 = arith.constant 0 : index
    %42 = vector.load %arg7[%c0_23, %c0_24, %c0_25, %c0_26] : memref<3x4x1x32xf32, #tpu.memory_space<vmem>>, vector<3x4x1x32xf32>
    %c0_27 = arith.constant 0 : index
    %c0_28 = arith.constant 0 : index
    %c0_29 = arith.constant 0 : index
    %43 = vector.load %arg8[%c0_27, %c0_28, %c0_29] : memref<4x32x128xf32, #tpu.memory_space<vmem>>, vector<4x32x128xf32>
    %c0_30 = arith.constant 0 : index
    %c0_31 = arith.constant 0 : index
    %44 = vector.load %arg9[%c0_30, %c0_31] : memref<6x128xf32, #tpu.memory_space<vmem>>, vector<6x128xf32>
    %c0_32 = arith.constant 0 : index
    %c0_33 = arith.constant 0 : index
    %45 = vector.load %arg10[%c0_32, %c0_33] : memref<128x256xf32, #tpu.memory_space<vmem>>, vector<128x256xf32>
    %c0_34 = arith.constant 0 : index
    %c0_35 = arith.constant 0 : index
    %46 = vector.load %arg11[%c0_34, %c0_35] : memref<1x256xf32, #tpu.memory_space<vmem>>, vector<1x256xf32>
    %c0_36 = arith.constant 0 : index
    %c0_37 = arith.constant 0 : index
    %47 = vector.load %arg12[%c0_36, %c0_37] : memref<256x128xf32, #tpu.memory_space<vmem>>, vector<256x128xf32>
    %48 = vector.shape_cast %38 : vector<2x8x128xf32> to vector<2x1x8x128xf32>
    %49 = vector.shape_cast %48 : vector<2x1x8x128xf32> to vector<2x1x8x128xf32>
    %50 = vector.broadcast %49 : vector<2x1x8x128xf32> to vector<2x4x8x128xf32>
    %51 = vector.shape_cast %50 : vector<2x4x8x128xf32> to vector<8x8x128xf32>
    %52 = vector.shape_cast %38 : vector<2x8x128xf32> to vector<2x1x8x128xf32>
    %53 = vector.shape_cast %52 : vector<2x1x8x128xf32> to vector<2x1x8x128xf32>
    %54 = vector.broadcast %53 : vector<2x1x8x128xf32> to vector<2x4x8x128xf32>
    %55 = vector.shape_cast %54 : vector<2x4x8x128xf32> to vector<8x8x128xf32>
    %56 = vector.extract_strided_slice %41 {offsets = [0, 0, 0, 0], sizes = [1, 4, 128, 32], strides = [1, 1, 1, 1]} : vector<3x4x128x32xf32> to vector<1x4x128x32xf32>
    %57 = vector.shape_cast %56 : vector<1x4x128x32xf32> to vector<4x128x32xf32>
    %58 = vector.shape_cast %57 : vector<4x128x32xf32> to vector<1x4x128x32xf32>
    %59 = vector.shape_cast %58 : vector<1x4x128x32xf32> to vector<1x4x128x32xf32>
    %60 = vector.broadcast %59 : vector<1x4x128x32xf32> to vector<2x4x128x32xf32>
    %61 = vector.shape_cast %60 : vector<2x4x128x32xf32> to vector<8x128x32xf32>
    %cst_38 = arith.constant dense<0.000000e+00> : vector<8x8x32xf32>
    %62 = tpu.matmul %51, %61, %cst_38 {dimension_numbers = #tpu.dot_dimension_numbers<[2], [1], [1], [2], [0, 0, 0, 1, 1, 2], [0], [0]>} : vector<8x8x128xf32>, vector<8x128x32xf32>, vector<8x8x32xf32> -> vector<8x8x32xf32>
    %63 = vector.extract_strided_slice %42 {offsets = [0, 0, 0, 0], sizes = [1, 4, 1, 32], strides = [1, 1, 1, 1]} : vector<3x4x1x32xf32> to vector<1x4x1x32xf32>
    %64 = vector.shape_cast %63 : vector<1x4x1x32xf32> to vector<4x1x32xf32>
    %65 = vector.shape_cast %64 : vector<4x1x32xf32> to vector<1x4x1x32xf32>
    %66 = vector.shape_cast %65 : vector<1x4x1x32xf32> to vector<1x4x1x32xf32>
    %67 = vector.broadcast %66 : vector<1x4x1x32xf32> to vector<2x4x1x32xf32>
    %68 = vector.shape_cast %67 : vector<2x4x1x32xf32> to vector<8x1x32xf32>
    %69 = vector.broadcast %68 : vector<8x1x32xf32> to vector<8x8x32xf32>
    %70 = arith.addf %62, %69 : vector<8x8x32xf32>
    %cst_39 = arith.constant 0.176776692 : f32
    %71 = vector.broadcast %cst_39 : f32 to vector<8x8x32xf32>
    %72 = arith.mulf %70, %71 : vector<8x8x32xf32>
    %73 = vector.extract_strided_slice %41 {offsets = [1, 0, 0, 0], sizes = [1, 4, 128, 32], strides = [1, 1, 1, 1]} : vector<3x4x128x32xf32> to vector<1x4x128x32xf32>
    %74 = vector.shape_cast %73 : vector<1x4x128x32xf32> to vector<4x128x32xf32>
    %75 = vector.shape_cast %74 : vector<4x128x32xf32> to vector<1x4x128x32xf32>
    %76 = vector.shape_cast %75 : vector<1x4x128x32xf32> to vector<1x4x128x32xf32>
    %77 = vector.broadcast %76 : vector<1x4x128x32xf32> to vector<2x4x128x32xf32>
    %78 = vector.shape_cast %77 : vector<2x4x128x32xf32> to vector<8x128x32xf32>
    %cst_40 = arith.constant dense<0.000000e+00> : vector<8x8x32xf32>
    %79 = tpu.matmul %55, %78, %cst_40 {dimension_numbers = #tpu.dot_dimension_numbers<[2], [1], [1], [2], [0, 0, 0, 1, 1, 2], [0], [0]>} : vector<8x8x128xf32>, vector<8x128x32xf32>, vector<8x8x32xf32> -> vector<8x8x32xf32>
    %80 = vector.extract_strided_slice %42 {offsets = [1, 0, 0, 0], sizes = [1, 4, 1, 32], strides = [1, 1, 1, 1]} : vector<3x4x1x32xf32> to vector<1x4x1x32xf32>
    %81 = vector.shape_cast %80 : vector<1x4x1x32xf32> to vector<4x1x32xf32>
    %82 = vector.shape_cast %81 : vector<4x1x32xf32> to vector<1x4x1x32xf32>
    %83 = vector.shape_cast %82 : vector<1x4x1x32xf32> to vector<1x4x1x32xf32>
    %84 = vector.broadcast %83 : vector<1x4x1x32xf32> to vector<2x4x1x32xf32>
    %85 = vector.shape_cast %84 : vector<2x4x1x32xf32> to vector<8x1x32xf32>
    %86 = vector.broadcast %85 : vector<8x1x32xf32> to vector<8x8x32xf32>
    %87 = arith.addf %79, %86 : vector<8x8x32xf32>
    %88 = vector.extract_strided_slice %41 {offsets = [2, 0, 0, 0], sizes = [1, 4, 128, 32], strides = [1, 1, 1, 1]} : vector<3x4x128x32xf32> to vector<1x4x128x32xf32>
    %89 = vector.shape_cast %88 : vector<1x4x128x32xf32> to vector<4x128x32xf32>
    %90 = vector.shape_cast %89 : vector<4x128x32xf32> to vector<1x4x128x32xf32>
    %91 = vector.shape_cast %90 : vector<1x4x128x32xf32> to vector<1x4x128x32xf32>
    %92 = vector.broadcast %91 : vector<1x4x128x32xf32> to vector<2x4x128x32xf32>
    %93 = vector.shape_cast %92 : vector<2x4x128x32xf32> to vector<8x128x32xf32>
    %cst_41 = arith.constant dense<0.000000e+00> : vector<8x8x32xf32>
    %94 = tpu.matmul %55, %93, %cst_41 {dimension_numbers = #tpu.dot_dimension_numbers<[2], [1], [1], [2], [0, 0, 0, 1, 1, 2], [0], [0]>} : vector<8x8x128xf32>, vector<8x128x32xf32>, vector<8x8x32xf32> -> vector<8x8x32xf32>
    %95 = vector.extract_strided_slice %42 {offsets = [2, 0, 0, 0], sizes = [1, 4, 1, 32], strides = [1, 1, 1, 1]} : vector<3x4x1x32xf32> to vector<1x4x1x32xf32>
    %96 = vector.shape_cast %95 : vector<1x4x1x32xf32> to vector<4x1x32xf32>
    %97 = vector.shape_cast %96 : vector<4x1x32xf32> to vector<1x4x1x32xf32>
    %98 = vector.shape_cast %97 : vector<1x4x1x32xf32> to vector<1x4x1x32xf32>
    %99 = vector.broadcast %98 : vector<1x4x1x32xf32> to vector<2x4x1x32xf32>
    %100 = vector.shape_cast %99 : vector<2x4x1x32xf32> to vector<8x1x32xf32>
    %101 = vector.broadcast %100 : vector<8x1x32xf32> to vector<8x8x32xf32>
    %102 = arith.addf %94, %101 : vector<8x8x32xf32>
    %cst_42 = arith.constant dense<0.000000e+00> : vector<8x8x8xf32>
    %103 = tpu.matmul %72, %87, %cst_42 {dimension_numbers = #tpu.dot_dimension_numbers<[2], [2], [1], [1], [0, 0, 0, 1, 1, 1], [0], [0]>} : vector<8x8x32xf32>, vector<8x8x32xf32>, vector<8x8x8xf32> -> vector<8x8x8xf32>
    %104 = vector.broadcast %40 : vector<8x1x8xf32> to vector<8x8x8xf32>
    %105 = arith.addf %103, %104 : vector<8x8x8xf32>
    %cst_43 = arith.constant dense<0xFF800000> : vector<8x8xf32>
    %106 = vector.multi_reduction <maximumf>, %105, %cst_43 [2] : vector<8x8x8xf32> to vector<8x8xf32>
    %107 = vector.shape_cast %106 : vector<8x8xf32> to vector<8x8x1xf32>
    %108 = vector.broadcast %107 : vector<8x8x1xf32> to vector<8x8x8xf32>
    %109 = arith.subf %105, %108 : vector<8x8x8xf32>
    %110 = math.exp %109 : vector<8x8x8xf32>
    %cst_44 = arith.constant dense<0.000000e+00> : vector<8x8xf32>
    %111 = vector.multi_reduction <add>, %110, %cst_44 [2] : vector<8x8x8xf32> to vector<8x8xf32>
    %112 = vector.shape_cast %111 : vector<8x8xf32> to vector<8x8x1xf32>
    %113 = vector.broadcast %112 : vector<8x8x1xf32> to vector<8x8x8xf32>
    %114 = arith.divf %110, %113 : vector<8x8x8xf32>
    %cst_45 = arith.constant dense<0.000000e+00> : vector<8x8x32xf32>
    %115 = tpu.matmul %114, %102, %cst_45 {dimension_numbers = #tpu.dot_dimension_numbers<[2], [1], [1], [2], [0, 0, 0, 1, 1, 2], [0], [0]>} : vector<8x8x8xf32>, vector<8x8x32xf32>, vector<8x8x32xf32> -> vector<8x8x32xf32>
    %116 = vector.shape_cast %43 : vector<4x32x128xf32> to vector<1x4x32x128xf32>
    %117 = vector.shape_cast %116 : vector<1x4x32x128xf32> to vector<1x4x32x128xf32>
    %118 = vector.broadcast %117 : vector<1x4x32x128xf32> to vector<2x4x32x128xf32>
    %119 = vector.shape_cast %118 : vector<2x4x32x128xf32> to vector<8x32x128xf32>
    %cst_46 = arith.constant dense<0.000000e+00> : vector<8x8x128xf32>
    %120 = tpu.matmul %115, %119, %cst_46 {dimension_numbers = #tpu.dot_dimension_numbers<[2], [1], [1], [2], [0, 0, 0, 1, 1, 2], [0], [0]>} : vector<8x8x32xf32>, vector<8x32x128xf32>, vector<8x8x128xf32> -> vector<8x8x128xf32>
    %121 = vector.shape_cast %120 : vector<8x8x128xf32> to vector<2x4x8x128xf32>
    %cst_47 = arith.constant dense<0.000000e+00> : vector<2x8x128xf32>
    %122 = vector.multi_reduction <add>, %121, %cst_47 [1] : vector<2x4x8x128xf32> to vector<2x8x128xf32>
    %123 = vector.shape_cast %38 : vector<2x8x128xf32> to vector<16x128xf32>
    %124 = vector.shape_cast %122 : vector<2x8x128xf32> to vector<16x128xf32>
    %125 = vector.extract_strided_slice %44 {offsets = [0, 0], sizes = [1, 128], strides = [1, 1]} : vector<6x128xf32> to vector<1x128xf32>
    %126 = vector.broadcast %125 : vector<1x128xf32> to vector<16x128xf32>
    %127 = arith.addf %124, %126 : vector<16x128xf32>
    %128 = arith.addf %123, %127 : vector<16x128xf32>
    %129 = vector.extract_strided_slice %44 {offsets = [1, 0], sizes = [1, 128], strides = [1, 1]} : vector<6x128xf32> to vector<1x128xf32>
    %130 = vector.extract_strided_slice %44 {offsets = [2, 0], sizes = [1, 128], strides = [1, 1]} : vector<6x128xf32> to vector<1x128xf32>
    %cst_48 = arith.constant dense<0.000000e+00> : vector<16xf32>
    %131 = vector.multi_reduction <add>, %128, %cst_48 [1] : vector<16x128xf32> to vector<16xf32>
    %132 = vector.shape_cast %131 : vector<16xf32> to vector<16x1xf32>
    %cst_49 = arith.constant 1.280000e+02 : f32
    %133 = vector.broadcast %cst_49 : f32 to vector<16x1xf32>
    %134 = arith.divf %132, %133 : vector<16x1xf32>
    %135 = vector.broadcast %134 : vector<16x1xf32> to vector<16x128xf32>
    %136 = arith.subf %128, %135 : vector<16x128xf32>
    %137 = arith.mulf %136, %136 : vector<16x128xf32>
    %cst_50 = arith.constant dense<0.000000e+00> : vector<16xf32>
    %138 = vector.multi_reduction <add>, %137, %cst_50 [1] : vector<16x128xf32> to vector<16xf32>
    %139 = vector.shape_cast %138 : vector<16xf32> to vector<16x1xf32>
    %cst_51 = arith.constant 1.280000e+02 : f32
    %140 = vector.broadcast %cst_51 : f32 to vector<16x1xf32>
    %141 = arith.divf %139, %140 : vector<16x1xf32>
    %142 = vector.broadcast %134 : vector<16x1xf32> to vector<16x128xf32>
    %143 = arith.subf %128, %142 : vector<16x128xf32>
    %cst_52 = arith.constant 9.99999996E-13 : f32
    %144 = vector.broadcast %cst_52 : f32 to vector<16x1xf32>
    %145 = arith.addf %141, %144 : vector<16x1xf32>
    %146 = math.rsqrt %145 : vector<16x1xf32>
    %147 = vector.broadcast %146 : vector<16x1xf32> to vector<16x128xf32>
    %148 = arith.mulf %143, %147 : vector<16x128xf32>
    %149 = vector.broadcast %129 : vector<1x128xf32> to vector<16x128xf32>
    %150 = arith.mulf %148, %149 : vector<16x128xf32>
    %151 = vector.broadcast %130 : vector<1x128xf32> to vector<16x128xf32>
    %152 = arith.addf %150, %151 : vector<16x128xf32>
    %cst_53 = arith.constant dense<0.000000e+00> : vector<16x256xf32>
    %153 = tpu.matmul %152, %45, %cst_53 {dimension_numbers = #tpu.dot_dimension_numbers<[1], [0], [0], [1], [0, 0, 1, 1], [], []>} : vector<16x128xf32>, vector<128x256xf32>, vector<16x256xf32> -> vector<16x256xf32>
    %154 = vector.broadcast %46 : vector<1x256xf32> to vector<16x256xf32>
    %155 = arith.addf %153, %154 : vector<16x256xf32>
    %156 = arith.mulf %155, %155 : vector<16x256xf32>
    %157 = arith.mulf %155, %156 : vector<16x256xf32>
    %cst_54 = arith.constant 4.471500e-02 : f32
    %158 = vector.broadcast %cst_54 : f32 to vector<16x256xf32>
    %159 = arith.mulf %158, %157 : vector<16x256xf32>
    %160 = arith.addf %155, %159 : vector<16x256xf32>
    %cst_55 = arith.constant 0.797884583 : f32
    %161 = vector.broadcast %cst_55 : f32 to vector<16x256xf32>
    %162 = arith.mulf %161, %160 : vector<16x256xf32>
    %163 = math.tanh %162 : vector<16x256xf32>
    %cst_56 = arith.constant 1.000000e+00 : f32
    %164 = vector.broadcast %cst_56 : f32 to vector<16x256xf32>
    %165 = arith.addf %164, %163 : vector<16x256xf32>
    %cst_57 = arith.constant 5.000000e-01 : f32
    %166 = vector.broadcast %cst_57 : f32 to vector<16x256xf32>
    %167 = arith.mulf %166, %165 : vector<16x256xf32>
    %168 = arith.mulf %155, %167 : vector<16x256xf32>
    %cst_58 = arith.constant dense<0.000000e+00> : vector<16x128xf32>
    %169 = tpu.matmul %168, %47, %cst_58 {dimension_numbers = #tpu.dot_dimension_numbers<[1], [0], [0], [1], [0, 0, 1, 1], [], []>} : vector<16x256xf32>, vector<256x128xf32>, vector<16x128xf32> -> vector<16x128xf32>
    %170 = vector.extract_strided_slice %44 {offsets = [3, 0], sizes = [1, 128], strides = [1, 1]} : vector<6x128xf32> to vector<1x128xf32>
    %171 = vector.broadcast %170 : vector<1x128xf32> to vector<16x128xf32>
    %172 = arith.addf %169, %171 : vector<16x128xf32>
    %173 = arith.addf %152, %172 : vector<16x128xf32>
    %174 = vector.extract_strided_slice %44 {offsets = [4, 0], sizes = [1, 128], strides = [1, 1]} : vector<6x128xf32> to vector<1x128xf32>
    %175 = vector.extract_strided_slice %44 {offsets = [5, 0], sizes = [1, 128], strides = [1, 1]} : vector<6x128xf32> to vector<1x128xf32>
    %cst_59 = arith.constant dense<0.000000e+00> : vector<16xf32>
    %176 = vector.multi_reduction <add>, %173, %cst_59 [1] : vector<16x128xf32> to vector<16xf32>
    %177 = vector.shape_cast %176 : vector<16xf32> to vector<16x1xf32>
    %cst_60 = arith.constant 1.280000e+02 : f32
    %178 = vector.broadcast %cst_60 : f32 to vector<16x1xf32>
    %179 = arith.divf %177, %178 : vector<16x1xf32>
    %180 = vector.broadcast %179 : vector<16x1xf32> to vector<16x128xf32>
    %181 = arith.subf %173, %180 : vector<16x128xf32>
    %182 = arith.mulf %181, %181 : vector<16x128xf32>
    %cst_61 = arith.constant dense<0.000000e+00> : vector<16xf32>
    %183 = vector.multi_reduction <add>, %182, %cst_61 [1] : vector<16x128xf32> to vector<16xf32>
    %184 = vector.shape_cast %183 : vector<16xf32> to vector<16x1xf32>
    %cst_62 = arith.constant 1.280000e+02 : f32
    %185 = vector.broadcast %cst_62 : f32 to vector<16x1xf32>
    %186 = arith.divf %184, %185 : vector<16x1xf32>
    %187 = vector.broadcast %179 : vector<16x1xf32> to vector<16x128xf32>
    %188 = arith.subf %173, %187 : vector<16x128xf32>
    %cst_63 = arith.constant 9.99999996E-13 : f32
    %189 = vector.broadcast %cst_63 : f32 to vector<16x1xf32>
    %190 = arith.addf %186, %189 : vector<16x1xf32>
    %191 = math.rsqrt %190 : vector<16x1xf32>
    %192 = vector.broadcast %191 : vector<16x1xf32> to vector<16x128xf32>
    %193 = arith.mulf %188, %192 : vector<16x128xf32>
    %194 = vector.broadcast %174 : vector<1x128xf32> to vector<16x128xf32>
    %195 = arith.mulf %193, %194 : vector<16x128xf32>
    %196 = vector.broadcast %175 : vector<1x128xf32> to vector<16x128xf32>
    %197 = arith.addf %195, %196 : vector<16x128xf32>
    %198 = vector.shape_cast %197 : vector<16x128xf32> to vector<2x8x128xf32>
    %c0_64 = arith.constant 0 : index
    %c0_65 = arith.constant 0 : index
    %c0_66 = arith.constant 0 : index
    %199 = vector.load %arg13[%c0_64, %c0_65, %c0_66] : memref<2x8x128xf32, #tpu.memory_space<vmem>>, vector<2x8x128xf32>
    tpu.vector_store %arg13[%c0_64, %c0_65, %c0_66], %198 {strides = array<i32>} : memref<2x8x128xf32, #tpu.memory_space<vmem>>, vector<2x8x128xf32>,
    %c0_67 = arith.constant 0 : index
    %c0_68 = arith.constant 0 : index
    %c0_69 = arith.constant 0 : index
    %200 = vector.load %arg4[%c0_67, %c0_68, %c0_69] : memref<2x8x1xf32, #tpu.memory_space<vmem>>, vector<2x8x1xf32>
    %201 = tpu.iota {dimensions = array<i32: 1>} : vector<2x16xi32>
    %202 = tpu.iota {dimensions = array<i32: 0>} : vector<2x16xi32>
    %c8_i32 = arith.constant 8 : i32
    %203 = vector.broadcast %c8_i32 : i32 to vector<2x16xi32>
    %204 = arith.muli %202, %203 : vector<2x16xi32>
    %205 = arith.cmpi sge, %201, %204 : vector<2x16xi32>
    %c1_i32 = arith.constant 1 : i32
    %206 = vector.broadcast %c1_i32 : i32 to vector<2x16xi32>
    %207 = arith.addi %202, %206 : vector<2x16xi32>
    %c8_i32_70 = arith.constant 8 : i32
    %208 = vector.broadcast %c8_i32_70 : i32 to vector<2x16xi32>
    %209 = arith.muli %207, %208 : vector<2x16xi32>
    %210 = arith.cmpi slt, %201, %209 : vector<2x16xi32>
    %211 = arith.andi %205, %210 : vector<2x16xi1>
    %212 = arith.extui %211 : vector<2x16xi1> to vector<2x16xi32>
    %213 = arith.sitofp %212 : vector<2x16xi32> to vector<2x16xf32>
    %214 = vector.broadcast %200 : vector<2x8x1xf32> to vector<2x8x128xf32>
    %215 = arith.mulf %198, %214 : vector<2x8x128xf32>
    %216 = vector.shape_cast %215 : vector<2x8x128xf32> to vector<16x128xf32>
    %cst_71 = arith.constant dense<0.000000e+00> : vector<2x128xf32>
    %217 = tpu.matmul %213, %216, %cst_71 {dimension_numbers = #tpu.dot_dimension_numbers<[1], [0], [0], [1], [0, 0, 1, 1], [], []>} : vector<2x16xf32>, vector<16x128xf32>, vector<2x128xf32> -> vector<2x128xf32>
    %218 = vector.shape_cast %200 : vector<2x8x1xf32> to vector<16x1xf32>
    %cst_72 = arith.constant dense<0.000000e+00> : vector<2x1xf32>
    %219 = tpu.matmul %213, %218, %cst_72 {dimension_numbers = #tpu.dot_dimension_numbers<[1], [0], [0], [1], [0, 0, 1, 1], [], []>} : vector<2x16xf32>, vector<16x1xf32>, vector<2x1xf32> -> vector<2x1xf32>
    %cst_73 = arith.constant 1.000000e+00 : f32
    %220 = vector.broadcast %cst_73 : f32 to vector<2x1xf32>
    %221 = arith.maximumf %219, %220 : vector<2x1xf32>
    %222 = vector.broadcast %221 : vector<2x1xf32> to vector<2x128xf32>
    %223 = arith.divf %217, %222 : vector<2x128xf32>
    %c0_74 = arith.constant 0 : index
    %c0_75 = arith.constant 0 : index
    %224 = vector.load %arg14[%c0_74, %c0_75] : memref<2x128xf32, #tpu.memory_space<vmem>>, vector<2x128xf32>
    tpu.vector_store %arg14[%c0_74, %c0_75], %223 {strides = array<i32>} : memref<2x128xf32, #tpu.memory_space<vmem>>, vector<2x128xf32>,
    return
  }
}

</mosaic_0001>

<bundles_post_ra>
// kernel: tpu_custom_call.1
= control target key start
LH: loop header
LB: loop body
LE: loop exit
PB: predicated region body
PF: predicated region fallthrough
CT: control target
= control target key end

     0   :  { %21 = vsyncpa [#allocation3], 0  ;;  %v6470_v2 = vmov 0   ;;  %s9061_s0 = inlined_call_operand.vmem [shape: s32[16,1], index: 0, kind: input, shape index: {}]   ;;  %s9062_s1 = inlined_call_operand.vmem [shape: f32[128,128], index: 1, kind: input, shape index: {}]   ;;  %s9063_s2 = inlined_call_operand.vmem [shape: f32[8,128], index: 2, kind: input, shape index: {}]   ;;  %s9064_s3 = inlined_call_operand.vmem [shape: f32[2,128], index: 3, kind: input, shape index: {}]   ;;  %s9065_s4 = inlined_call_operand.vmem [shape: f32[2,8,1], index: 4, kind: input, shape index: {}]   ;;  %s9066_s5 = inlined_call_operand.vmem [shape: f32[8,1,8], index: 5, kind: input, shape index: {}]   ;;  %s9067_s6 = inlined_call_operand.vmem [shape: f32[3,4,128,32], index: 6, kind: input, shape index: {}]   ;;  %s9068_s7 = inlined_call_operand.vmem [shape: f32[3,4,1,32], index: 7, kind: input, shape index: {}]   ;;  %s9069_s8 = inlined_call_operand.vmem [shape: f32[4,32,128], index: 8, kind: input, shape index: {}]   ;;  %s9070_s9 = inlined_call_operand.vmem [shape: f32[6,128], index: 9, kind: input, shape index: {}]   ;;  %s9071_s10 = inlined_call_operand.vmem [shape: f32[128,256], index: 10, kind: input, shape index: {}]   ;;  %s9072_s11 = inlined_call_operand.vmem [shape: f32[1,256], index: 11, kind: input, shape index: {}]   ;;  %s9073_s12 = inlined_call_operand.vmem [shape: f32[256,128], index: 12, kind: input, shape index: {}]   ;;  %s9074_s13 = inlined_call_operand.hbm [shape: f32[2,8,128], index: 13, kind: output, shape index: {0}]   ;;  %s9075_s14 = inlined_call_operand.hbm [shape: f32[2,128], index: 14, kind: output, shape index: {1}]   ;;  %s9076_s15 = inlined_call_operand.hbm [shape: f32[2,8,128], index: 15, kind: output, shape index: {2}]  }
   0x1   :  { %v49_v0 = vld [vmem:[%s9061_s0] sm:$0xff]  ;;  %v80_v1 = vld [vmem:[%s9062_s1 + $0x78] sm:$0xff]  ;;  %6346 = vset.pattern.permute.xlu0 %v6470_v2  ;;  %v79_v3 = vld [vmem:[%s9062_s1 + $0x70] sm:$0xff]  ;;  %6347 = vset.pattern.permute.xlu1 %v6470_v2 }
   0x2   :  { %5280 = vmatprep.subr.mxu0 %v80_v1  ;;  %54 = vperm.xlu0 %6346, %v49_v0   ;;  %v78_v4 = vld [vmem:[%s9062_s1 + $0x68] sm:$0xff]  ;;  %v77_v6 = vld [vmem:[%s9062_s1 + $0x60] sm:$0xff]  ;;  %v76_v7 = vld [vmem:[%s9062_s1 + $0x58] sm:$0xff] }
   0x3   :  { %5281 = vmatpush3.msra.mxu0 %v80_v1  ;;  %v50_v5 = vld [vmem:[%s9061_s0 + $0x8] sm:$0xff] }
   0x4   :  { %5282 = vmatprep.subr.mxu0 %v79_v3 }
   0x5   :  { %5283 = vmatpush3.msra.mxu0 %v79_v3 }
   0x6   :  { %5284 = vmatprep.subr.mxu0 %v78_v4  ;;  %57 = vperm.xlu0 %6346, %v50_v5  }
   0x7   :  { %5285 = vmatpush3.msra.mxu0 %v78_v4 }
   0x8   :  { %22 = vsyncpa [#allocation5], 0  ;;  %5286 = vmatprep.subr.mxu0 %v77_v6  ;;  %v75_v8 = vld [vmem:[%s9062_s1 + $0x50] sm:$0xff]  ;;  %v74_v9 = vld [vmem:[%s9062_s1 + $0x48] sm:$0xff]  ;;  %v9077_v19 = vlaneseq  ;;  %v6471_v22 = vmov 1.0   ;;  %v6472_v31 = vmov 0.0  }
   0x9   :  { %5287 = vmatpush3.msra.mxu0 %v77_v6  ;;  %v73_v10 = vld [vmem:[%s9062_s1 + $0x40] sm:$0xff]  ;;  %v72_v11 = vld [vmem:[%s9062_s1 + $0x38] sm:$0xff]  ;;  %v71_v12 = vld [vmem:[%s9062_s1 + $0x30] sm:$0xff]  ;;  %5315 = vmatprep.subr.mxu1 %v6472_v31  ;;  %vm6473_vm2 = vmmov 0   ;;  %vm2300_vm3 = vcmask 261120   ;;  %vm2909_vm4 = vcmask 64512  }
   0xa   :  { %5288 = vmatprep.subr.mxu0 %v76_v7  ;;  %v70_v13 = vld [vmem:[%s9062_s1 + $0x28] sm:$0xff]  ;;  %v69_v14 = vld [vmem:[%s9062_s1 + $0x20] sm:$0xff]  ;;  %v68_v15 = vld [vmem:[%s9062_s1 + $0x18] sm:$0xff]  ;;  %v6614_v20 = vand.u32 127, %v9077_v19  ;;  %5347 = vmatprep.mubr.msk.f32.mxu1 %vm6473_vm2, %v6472_v31  ;;  %vm4479_vm7 = vcmask 130048  }
   0xb   :  { %5289 = vmatpush3.msra.mxu0 %v76_v7  ;;  %v67_v16 = vld [vmem:[%s9062_s1 + $0x10] sm:$0xff]  ;;  %v66_v17 = vld [vmem:[%s9062_s1 + $0x8] sm:$0xff]  ;;  %v65_v18 = vld [vmem:[%s9062_s1] sm:$0xff] }
   0xc   :  { %5290 = vmatprep.subr.mxu0 %v75_v8  ;;  %9089 = vst [vmem:[#allocation9_spill] sm:$0xff] %v6614_v20  ;;  %v156_v25 = vld [vmem:[%s9063_s2] sm:$0xff]  ;;  %v6624_v29 = vld [vmem:[%s9067_s6 + $0x78] sm:$0xff]  ;;  %v6636_v32 = vld [vmem:[%s9067_s6 + $0x70] sm:$0xff] }
   0xd   :  { %5291 = vmatpush3.msra.mxu0 %v75_v8  ;;  %v6629_v30 = vld [vmem:[%s9067_s6 + $0xf8] sm:$0xff]  ;;  %v6641_v33 = vld [vmem:[%s9067_s6 + $0xf0] sm:$0xff]  ;;  %5316 = vmatpush3.msra.mxu1 %v6624_v29  ;;  %v6650_v34 = vld [vmem:[%s9067_s6 + $0x68] sm:$0xff] }
   0xe   :  { %5292 = vmatprep.subr.mxu0 %v74_v9  ;;  %5317 = vmatprep.subr.mxu1 %v6472_v31  ;;  %v6655_v35 = vld [vmem:[%s9067_s6 + $0xe8] sm:$0xff]  ;;  %v6664_v36 = vld [vmem:[%s9067_s6 + $0x60] sm:$0xff]  ;;  %v6690_v46 = vld [vmem:[%s9067_s6 + $0x58] sm:$0xff] }
   0xf   :  { %5293 = vmatpush3.msra.mxu0 %v74_v9  ;;  %5318 = vmatpush3.msra.mxu1 %v6636_v32  ;;  %v6669_v37 = vld [vmem:[%s9067_s6 + $0xe0] sm:$0xff]  ;;  %v6695_v47 = vld [vmem:[%s9067_s6 + $0xd8] sm:$0xff]  ;;  %v6704_v48 = vld [vmem:[%s9067_s6 + $0x50] sm:$0xff] }
  0x10   :  { %5294 = vmatprep.subr.mxu0 %v73_v10  ;;  %5319 = vmatprep.subr.mxu1 %v6472_v31  ;;  %v6709_v49 = vld [vmem:[%s9067_s6 + $0xd0] sm:$0xff]  ;;  %v6718_v50 = vld [vmem:[%s9067_s6 + $0x48] sm:$0xff]  ;;  %v6732_v52 = vld [vmem:[%s9067_s6 + $0x40] sm:$0xff] }
  0x11   :  { %5295 = vmatpush3.msra.mxu0 %v73_v10  ;;  %5320 = vmatpush3.msra.mxu1 %v6650_v34  ;;  %v6723_v51 = vld [vmem:[%s9067_s6 + $0xc8] sm:$0xff]  ;;  %v6737_v53 = vld [vmem:[%s9067_s6 + $0xc0] sm:$0xff]  ;;  %v6746_v54 = vld [vmem:[%s9067_s6 + $0x38] sm:$0xff] }
  0x12   :  { %5296 = vmatprep.subr.mxu0 %v72_v11  ;;  %5321 = vmatprep.subr.mxu1 %v6472_v31  ;;  %v6751_v55 = vld [vmem:[%s9067_s6 + $0xb8] sm:$0xff]  ;;  %v6760_v56 = vld [vmem:[%s9067_s6 + $0x30] sm:$0xff]  ;;  %v6774_v58 = vld [vmem:[%s9067_s6 + $0x28] sm:$0xff] }
  0x13   :  { %5297 = vmatpush3.msra.mxu0 %v72_v11  ;;  %5322 = vmatpush3.msra.mxu1 %v6664_v36  ;;  %v6765_v57 = vld [vmem:[%s9067_s6 + $0xb0] sm:$0xff]  ;;  %v6779_v59 = vld [vmem:[%s9067_s6 + $0xa8] sm:$0xff]  ;;  %v6788_v60 = vld [vmem:[%s9067_s6 + $0x20] sm:$0xff] }
  0x14   :  { %5298 = vmatprep.subr.mxu0 %v71_v12  ;;  %5323 = vmatprep.subr.mxu1 %v6472_v31  ;;  %v6793_v61 = vld [vmem:[%s9067_s6 + $0xa0] sm:$0xff]  ;;  %v6802_v62 = vld [vmem:[%s9067_s6 + $0x18] sm:$0xff]  ;;  %v6816_v0 = vld [vmem:[%s9067_s6 + $0x10] sm:$0xff] }
  0x15   :  { %5299 = vmatpush3.msra.mxu0 %v71_v12  ;;  %5324 = vmatpush3.msra.mxu1 %v6690_v46  ;;  %v6807_v63 = vld [vmem:[%s9067_s6 + $0x98] sm:$0xff]  ;;  %v6821_v1 = vld [vmem:[%s9067_s6 + $0x90] sm:$0xff]  ;;  %v6830_v2 = vld [vmem:[%s9067_s6 + $0x8] sm:$0xff] }
  0x16   :  { %5300 = vmatprep.subr.mxu0 %v70_v13  ;;  %5325 = vmatprep.subr.mxu1 %v6472_v31  ;;  %v6835_v3 = vld [vmem:[%s9067_s6 + $0x88] sm:$0xff]  ;;  %v6844_v4 = vld [vmem:[%s9067_s6] sm:$0xff]  ;;  %v7061_v19 = vld [vmem:[%s9067_s6 + $0x190] sm:$0xff] }
  0x17   :  { %5301 = vmatpush3.msra.mxu0 %v70_v13  ;;  %5326 = vmatpush3.msra.mxu1 %v6704_v48  ;;  %v6849_v5 = vld [vmem:[%s9067_s6 + $0x80] sm:$0xff] }
  0x18   :  { %5302 = vmatprep.subr.mxu0 %v69_v14  ;;  %5327 = vmatprep.subr.mxu1 %v6472_v31  ;;  %v4681_v13 = vld [vmem:[%s9064_s3] ss:$0 sm:$0xff] }
  0x19   :  { %5303 = vmatpush3.msra.mxu0 %v69_v14  ;;  %5328 = vmatpush3.msra.mxu1 %v6718_v50 }
  0x1a   :  { %5304 = vmatprep.subr.mxu0 %v68_v15  ;;  %5329 = vmatprep.subr.mxu1 %v6472_v31 }
  0x1b   :  { %5305 = vmatpush3.msra.mxu0 %v68_v15  ;;  %5330 = vmatpush3.msra.mxu1 %v6732_v52  ;;  %v4682_v15 = vld [vmem:[%s9064_s3 + $0x1] ss:$0 sm:$0xff] }
  0x1c   :  { %5306 = vmatprep.subr.mxu0 %v67_v16  ;;  %5331 = vmatprep.subr.mxu1 %v6472_v31 }
  0x1d   :  { %5307 = vmatpush3.msra.mxu0 %v67_v16  ;;  %5332 = vmatpush3.msra.mxu1 %v6746_v54 }
  0x1e   :  { %5308 = vmatprep.subr.mxu0 %v66_v17  ;;  %5333 = vmatprep.subr.mxu1 %v6472_v31 }
  0x1f   :  { %5309 = vmatpush3.msra.mxu0 %v66_v17  ;;  %5334 = vmatpush3.msra.mxu1 %v6760_v56 }
  0x20   :  { %5310 = vmatprep.subr.mxu0 %v65_v18  ;;  %5335 = vmatprep.subr.mxu1 %v6472_v31 }
  0x21   :  { %5311 = vmatpush3.msra.mxu0 %v65_v18  ;;  %5336 = vmatpush3.msra.mxu1 %v6774_v58 }
  0x22   :  { %5350 = vmatprep.subr.mxu0 %v6472_v31  ;;  %5337 = vmatprep.subr.mxu1 %v6472_v31 }
  0x23   :  { %5338 = vmatpush3.msra.mxu1 %v6788_v60 }
  0x24   :  { %5339 = vmatprep.subr.mxu1 %v6472_v31 }
  0x25   :  { %5340 = vmatpush3.msra.mxu1 %v6802_v62 }
  0x26   :  { %5341 = vmatprep.subr.mxu1 %v6472_v31 }
  0x27   :  { %5342 = vmatpush3.msra.mxu1 %v6816_v0 }
  0x28   :  { %5343 = vmatprep.subr.mxu1 %v6472_v31 }
  0x29   :  { %5344 = vmatpush3.msra.mxu1 %v6830_v2 }
  0x2a   :  { %5345 = vmatprep.subr.mxu1 %v6472_v31 }
  0x2b   :  { %5346 = vmatpush3.msra.mxu1 %v6844_v4 }
  0x2c   :  { %5385 = vmatprep.subr.mxu1 %v6472_v31 }
  0x7d   :  { %v55_v21 = vpop.permute.xlu0 %54 }
  0x7e   :  { %vm59_vm0 = vcmp.eq.s32.totalorder %v55_v21, %v6614_v20 }
  0x7f   :  { %5312 = vmatprep.mubr.msk.f32.mxu0 %vm59_vm0, %v6471_v22 }
  0x81   :  { %v58_v23 = vpop.permute.xlu0 %57 }
  0x82   :  { %vm60_vm1 = vcmp.eq.s32.totalorder %v58_v23, %v6614_v20  ;;  %v6877_v23 = vld [vmem:[%s9067_s6 + $0x1f8] sm:$0xff]  ;;  %v7070_v20 = vld [vmem:[%s9067_s6 + $0x108] sm:$0xff] }
  0x83   :  { %5313 = vmatmul.mubr.msk.f32.vlgmr.msra.gmra.mxu0 %vm60_vm1, %v6471_v22  ;;  %v6872_v22 = vld [vmem:[%s9067_s6 + $0x178] sm:$0xff] }
  0x84   :  { %5351 = vmatpush3.msra.mxu0 %v6629_v30  ;;  %5382 = vmatprep.mubr.msk.f32.mxu0 %vm6473_vm2, %v6472_v31 }
  0x85   :  { %5352 = vmatprep.subr.mxu0 %v6472_v31 }
  0x86   :  { %5353 = vmatpush3.msra.mxu0 %v6641_v33 }
  0x87   :  { %5354 = vmatprep.subr.mxu0 %v6472_v31 }
  0x88   :  { %5355 = vmatpush3.msra.mxu0 %v6655_v35 }
  0x89   :  { %5356 = vmatprep.subr.mxu0 %v6472_v31 }
  0x8a   :  { %5357 = vmatpush3.msra.mxu0 %v6669_v37 }
  0x8b   :  { %5358 = vmatprep.subr.mxu0 %v6472_v31 }
  0x8c   :  { %5359 = vmatpush3.msra.mxu0 %v6695_v47 }
  0x8d   :  { %5360 = vmatprep.subr.mxu0 %v6472_v31 }
  0x8e   :  { %5361 = vmatpush3.msra.mxu0 %v6709_v49 }
  0x8f   :  { %5362 = vmatprep.subr.mxu0 %v6472_v31 }
  0x90   :  { %5363 = vmatpush3.msra.mxu0 %v6723_v51 }
  0x91   :  { %5364 = vmatprep.subr.mxu0 %v6472_v31 }
  0x92   :  { %5365 = vmatpush3.msra.mxu0 %v6737_v53 }
  0x93   :  { %5366 = vmatprep.subr.mxu0 %v6472_v31 }
  0x94   :  { %5367 = vmatpush3.msra.mxu0 %v6751_v55 }
  0x95   :  { %5368 = vmatprep.subr.mxu0 %v6472_v31 }
  0x96   :  { %5369 = vmatpush3.msra.mxu0 %v6765_v57 }
  0x97   :  { %5370 = vmatprep.subr.mxu0 %v6472_v31 }
  0x98   :  { %5371 = vmatpush3.msra.mxu0 %v6779_v59 }
  0x99   :  { %5372 = vmatprep.subr.mxu0 %v6472_v31 }
  0x9a   :  { %5373 = vmatpush3.msra.mxu0 %v6793_v61 }
  0x9b   :  { %5374 = vmatprep.subr.mxu0 %v6472_v31 }
  0x9c   :  { %5375 = vmatpush3.msra.mxu0 %v6807_v63 }
  0x9d   :  { %5376 = vmatprep.subr.mxu0 %v6472_v31 }
  0x9e   :  { %5377 = vmatpush3.msra.mxu0 %v6821_v1 }
  0x9f   :  { %5378 = vmatprep.subr.mxu0 %v6472_v31 }
  0xa0   :  { %5379 = vmatpush3.msra.mxu0 %v6835_v3 }
  0xa1   :  { %5380 = vmatprep.subr.mxu0 %v6472_v31 }
  0xa2   :  { %5381 = vmatpush3.msra.mxu0 %v6849_v5 }
  0xa3   :  { %5420 = vmatprep.subr.mxu0 %v6472_v31 }
 0x143   :  { %v5314_v24 = vpop.f32.mrf.mxu0 }
 0x144   :  { %v158_v28 = vadd.f32 %v5314_v24, %v156_v25 }
 0x145   :  { %v147_v26 = vpop.f32.mrf.mxu0 }
 0x146   :  { %v157_v27 = vadd.f32 %v156_v25, %v147_v26  ;;  %v6885_v25 = vld [vmem:[%s9067_s6 + $0x170] sm:$0xff] }
 0x147   :  { %v6890_v26 = vld [vmem:[%s9067_s6 + $0x1f0] sm:$0xff] }
 0x148   :  { %161 = vadd.xlane.f32.xlu1 %v157_v27 }
 0x14c   :  { %163 = vadd.xlane.f32.xlu1 %v158_v28 }
 0x1d1   :  { %v162_v38 = vpop.xlane.xlu1 %161 }
 0x1d2   :  { %v166_v39 = vmul.f32 0.0078125, %v162_v38  ;;  %v6906_v38 = vld [vmem:[%s9067_s6 + $0x1e8] sm:$0xff] }
 0x1d4   :  { %v6679_v40 = vsub.f32 %v157_v27, %v166_v39  ;;  %v6916_v39 = vld [vmem:[%s9067_s6 + $0x160] sm:$0xff] }
 0x1d5   :  { %v164_v41 = vpop.xlane.xlu1 %163 }
 0x1d6   :  { %v167_v42 = vmul.f32 0.0078125, %v164_v41  ;;  %v170_v43 = vmul.f32 %v6679_v40, %v6679_v40  ;;  %v6930_v41 = vld [vmem:[%s9067_s6 + $0x158] sm:$0xff] }
 0x1d8   :  { %v6683_v44 = vsub.f32 %v158_v28, %v167_v42  ;;  %172 = vadd.xlane.f32.xlu0 %v170_v43  ;;  %v6901_v28 = vld [vmem:[%s9067_s6 + $0x168] sm:$0xff]  ;;  %v6935_v42 = vld [vmem:[%s9067_s6 + $0x1d8] sm:$0xff]  ;;  %v6944_v43 = vld [vmem:[%s9067_s6 + $0x150] sm:$0xff] }
 0x1da   :  { %v171_v45 = vmul.f32 %v6683_v44, %v6683_v44 }
 0x1dc   :  { %174 = vadd.xlane.f32.xlu1 %v171_v45  ;;  %v6958_v45 = vld [vmem:[%s9067_s6 + $0x148] sm:$0xff] }
 0x261   :  { %v173_v6 = vpop.xlane.xlu0 %172 }
 0x262   :  { %v176_v7 = vmul.f32 0.0078125, %v173_v6  ;;  %v6963_v6 = vld [vmem:[%s9067_s6 + $0x1c8] sm:$0xff] }
 0x264   :  { %v178_v8 = vadd.f32 1e-12, %v176_v7  ;;  %v6972_v7 = vld [vmem:[%s9067_s6 + $0x140] sm:$0xff] }
 0x265   :  { %v175_v9 = vpop.xlane.xlu1 %174 }
 0x266   :  { %6348 = vrsqrt.f32 %v178_v8  ;;  %v177_v10 = vmul.f32 0.0078125, %v175_v9  ;;  %v6977_v8 = vld [vmem:[%s9067_s6 + $0x1c0] sm:$0xff]  ;;  %v6986_v9 = vld [vmem:[%s9067_s6 + $0x138] sm:$0xff] }
 0x268   :  { %v179_v11 = vadd.f32 1e-12, %v177_v10  ;;  %v6991_v10 = vld [vmem:[%s9067_s6 + $0x1b8] sm:$0xff] }
 0x26a   :  { %6350 = vrsqrt.f32 %v179_v11  ;;  %v7000_v11 = vld [vmem:[%s9067_s6 + $0x130] sm:$0xff] }
 0x273   :  { %v6349_v12 = vpop.eup %6348 }
 0x274   :  { %v182_v14 = vmul.f32 %v6349_v12, %v6679_v40  ;;  %v6921_v40 = vld [vmem:[%s9067_s6 + $0x1e0] sm:$0xff]  ;;  %v7005_v12 = vld [vmem:[%s9067_s6 + $0x1b0] sm:$0xff] }
 0x276   :  { %v188_v16 = vmul.f32 %v4681_v13, %v182_v14  ;;  %v7019_v14 = vld [vmem:[%s9067_s6 + $0x1a8] sm:$0xff] }
 0x277   :  { %v6351_v17 = vpop.eup %6350 }
 0x278   :  { %v6866_v18 = vadd.f32 %v4682_v15, %v188_v16  ;;  %v183_v21 = vmul.f32 %v6351_v17, %v6683_v44  ;;  %v6949_v44 = vld [vmem:[%s9067_s6 + $0x1d0] sm:$0xff]  ;;  %v7033_v16 = vld [vmem:[%s9067_s6 + $0x1a0] sm:$0xff]  ;;  %v7042_v17 = vld [vmem:[%s9067_s6 + $0x118] sm:$0xff] }
 0x279   :  { %9090 = vst [vmem:[#allocation10_spill] sm:$0xff] %v7033_v16  ;;  %9091 = vst [vmem:[#allocation11_spill] sm:$0xff] %v7042_v17 }
 0x27a   :  { %196 = vst [vmem:[#allocation6] sm:$0xff] %v6866_v18  ;;  %v189_v24 = vmul.f32 %v4681_v13, %v183_v21  ;;  %5348 = vmatmul.mubr.f32.vlgmr.msra.gmra.mxu1 %v6866_v18  ;;  %5383 = vmatmul.mubr.f32.vlgmr.msra.gmra.mxu0 %v6866_v18  ;;  %v7014_v13 = vld [vmem:[%s9067_s6 + $0x128] sm:$0xff]  ;;  %v7047_v21 = vld [vmem:[%s9067_s6 + $0x198] sm:$0xff] }
 0x27b   :  { %5386 = vmatpush3.msra.mxu1 %v6872_v22  ;;  %5421 = vmatpush3.msra.mxu0 %v6877_v23  ;;  %9092 = vst [vmem:[#allocation12_spill] sm:$0xff] %v7047_v21 }
 0x27c   :  { %v6894_v27 = vadd.f32 %v4682_v15, %v189_v24  ;;  %5387 = vmatprep.subr.mxu1 %v6472_v31  ;;  %5422 = vmatprep.subr.mxu0 %v6472_v31  ;;  %v7028_v15 = vld [vmem:[%s9067_s6 + $0x120] sm:$0xff]  ;;  %v7056_v24 = vld [vmem:[%s9067_s6 + $0x110] sm:$0xff] }
 0x27d   :  { %5388 = vmatpush3.msra.mxu1 %v6885_v25  ;;  %5423 = vmatpush3.msra.mxu0 %v6890_v26 }
 0x27e   :  { %197 = vst [vmem:[#allocation6 + $0x8] sm:$0xff] %v6894_v27  ;;  %5389 = vmatprep.subr.mxu1 %v6472_v31  ;;  %5424 = vmatprep.subr.mxu0 %v6472_v31 }
 0x27f   :  { %5390 = vmatpush3.msra.mxu1 %v6901_v28  ;;  %5425 = vmatpush3.msra.mxu0 %v6906_v38 }
 0x280   :  { %5391 = vmatprep.subr.mxu1 %v6472_v31  ;;  %5426 = vmatprep.subr.mxu0 %v6472_v31 }
 0x281   :  { %5392 = vmatpush3.msra.mxu1 %v6916_v39  ;;  %5427 = vmatpush3.msra.mxu0 %v6921_v40 }
 0x282   :  { %5393 = vmatprep.subr.mxu1 %v6472_v31  ;;  %5428 = vmatprep.subr.mxu0 %v6472_v31 }
 0x283   :  { %5394 = vmatpush3.msra.mxu1 %v6930_v41  ;;  %5429 = vmatpush3.msra.mxu0 %v6935_v42 }
 0x284   :  { %5395 = vmatprep.subr.mxu1 %v6472_v31  ;;  %5430 = vmatprep.subr.mxu0 %v6472_v31 }
 0x285   :  { %5396 = vmatpush3.msra.mxu1 %v6944_v43  ;;  %5431 = vmatpush3.msra.mxu0 %v6949_v44 }
 0x286   :  { %5397 = vmatprep.subr.mxu1 %v6472_v31  ;;  %5432 = vmatprep.subr.mxu0 %v6472_v31 }
 0x287   :  { %5398 = vmatpush3.msra.mxu1 %v6958_v45  ;;  %5433 = vmatpush3.msra.mxu0 %v6963_v6 }
 0x288   :  { %5399 = vmatprep.subr.mxu1 %v6472_v31  ;;  %5434 = vmatprep.subr.mxu0 %v6472_v31 }
 0x289   :  { %5400 = vmatpush3.msra.mxu1 %v6972_v7  ;;  %5435 = vmatpush3.msra.mxu0 %v6977_v8 }
 0x28a   :  { %5401 = vmatprep.subr.mxu1 %v6472_v31  ;;  %5436 = vmatprep.subr.mxu0 %v6472_v31 }
 0x28b   :  { %5402 = vmatpush3.msra.mxu1 %v6986_v9  ;;  %5437 = vmatpush3.msra.mxu0 %v6991_v10 }
 0x28c   :  { %5403 = vmatprep.subr.mxu1 %v6472_v31  ;;  %5438 = vmatprep.subr.mxu0 %v6472_v31 }
 0x28d   :  { %5404 = vmatpush3.msra.mxu1 %v7000_v11  ;;  %5439 = vmatpush3.msra.mxu0 %v7005_v12 }
 0x28e   :  { %5405 = vmatprep.subr.mxu1 %v6472_v31  ;;  %5440 = vmatprep.subr.mxu0 %v6472_v31 }
 0x28f   :  { %5406 = vmatpush3.msra.mxu1 %v7014_v13  ;;  %5441 = vmatpush3.msra.mxu0 %v7019_v14 }
 0x290   :  { %5407 = vmatprep.subr.mxu1 %v6472_v31  ;;  %5442 = vmatprep.subr.mxu0 %v6472_v31 }
 0x291   :  { %5408 = vmatpush3.msra.mxu1 %v7028_v15  ;;  %5443 = vmatpush3.msra.mxu0 %v7033_v16  ;;  %v7075_v16 = vld [vmem:[%s9067_s6 + $0x188] sm:$0xff] }
 0x292   :  { %5409 = vmatprep.subr.mxu1 %v6472_v31  ;;  %5444 = vmatprep.subr.mxu0 %v6472_v31 }
 0x293   :  { %5410 = vmatpush3.msra.mxu1 %v7042_v17  ;;  %5445 = vmatpush3.msra.mxu0 %v7047_v21  ;;  %v7084_v21 = vld [vmem:[%s9067_s6 + $0x100] sm:$0xff] }
 0x294   :  { %5411 = vmatprep.subr.mxu1 %v6472_v31  ;;  %5446 = vmatprep.subr.mxu0 %v6472_v31  ;;  %v7091_v17 = vld [vmem:[%s9067_s6 + $0x180] sm:$0xff] }
 0x295   :  { %5412 = vmatpush3.msra.mxu1 %v7056_v24  ;;  %5447 = vmatpush3.msra.mxu0 %v7061_v19 }
 0x296   :  { %5413 = vmatprep.subr.mxu1 %v6472_v31  ;;  %5448 = vmatprep.subr.mxu0 %v6472_v31 }
 0x297   :  { %5414 = vmatpush3.msra.mxu1 %v7070_v20  ;;  %5449 = vmatpush3.msra.mxu0 %v7075_v16 }
 0x298   :  { %5415 = vmatprep.subr.mxu1 %v6472_v31  ;;  %5450 = vmatprep.subr.mxu0 %v6472_v31 }
 0x299   :  { %5416 = vmatpush3.msra.mxu1 %v7084_v21  ;;  %5417 = vmatprep.mubr.msk.f32.mxu1 %vm6473_vm2, %v6472_v31 }
 0x29a   :  { %5451 = vmatpush3.msra.mxu0 %v7091_v17  ;;  %5452 = vmatprep.mubr.msk.f32.mxu0 %vm6473_vm2, %v6472_v31 }
 0x29b   :  { %5418 = vmatmul.mubr.f32.vlgmr.msra.gmra.mxu1 %v6866_v18  ;;  %5453 = vmatmul.mubr.f32.vlgmr.msra.gmra.mxu0 %v6866_v18 }
 0x29c   :  { %5455 = vmatprep.subr.mxu1 %v6472_v31  ;;  %5490 = vmatprep.subr.mxu0 %v6472_v31 }
 0x29d   :  { %5456 = vmatpush3.msra.mxu1 %v6624_v29  ;;  %5491 = vmatpush3.msra.mxu0 %v6629_v30  ;;  %v9093_v29 = vld [vmem:[#allocation10_spill] sm:$0xff]  ;;  %v9094_v30 = vld [vmem:[#allocation11_spill] sm:$0xff] }
 0x29e   :  { %5457 = vmatprep.subr.mxu1 %v6472_v31  ;;  %5492 = vmatprep.subr.mxu0 %v6472_v31 }
 0x29f   :  { %5458 = vmatpush3.msra.mxu1 %v6636_v32  ;;  %5493 = vmatpush3.msra.mxu0 %v6641_v33  ;;  %v9095_v32 = vld [vmem:[#allocation12_spill] sm:$0xff]  ;;  %v7258_v33 = vld [vmem:[%s9067_s6 + $0x270] sm:$0xff] }
 0x2a0   :  { %5459 = vmatprep.subr.mxu1 %v6472_v31  ;;  %5494 = vmatprep.subr.mxu0 %v6472_v31 }
 0x2a1   :  { %5460 = vmatpush3.msra.mxu1 %v6650_v34  ;;  %5495 = vmatpush3.msra.mxu0 %v6655_v35  ;;  %v7263_v34 = vld [vmem:[%s9067_s6 + $0x2f0] sm:$0xff]  ;;  %v7272_v35 = vld [vmem:[%s9067_s6 + $0x268] sm:$0xff] }
 0x2a2   :  { %5461 = vmatprep.subr.mxu1 %v6472_v31  ;;  %5496 = vmatprep.subr.mxu0 %v6472_v31 }
 0x2a3   :  { %5462 = vmatpush3.msra.mxu1 %v6664_v36  ;;  %5497 = vmatpush3.msra.mxu0 %v6669_v37  ;;  %v7277_v36 = vld [vmem:[%s9067_s6 + $0x2e8] sm:$0xff]  ;;  %v7286_v37 = vld [vmem:[%s9067_s6 + $0x260] sm:$0xff] }
 0x2a4   :  { %5463 = vmatprep.subr.mxu1 %v6472_v31  ;;  %5498 = vmatprep.subr.mxu0 %v6472_v31 }
 0x2a5   :  { %5464 = vmatpush3.msra.mxu1 %v6690_v46  ;;  %5499 = vmatpush3.msra.mxu0 %v6695_v47  ;;  %v7291_v46 = vld [vmem:[%s9067_s6 + $0x2e0] sm:$0xff]  ;;  %v7300_v47 = vld [vmem:[%s9067_s6 + $0x258] sm:$0xff] }
 0x2a6   :  { %5465 = vmatprep.subr.mxu1 %v6472_v31  ;;  %5500 = vmatprep.subr.mxu0 %v6472_v31 }
 0x2a7   :  { %5466 = vmatpush3.msra.mxu1 %v6704_v48  ;;  %5501 = vmatpush3.msra.mxu0 %v6709_v49  ;;  %v7305_v48 = vld [vmem:[%s9067_s6 + $0x2d8] sm:$0xff]  ;;  %v7314_v49 = vld [vmem:[%s9067_s6 + $0x250] sm:$0xff] }
 0x2a8   :  { %5467 = vmatprep.subr.mxu1 %v6472_v31  ;;  %5502 = vmatprep.subr.mxu0 %v6472_v31 }
 0x2a9   :  { %5468 = vmatpush3.msra.mxu1 %v6718_v50  ;;  %5503 = vmatpush3.msra.mxu0 %v6723_v51  ;;  %v7319_v50 = vld [vmem:[%s9067_s6 + $0x2d0] sm:$0xff]  ;;  %v7328_v51 = vld [vmem:[%s9067_s6 + $0x248] sm:$0xff] }
 0x2aa   :  { %5469 = vmatprep.subr.mxu1 %v6472_v31  ;;  %5504 = vmatprep.subr.mxu0 %v6472_v31 }
 0x2ab   :  { %5470 = vmatpush3.msra.mxu1 %v6732_v52  ;;  %5505 = vmatpush3.msra.mxu0 %v6737_v53  ;;  %v7333_v52 = vld [vmem:[%s9067_s6 + $0x2c8] sm:$0xff]  ;;  %v7342_v53 = vld [vmem:[%s9067_s6 + $0x240] sm:$0xff] }
 0x2ac   :  { %5471 = vmatprep.subr.mxu1 %v6472_v31  ;;  %5506 = vmatprep.subr.mxu0 %v6472_v31 }
 0x2ad   :  { %5472 = vmatpush3.msra.mxu1 %v6746_v54  ;;  %5507 = vmatpush3.msra.mxu0 %v6751_v55  ;;  %v7347_v54 = vld [vmem:[%s9067_s6 + $0x2c0] sm:$0xff]  ;;  %v7356_v55 = vld [vmem:[%s9067_s6 + $0x238] sm:$0xff] }
 0x2ae   :  { %5473 = vmatprep.subr.mxu1 %v6472_v31  ;;  %5508 = vmatprep.subr.mxu0 %v6472_v31 }
 0x2af   :  { %5474 = vmatpush3.msra.mxu1 %v6760_v56  ;;  %5509 = vmatpush3.msra.mxu0 %v6765_v57  ;;  %v7361_v56 = vld [vmem:[%s9067_s6 + $0x2b8] sm:$0xff]  ;;  %v7370_v57 = vld [vmem:[%s9067_s6 + $0x230] sm:$0xff] }
 0x2b0   :  { %5475 = vmatprep.subr.mxu1 %v6472_v31  ;;  %5510 = vmatprep.subr.mxu0 %v6472_v31 }
 0x2b1   :  { %5476 = vmatpush3.msra.mxu1 %v6774_v58  ;;  %5511 = vmatpush3.msra.mxu0 %v6779_v59  ;;  %v7375_v58 = vld [vmem:[%s9067_s6 + $0x2b0] sm:$0xff]  ;;  %v7384_v59 = vld [vmem:[%s9067_s6 + $0x228] sm:$0xff] }
 0x2b2   :  { %5477 = vmatprep.subr.mxu1 %v6472_v31  ;;  %5512 = vmatprep.subr.mxu0 %v6472_v31 }
 0x2b3   :  { %5478 = vmatpush3.msra.mxu1 %v6788_v60  ;;  %5513 = vmatpush3.msra.mxu0 %v6793_v61  ;;  %v7389_v60 = vld [vmem:[%s9067_s6 + $0x2a8] sm:$0xff]  ;;  %v7398_v61 = vld [vmem:[%s9067_s6 + $0x220] sm:$0xff] }
 0x2b4   :  { %5479 = vmatprep.subr.mxu1 %v6472_v31  ;;  %5514 = vmatprep.subr.mxu0 %v6472_v31 }
 0x2b5   :  { %5480 = vmatpush3.msra.mxu1 %v6802_v62  ;;  %5515 = vmatpush3.msra.mxu0 %v6807_v63  ;;  %v7403_v62 = vld [vmem:[%s9067_s6 + $0x2a0] sm:$0xff]  ;;  %v7412_v63 = vld [vmem:[%s9067_s6 + $0x218] sm:$0xff] }
 0x2b6   :  { %5481 = vmatprep.subr.mxu1 %v6472_v31  ;;  %5516 = vmatprep.subr.mxu0 %v6472_v31 }
 0x2b7   :  { %5482 = vmatpush3.msra.mxu1 %v6816_v0  ;;  %5517 = vmatpush3.msra.mxu0 %v6821_v1  ;;  %v7417_v0 = vld [vmem:[%s9067_s6 + $0x298] sm:$0xff]  ;;  %v7426_v1 = vld [vmem:[%s9067_s6 + $0x210] sm:$0xff] }
 0x2b8   :  { %5483 = vmatprep.subr.mxu1 %v6472_v31  ;;  %5518 = vmatprep.subr.mxu0 %v6472_v31 }
 0x2b9   :  { %5484 = vmatpush3.msra.mxu1 %v6830_v2  ;;  %5519 = vmatpush3.msra.mxu0 %v6835_v3  ;;  %v7431_v2 = vld [vmem:[%s9067_s6 + $0x290] sm:$0xff]  ;;  %v7440_v3 = vld [vmem:[%s9067_s6 + $0x208] sm:$0xff] }
 0x2ba   :  { %5485 = vmatprep.subr.mxu1 %v6472_v31  ;;  %5520 = vmatprep.subr.mxu0 %v6472_v31 }
 0x2bb   :  { %5486 = vmatpush3.msra.mxu1 %v6844_v4  ;;  %5487 = vmatprep.mubr.msk.f32.mxu1 %vm6473_vm2, %v6472_v31  ;;  %v7445_v4 = vld [vmem:[%s9067_s6 + $0x288] sm:$0xff] }
 0x2bc   :  { %5521 = vmatpush3.msra.mxu0 %v6849_v5  ;;  %5522 = vmatprep.mubr.msk.f32.mxu0 %vm6473_vm2, %v6472_v31  ;;  %v7454_v5 = vld [vmem:[%s9067_s6 + $0x200] sm:$0xff] }
 0x2bd   :  { %5488 = vmatmul.mubr.f32.vlgmr.msra.gmra.mxu1 %v6894_v27  ;;  %5523 = vmatmul.mubr.f32.vlgmr.msra.gmra.mxu0 %v6894_v27 }
 0x2be   :  { %5525 = vmatprep.subr.mxu1 %v6472_v31  ;;  %5560 = vmatprep.subr.mxu0 %v6472_v31 }
 0x2bf   :  { %5526 = vmatpush3.msra.mxu1 %v6872_v22  ;;  %5561 = vmatpush3.msra.mxu0 %v6877_v23  ;;  %v7461_v22 = vld [vmem:[%s9067_s6 + $0x280] sm:$0xff]  ;;  %v7474_v23 = vld [vmem:[%s9067_s6 + $0x378] sm:$0xff] }
 0x2c0   :  { %5527 = vmatprep.subr.mxu1 %v6472_v31  ;;  %5562 = vmatprep.subr.mxu0 %v6472_v31 }
 0x2c1   :  { %5528 = vmatpush3.msra.mxu1 %v6885_v25  ;;  %5563 = vmatpush3.msra.mxu0 %v6890_v26  ;;  %v7479_v25 = vld [vmem:[%s9067_s6 + $0x3f8] sm:$0xff]  ;;  %v7488_v26 = vld [vmem:[%s9067_s6 + $0x370] sm:$0xff] }
 0x2c2   :  { %5529 = vmatprep.subr.mxu1 %v6472_v31  ;;  %5564 = vmatprep.subr.mxu0 %v6472_v31 }
 0x2c3   :  { %5530 = vmatpush3.msra.mxu1 %v6901_v28  ;;  %5565 = vmatpush3.msra.mxu0 %v6906_v38  ;;  %v7493_v28 = vld [vmem:[%s9067_s6 + $0x3f0] sm:$0xff]  ;;  %v7502_v38 = vld [vmem:[%s9067_s6 + $0x368] sm:$0xff] }
 0x2c4   :  { %5531 = vmatprep.subr.mxu1 %v6472_v31  ;;  %5566 = vmatprep.subr.mxu0 %v6472_v31 }
 0x2c5   :  { %5532 = vmatpush3.msra.mxu1 %v6916_v39  ;;  %5567 = vmatpush3.msra.mxu0 %v6921_v40  ;;  %v7507_v39 = vld [vmem:[%s9067_s6 + $0x3e8] sm:$0xff]  ;;  %v7516_v40 = vld [vmem:[%s9067_s6 + $0x360] sm:$0xff] }
 0x2c6   :  { %5533 = vmatprep.subr.mxu1 %v6472_v31  ;;  %5568 = vmatprep.subr.mxu0 %v6472_v31 }
 0x2c7   :  { %5534 = vmatpush3.msra.mxu1 %v6930_v41  ;;  %5569 = vmatpush3.msra.mxu0 %v6935_v42  ;;  %v7521_v41 = vld [vmem:[%s9067_s6 + $0x3e0] sm:$0xff]  ;;  %v7530_v42 = vld [vmem:[%s9067_s6 + $0x358] sm:$0xff] }
 0x2c8   :  { %5535 = vmatprep.subr.mxu1 %v6472_v31  ;;  %5570 = vmatprep.subr.mxu0 %v6472_v31 }
 0x2c9   :  { %5536 = vmatpush3.msra.mxu1 %v6944_v43  ;;  %5571 = vmatpush3.msra.mxu0 %v6949_v44  ;;  %v7535_v43 = vld [vmem:[%s9067_s6 + $0x3d8] sm:$0xff]  ;;  %v7544_v44 = vld [vmem:[%s9067_s6 + $0x350] sm:$0xff] }
 0x2ca   :  { %5537 = vmatprep.subr.mxu1 %v6472_v31  ;;  %5572 = vmatprep.subr.mxu0 %v6472_v31 }
 0x2cb   :  { %5538 = vmatpush3.msra.mxu1 %v6958_v45  ;;  %5573 = vmatpush3.msra.mxu0 %v6963_v6  ;;  %v7549_v45 = vld [vmem:[%s9067_s6 + $0x3d0] sm:$0xff]  ;;  %v7558_v6 = vld [vmem:[%s9067_s6 + $0x348] sm:$0xff] }
 0x2cc   :  { %5539 = vmatprep.subr.mxu1 %v6472_v31  ;;  %5574 = vmatprep.subr.mxu0 %v6472_v31 }
 0x2cd   :  { %5540 = vmatpush3.msra.mxu1 %v6972_v7  ;;  %5575 = vmatpush3.msra.mxu0 %v6977_v8  ;;  %v7563_v7 = vld [vmem:[%s9067_s6 + $0x3c8] sm:$0xff]  ;;  %v7572_v8 = vld [vmem:[%s9067_s6 + $0x340] sm:$0xff] }
 0x2ce   :  { %5541 = vmatprep.subr.mxu1 %v6472_v31  ;;  %5576 = vmatprep.subr.mxu0 %v6472_v31 }
 0x2cf   :  { %5542 = vmatpush3.msra.mxu1 %v6986_v9  ;;  %5577 = vmatpush3.msra.mxu0 %v6991_v10  ;;  %v7577_v9 = vld [vmem:[%s9067_s6 + $0x3c0] sm:$0xff]  ;;  %v7586_v10 = vld [vmem:[%s9067_s6 + $0x338] sm:$0xff] }
 0x2d0   :  { %5543 = vmatprep.subr.mxu1 %v6472_v31  ;;  %5578 = vmatprep.subr.mxu0 %v6472_v31 }
 0x2d1   :  { %5544 = vmatpush3.msra.mxu1 %v7000_v11  ;;  %5579 = vmatpush3.msra.mxu0 %v7005_v12  ;;  %v7591_v11 = vld [vmem:[%s9067_s6 + $0x3b8] sm:$0xff]  ;;  %v7600_v12 = vld [vmem:[%s9067_s6 + $0x330] sm:$0xff] }
 0x2d2   :  { %5545 = vmatprep.subr.mxu1 %v6472_v31  ;;  %5580 = vmatprep.subr.mxu0 %v6472_v31 }
 0x2d3   :  { %5546 = vmatpush3.msra.mxu1 %v7014_v13  ;;  %5581 = vmatpush3.msra.mxu0 %v7019_v14  ;;  %v7605_v13 = vld [vmem:[%s9067_s6 + $0x3b0] sm:$0xff]  ;;  %v7614_v14 = vld [vmem:[%s9067_s6 + $0x328] sm:$0xff] }
 0x2d4   :  { %5547 = vmatprep.subr.mxu1 %v6472_v31  ;;  %5582 = vmatprep.subr.mxu0 %v6472_v31 }
 0x2d5   :  { %5548 = vmatpush3.msra.mxu1 %v7028_v15  ;;  %5583 = vmatpush3.msra.mxu0 %v9093_v29  ;;  %v7619_v15 = vld [vmem:[%s9067_s6 + $0x3a8] sm:$0xff]  ;;  %v7656_v29 = vld [vmem:[%s9067_s6 + $0x310] sm:$0xff] }
 0x2d6   :  { %5549 = vmatprep.subr.mxu1 %v6472_v31  ;;  %5584 = vmatprep.subr.mxu0 %v6472_v31 }
 0x2d7   :  { %5550 = vmatpush3.msra.mxu1 %v9094_v30  ;;  %5585 = vmatpush3.msra.mxu0 %v9095_v32  ;;  %v7661_v30 = vld [vmem:[%s9067_s6 + $0x390] sm:$0xff]  ;;  %v7670_v32 = vld [vmem:[%s9067_s6 + $0x308] sm:$0xff] }
 0x2d8   :  { %5551 = vmatprep.subr.mxu1 %v6472_v31  ;;  %5586 = vmatprep.subr.mxu0 %v6472_v31 }
 0x2d9   :  { %5552 = vmatpush3.msra.mxu1 %v7056_v24  ;;  %5587 = vmatpush3.msra.mxu0 %v7061_v19  ;;  %v7244_v19 = vld [vmem:[%s9067_s6 + $0x278] sm:$0xff] }
 0x2da   :  { %5553 = vmatprep.subr.mxu1 %v6472_v31  ;;  %5588 = vmatprep.subr.mxu0 %v6472_v31  ;;  %v7647_v24 = vld [vmem:[%s9067_s6 + $0x398] sm:$0xff] }
 0x2db   :  { %5554 = vmatpush3.msra.mxu1 %v7070_v20  ;;  %5589 = vmatpush3.msra.mxu0 %v7075_v16  ;;  %v7249_v20 = vld [vmem:[%s9067_s6 + $0x2f8] sm:$0xff]  ;;  %v7628_v16 = vld [vmem:[%s9067_s6 + $0x320] sm:$0xff]  ;;  %9098 = vst [vmem:[#allocation12_spill] sm:$0xff] %v7647_v24 }
 0x2dc   :  { %5555 = vmatprep.subr.mxu1 %v6472_v31  ;;  %5590 = vmatprep.subr.mxu0 %v6472_v31 }
 0x2dd   :  { %5556 = vmatpush3.msra.mxu1 %v7084_v21  ;;  %5557 = vmatprep.mubr.msk.f32.mxu1 %vm6473_vm2, %v6472_v31  ;;  %v7642_v21 = vld [vmem:[%s9067_s6 + $0x318] sm:$0xff] }
 0x2de   :  { %5591 = vmatpush3.msra.mxu0 %v7091_v17  ;;  %5592 = vmatprep.mubr.msk.f32.mxu0 %vm6473_vm2, %v6472_v31  ;;  %v7633_v17 = vld [vmem:[%s9067_s6 + $0x3a0] sm:$0xff]  ;;  %9097 = vst [vmem:[#allocation11_spill] sm:$0xff] %v7642_v21 }
 0x2df   :  { %5558 = vmatmul.mubr.f32.vlgmr.msra.gmra.mxu1 %v6894_v27  ;;  %5593 = vmatmul.mubr.f32.vlgmr.msra.gmra.mxu0 %v6894_v27  ;;  %9096 = vst [vmem:[#allocation10_spill] sm:$0xff] %v7633_v17 }
 0x2e0   :  { %5595 = vmatprep.subr.mxu1 %v6472_v31  ;;  %5630 = vmatprep.subr.mxu0 %v6472_v31 }
 0x2e1   :  { %5596 = vmatpush3.msra.mxu1 %v7244_v19  ;;  %5631 = vmatpush3.msra.mxu0 %v7249_v20 }
 0x2e2   :  { %5597 = vmatprep.subr.mxu1 %v6472_v31  ;;  %5632 = vmatprep.subr.mxu0 %v6472_v31 }
 0x2e3   :  { %5598 = vmatpush3.msra.mxu1 %v7258_v33  ;;  %5633 = vmatpush3.msra.mxu0 %v7263_v34 }
 0x2e4   :  { %5599 = vmatprep.subr.mxu1 %v6472_v31  ;;  %5634 = vmatprep.subr.mxu0 %v6472_v31 }
 0x2e5   :  { %5600 = vmatpush3.msra.mxu1 %v7272_v35  ;;  %5635 = vmatpush3.msra.mxu0 %v7277_v36 }
 0x2e6   :  { %5601 = vmatprep.subr.mxu1 %v6472_v31  ;;  %5636 = vmatprep.subr.mxu0 %v6472_v31 }
 0x2e7   :  { %5602 = vmatpush3.msra.mxu1 %v7286_v37  ;;  %5637 = vmatpush3.msra.mxu0 %v7291_v46 }
 0x2e8   :  { %5603 = vmatprep.subr.mxu1 %v6472_v31  ;;  %5638 = vmatprep.subr.mxu0 %v6472_v31 }
 0x2e9   :  { %5604 = vmatpush3.msra.mxu1 %v7300_v47  ;;  %5639 = vmatpush3.msra.mxu0 %v7305_v48 }
 0x2ea   :  { %5605 = vmatprep.subr.mxu1 %v6472_v31  ;;  %5640 = vmatprep.subr.mxu0 %v6472_v31 }
 0x2eb   :  { %5606 = vmatpush3.msra.mxu1 %v7314_v49  ;;  %5641 = vmatpush3.msra.mxu0 %v7319_v50 }
 0x2ec   :  { %5607 = vmatprep.subr.mxu1 %v6472_v31  ;;  %5642 = vmatprep.subr.mxu0 %v6472_v31 }
 0x2ed   :  { %5608 = vmatpush3.msra.mxu1 %v7328_v51  ;;  %5643 = vmatpush3.msra.mxu0 %v7333_v52 }
 0x2ee   :  { %5609 = vmatprep.subr.mxu1 %v6472_v31  ;;  %5644 = vmatprep.subr.mxu0 %v6472_v31 }
 0x2ef   :  { %5610 = vmatpush3.msra.mxu1 %v7342_v53  ;;  %5645 = vmatpush3.msra.mxu0 %v7347_v54 }
 0x2f0   :  { %5611 = vmatprep.subr.mxu1 %v6472_v31  ;;  %5646 = vmatprep.subr.mxu0 %v6472_v31 }
 0x2f1   :  { %5612 = vmatpush3.msra.mxu1 %v7356_v55  ;;  %5647 = vmatpush3.msra.mxu0 %v7361_v56 }
 0x2f2   :  { %5613 = vmatprep.subr.mxu1 %v6472_v31  ;;  %5648 = vmatprep.subr.mxu0 %v6472_v31 }
 0x2f3   :  { %5614 = vmatpush3.msra.mxu1 %v7370_v57  ;;  %5649 = vmatpush3.msra.mxu0 %v7375_v58 }
 0x2f4   :  { %5615 = vmatprep.subr.mxu1 %v6472_v31  ;;  %5650 = vmatprep.subr.mxu0 %v6472_v31 }
 0x2f5   :  { %5616 = vmatpush3.msra.mxu1 %v7384_v59  ;;  %5651 = vmatpush3.msra.mxu0 %v7389_v60 }
 0x2f6   :  { %5617 = vmatprep.subr.mxu1 %v6472_v31  ;;  %5652 = vmatprep.subr.mxu0 %v6472_v31 }
 0x2f7   :  { %5618 = vmatpush3.msra.mxu1 %v7398_v61  ;;  %5653 = vmatpush3.msra.mxu0 %v7403_v62 }
 0x2f8   :  { %5619 = vmatprep.subr.mxu1 %v6472_v31  ;;  %5654 = vmatprep.subr.mxu0 %v6472_v31 }
 0x2f9   :  { %5620 = vmatpush3.msra.mxu1 %v7412_v63  ;;  %5655 = vmatpush3.msra.mxu0 %v7417_v0 }
 0x2fa   :  { %5621 = vmatprep.subr.mxu1 %v6472_v31  ;;  %5656 = vmatprep.subr.mxu0 %v6472_v31 }
 0x2fb   :  { %5622 = vmatpush3.msra.mxu1 %v7426_v1  ;;  %5657 = vmatpush3.msra.mxu0 %v7431_v2 }
 0x2fc   :  { %5623 = vmatprep.subr.mxu1 %v6472_v31  ;;  %5658 = vmatprep.subr.mxu0 %v6472_v31 }
 0x2fd   :  { %5624 = vmatpush3.msra.mxu1 %v7440_v3  ;;  %5659 = vmatpush3.msra.mxu0 %v7445_v4 }
 0x2fe   :  { %5625 = vmatprep.subr.mxu1 %v6472_v31  ;;  %5660 = vmatprep.subr.mxu0 %v6472_v31 }
 0x2ff   :  { %5626 = vmatpush3.msra.mxu1 %v7454_v5  ;;  %5627 = vmatprep.mubr.msk.f32.mxu1 %vm6473_vm2, %v6472_v31 }
 0x300   :  { %5661 = vmatpush3.msra.mxu0 %v7461_v22  ;;  %5662 = vmatprep.mubr.msk.f32.mxu0 %vm6473_vm2, %v6472_v31 }
 0x301   :  { %5628 = vmatmul.mubr.f32.vlgmr.msra.gmra.mxu1 %v6866_v18  ;;  %5663 = vmatmul.mubr.f32.vlgmr.msra.gmra.mxu0 %v6866_v18 }
 0x302   :  { %5665 = vmatprep.subr.mxu1 %v6472_v31  ;;  %5700 = vmatprep.subr.mxu0 %v6472_v31 }
 0x303   :  { %5666 = vmatpush3.msra.mxu1 %v7474_v23  ;;  %5701 = vmatpush3.msra.mxu0 %v7479_v25 }
 0x304   :  { %5667 = vmatprep.subr.mxu1 %v6472_v31  ;;  %5702 = vmatprep.subr.mxu0 %v6472_v31 }
 0x305   :  { %5668 = vmatpush3.msra.mxu1 %v7488_v26  ;;  %5703 = vmatpush3.msra.mxu0 %v7493_v28 }
 0x306   :  { %5669 = vmatprep.subr.mxu1 %v6472_v31  ;;  %5704 = vmatprep.subr.mxu0 %v6472_v31 }
 0x307   :  { %5670 = vmatpush3.msra.mxu1 %v7502_v38  ;;  %5705 = vmatpush3.msra.mxu0 %v7507_v39 }
 0x308   :  { %5671 = vmatprep.subr.mxu1 %v6472_v31  ;;  %5706 = vmatprep.subr.mxu0 %v6472_v31 }
 0x309   :  { %5672 = vmatpush3.msra.mxu1 %v7516_v40  ;;  %5707 = vmatpush3.msra.mxu0 %v7521_v41 }
 0x30a   :  { %5673 = vmatprep.subr.mxu1 %v6472_v31  ;;  %5708 = vmatprep.subr.mxu0 %v6472_v31 }
 0x30b   :  { %5674 = vmatpush3.msra.mxu1 %v7530_v42  ;;  %5709 = vmatpush3.msra.mxu0 %v7535_v43 }
 0x30c   :  { %5675 = vmatprep.subr.mxu1 %v6472_v31  ;;  %5710 = vmatprep.subr.mxu0 %v6472_v31 }
 0x30d   :  { %5676 = vmatpush3.msra.mxu1 %v7544_v44  ;;  %5711 = vmatpush3.msra.mxu0 %v7549_v45 }
 0x30e   :  { %5677 = vmatprep.subr.mxu1 %v6472_v31  ;;  %5712 = vmatprep.subr.mxu0 %v6472_v31 }
 0x30f   :  { %5678 = vmatpush3.msra.mxu1 %v7558_v6  ;;  %5713 = vmatpush3.msra.mxu0 %v7563_v7 }
 0x310   :  { %5679 = vmatprep.subr.mxu1 %v6472_v31  ;;  %5714 = vmatprep.subr.mxu0 %v6472_v31 }
 0x311   :  { %5680 = vmatpush3.msra.mxu1 %v7572_v8  ;;  %5715 = vmatpush3.msra.mxu0 %v7577_v9 }
 0x312   :  { %5681 = vmatprep.subr.mxu1 %v6472_v31  ;;  %5716 = vmatprep.subr.mxu0 %v6472_v31 }
 0x313   :  { %5682 = vmatpush3.msra.mxu1 %v7586_v10  ;;  %5717 = vmatpush3.msra.mxu0 %v7591_v11 }
 0x314   :  { %5683 = vmatprep.subr.mxu1 %v6472_v31  ;;  %5718 = vmatprep.subr.mxu0 %v6472_v31 }
 0x315   :  { %5684 = vmatpush3.msra.mxu1 %v7600_v12  ;;  %5719 = vmatpush3.msra.mxu0 %v7605_v13 }
 0x316   :  { %5685 = vmatprep.subr.mxu1 %v6472_v31  ;;  %5720 = vmatprep.subr.mxu0 %v6472_v31 }
 0x317   :  { %5686 = vmatpush3.msra.mxu1 %v7614_v14  ;;  %5721 = vmatpush3.msra.mxu0 %v7619_v15 }
 0x318   :  { %5687 = vmatprep.subr.mxu1 %v6472_v31  ;;  %5722 = vmatprep.subr.mxu0 %v6472_v31 }
 0x319   :  { %5688 = vmatpush3.msra.mxu1 %v7628_v16  ;;  %5723 = vmatpush3.msra.mxu0 %v7633_v17  ;;  %v7675_v17 = vld [vmem:[%s9067_s6 + $0x388] sm:$0xff] }
 0x31a   :  { %5689 = vmatprep.subr.mxu1 %v6472_v31  ;;  %5724 = vmatprep.subr.mxu0 %v6472_v31 }
 0x31b   :  { %5690 = vmatpush3.msra.mxu1 %v7642_v21  ;;  %5725 = vmatpush3.msra.mxu0 %v7647_v24  ;;  %v7684_v24 = vld [vmem:[%s9067_s6 + $0x300] sm:$0xff] }
 0x31c   :  { %5691 = vmatprep.subr.mxu1 %v6472_v31  ;;  %5726 = vmatprep.subr.mxu0 %v6472_v31  ;;  %v7691_v21 = vld [vmem:[%s9067_s6 + $0x380] sm:$0xff] }
 0x31d   :  { %5692 = vmatpush3.msra.mxu1 %v7656_v29  ;;  %5727 = vmatpush3.msra.mxu0 %v7661_v30 }
 0x31e   :  { %5693 = vmatprep.subr.mxu1 %v6472_v31  ;;  %5728 = vmatprep.subr.mxu0 %v6472_v31 }
 0x31f   :  { %5694 = vmatpush3.msra.mxu1 %v7670_v32  ;;  %5729 = vmatpush3.msra.mxu0 %v7675_v17 }
 0x320   :  { %5695 = vmatprep.subr.mxu1 %v6472_v31  ;;  %5730 = vmatprep.subr.mxu0 %v6472_v31 }
 0x321   :  { %5696 = vmatpush3.msra.mxu1 %v7684_v24  ;;  %5697 = vmatprep.mubr.msk.f32.mxu1 %vm6473_vm2, %v6472_v31 }
 0x322   :  { %5731 = vmatpush3.msra.mxu0 %v7691_v21  ;;  %5732 = vmatprep.mubr.msk.f32.mxu0 %vm6473_vm2, %v6472_v31 }
 0x323   :  { %5698 = vmatmul.mubr.f32.vlgmr.msra.gmra.mxu1 %v6866_v18  ;;  %5733 = vmatmul.mubr.f32.vlgmr.msra.gmra.mxu0 %v6866_v18 }
 0x324   :  { %5735 = vmatprep.subr.mxu1 %v6472_v31  ;;  %5770 = vmatprep.subr.mxu0 %v6472_v31 }
 0x325   :  { %5736 = vmatpush3.msra.mxu1 %v7244_v19  ;;  %5771 = vmatpush3.msra.mxu0 %v7249_v20 }
 0x326   :  { %5737 = vmatprep.subr.mxu1 %v6472_v31  ;;  %5772 = vmatprep.subr.mxu0 %v6472_v31 }
 0x327   :  { %5738 = vmatpush3.msra.mxu1 %v7258_v33  ;;  %5773 = vmatpush3.msra.mxu0 %v7263_v34 }
 0x328   :  { %5739 = vmatprep.subr.mxu1 %v6472_v31  ;;  %5774 = vmatprep.subr.mxu0 %v6472_v31 }
 0x329   :  { %5740 = vmatpush3.msra.mxu1 %v7272_v35  ;;  %5775 = vmatpush3.msra.mxu0 %v7277_v36  ;;  %v9103_v35 = vld [vmem:[#allocation10_spill] sm:$0xff] }
 0x32a   :  { %5741 = vmatprep.subr.mxu1 %v6472_v31  ;;  %5776 = vmatprep.subr.mxu0 %v6472_v31 }
 0x32b   :  { %5742 = vmatpush3.msra.mxu1 %v7286_v37  ;;  %5777 = vmatpush3.msra.mxu0 %v7291_v46  ;;  %v9104_v46 = vld [vmem:[#allocation11_spill] sm:$0xff] }
 0x32c   :  { %5743 = vmatprep.subr.mxu1 %v6472_v31  ;;  %5778 = vmatprep.subr.mxu0 %v6472_v31 }
 0x32d   :  { %5744 = vmatpush3.msra.mxu1 %v7300_v47  ;;  %5779 = vmatpush3.msra.mxu0 %v7305_v48  ;;  %v9105_v47 = vld [vmem:[#allocation12_spill] sm:$0xff] }
 0x32e   :  { %5745 = vmatprep.subr.mxu1 %v6472_v31  ;;  %5780 = vmatprep.subr.mxu0 %v6472_v31  ;;  %v7852_v48 = vld [vmem:[%s9067_s6 + $0x478] sm:$0xff] }
 0x32f   :  { %5746 = vmatpush3.msra.mxu1 %v7314_v49  ;;  %5781 = vmatpush3.msra.mxu0 %v7319_v50  ;;  %v7857_v49 = vld [vmem:[%s9067_s6 + $0x4f8] sm:$0xff] }
 0x330   :  { %5747 = vmatprep.subr.mxu1 %v6472_v31  ;;  %5782 = vmatprep.subr.mxu0 %v6472_v31  ;;  %v7859_v50 = vld [vmem:[#allocation6 + $0x8] sm:$0xff] }
 0x331   :  { %5748 = vmatpush3.msra.mxu1 %v7328_v51  ;;  %5783 = vmatpush3.msra.mxu0 %v7333_v52  ;;  %v7868_v51 = vld [vmem:[%s9067_s6 + $0x470] sm:$0xff] }
 0x332   :  { %5749 = vmatprep.subr.mxu1 %v6472_v31  ;;  %5784 = vmatprep.subr.mxu0 %v6472_v31  ;;  %v7873_v52 = vld [vmem:[%s9067_s6 + $0x4f0] sm:$0xff] }
 0x333   :  { %5750 = vmatpush3.msra.mxu1 %v7342_v53  ;;  %5785 = vmatpush3.msra.mxu0 %v7347_v54  ;;  %v7882_v53 = vld [vmem:[%s9067_s6 + $0x468] sm:$0xff] }
 0x334   :  { %5751 = vmatprep.subr.mxu1 %v6472_v31  ;;  %5786 = vmatprep.subr.mxu0 %v6472_v31  ;;  %v7887_v54 = vld [vmem:[%s9067_s6 + $0x4e8] sm:$0xff] }
 0x335   :  { %5752 = vmatpush3.msra.mxu1 %v7356_v55  ;;  %5787 = vmatpush3.msra.mxu0 %v7361_v56  ;;  %v7896_v55 = vld [vmem:[%s9067_s6 + $0x460] sm:$0xff] }
 0x336   :  { %5753 = vmatprep.subr.mxu1 %v6472_v31  ;;  %5788 = vmatprep.subr.mxu0 %v6472_v31  ;;  %v7901_v56 = vld [vmem:[%s9067_s6 + $0x4e0] sm:$0xff] }
 0x337   :  { %5754 = vmatpush3.msra.mxu1 %v7370_v57  ;;  %5789 = vmatpush3.msra.mxu0 %v7375_v58  ;;  %v7910_v57 = vld [vmem:[%s9067_s6 + $0x458] sm:$0xff] }
 0x338   :  { %5755 = vmatprep.subr.mxu1 %v6472_v31  ;;  %5790 = vmatprep.subr.mxu0 %v6472_v31  ;;  %v7915_v58 = vld [vmem:[%s9067_s6 + $0x4d8] sm:$0xff] }
 0x339   :  { %5756 = vmatpush3.msra.mxu1 %v7384_v59  ;;  %5791 = vmatpush3.msra.mxu0 %v7389_v60  ;;  %v7924_v59 = vld [vmem:[%s9067_s6 + $0x450] sm:$0xff] }
 0x33a   :  { %5757 = vmatprep.subr.mxu1 %v6472_v31  ;;  %5792 = vmatprep.subr.mxu0 %v6472_v31  ;;  %v7749_v18 = vpop.f32.mrf.mxu1  ;;  %v7751_v19 = vpop.f32.mrf.mxu0  ;;  %v7929_v60 = vld [vmem:[%s9067_s6 + $0x4d0] sm:$0xff] }
 0x33b   :  { %9099 = vst [vmem:[#allocation13_spill] sm:$0xff] %v7749_v18  ;;  %9100 = vst [vmem:[#allocation14_spill] sm:$0xff] %v7751_v19  ;;  %5758 = vmatpush3.msra.mxu1 %v7398_v61  ;;  %5793 = vmatpush3.msra.mxu0 %v7403_v62  ;;  %v7938_v61 = vld [vmem:[%s9067_s6 + $0x448] sm:$0xff]  ;;  %v8267_v19 = vld [vmem:[%s9067_s6 + $0x598] sm:$0xff] }
 0x33c   :  { %5759 = vmatprep.subr.mxu1 %v6472_v31  ;;  %5794 = vmatprep.subr.mxu0 %v6472_v31  ;;  %v5349_v20 = vpop.f32.mrf.mxu1  ;;  %v5384_v33 = vpop.f32.mrf.mxu0  ;;  %v7943_v62 = vld [vmem:[%s9067_s6 + $0x4c8] sm:$0xff]  ;;  %9112 = vst [vmem:[#allocation20_spill] sm:$0xff] %v8267_v19  ;;  %v8276_v18 = vld [vmem:[%s9067_s6 + $0x510] sm:$0xff] }
 0x33d   :  { %5760 = vmatpush3.msra.mxu1 %v7412_v63  ;;  %5795 = vmatpush3.msra.mxu0 %v7417_v0  ;;  %v7952_v63 = vld [vmem:[%s9067_s6 + $0x440] sm:$0xff] }
 0x33e   :  { %5761 = vmatprep.subr.mxu1 %v6472_v31  ;;  %5796 = vmatprep.subr.mxu0 %v6472_v31  ;;  %v7957_v0 = vld [vmem:[%s9067_s6 + $0x4c0] sm:$0xff] }
 0x33f   :  { %5762 = vmatpush3.msra.mxu1 %v7426_v1  ;;  %5797 = vmatpush3.msra.mxu0 %v7431_v2  ;;  %v7966_v1 = vld [vmem:[%s9067_s6 + $0x438] sm:$0xff]  ;;  %v8188_v20 = vld [vmem:[%s9067_s6 + $0x540] sm:$0xff] }
 0x340   :  { %5763 = vmatprep.subr.mxu1 %v6472_v31  ;;  %5798 = vmatprep.subr.mxu0 %v6472_v31  ;;  %v7971_v2 = vld [vmem:[%s9067_s6 + $0x4b8] sm:$0xff]  ;;  %v8193_v33 = vld [vmem:[%s9067_s6 + $0x5c0] sm:$0xff] }
 0x341   :  { %5764 = vmatpush3.msra.mxu1 %v7440_v3  ;;  %5799 = vmatpush3.msra.mxu0 %v7445_v4  ;;  %v7980_v3 = vld [vmem:[%s9067_s6 + $0x430] sm:$0xff] }
 0x342   :  { %5765 = vmatprep.subr.mxu1 %v6472_v31  ;;  %5800 = vmatprep.subr.mxu0 %v6472_v31  ;;  %v7985_v4 = vld [vmem:[%s9067_s6 + $0x4b0] sm:$0xff] }
 0x343   :  { %5766 = vmatpush3.msra.mxu1 %v7454_v5  ;;  %5767 = vmatprep.mubr.msk.f32.mxu1 %vm6473_vm2, %v6472_v31  ;;  %v7994_v5 = vld [vmem:[%s9067_s6 + $0x428] sm:$0xff] }
 0x344   :  { %5801 = vmatpush3.msra.mxu0 %v7461_v22  ;;  %5802 = vmatprep.mubr.msk.f32.mxu0 %vm6473_vm2, %v6472_v31  ;;  %v7999_v22 = vld [vmem:[%s9067_s6 + $0x4a8] sm:$0xff] }
 0x345   :  { %5768 = vmatmul.mubr.f32.vlgmr.msra.gmra.mxu1 %v6894_v27  ;;  %5803 = vmatmul.mubr.f32.vlgmr.msra.gmra.mxu0 %v6894_v27 }
 0x346   :  { %5805 = vmatprep.subr.mxu1 %v6472_v31  ;;  %5840 = vmatprep.subr.mxu0 %v6472_v31 }
 0x347   :  { %5806 = vmatpush3.msra.mxu1 %v7474_v23  ;;  %5841 = vmatpush3.msra.mxu0 %v7479_v25  ;;  %v8008_v23 = vld [vmem:[%s9067_s6 + $0x420] sm:$0xff] }
 0x348   :  { %5807 = vmatprep.subr.mxu1 %v6472_v31  ;;  %5842 = vmatprep.subr.mxu0 %v6472_v31  ;;  %v8013_v25 = vld [vmem:[%s9067_s6 + $0x4a0] sm:$0xff] }
 0x349   :  { %5808 = vmatpush3.msra.mxu1 %v7488_v26  ;;  %5843 = vmatpush3.msra.mxu0 %v7493_v28 }
 0x34a   :  { %5809 = vmatprep.subr.mxu1 %v6472_v31  ;;  %5844 = vmatprep.subr.mxu0 %v6472_v31 }
 0x34b   :  { %5810 = vmatpush3.msra.mxu1 %v7502_v38  ;;  %5845 = vmatpush3.msra.mxu0 %v7507_v39  ;;  %v8026_v38 = vld [vmem:[%s9067_s6 + $0x418] sm:$0xff] }
 0x34c   :  { %5811 = vmatprep.subr.mxu1 %v6472_v31  ;;  %5846 = vmatprep.subr.mxu0 %v6472_v31  ;;  %v8031_v39 = vld [vmem:[%s9067_s6 + $0x498] sm:$0xff] }
 0x34d   :  { %5812 = vmatpush3.msra.mxu1 %v7516_v40  ;;  %5847 = vmatpush3.msra.mxu0 %v7521_v41 }
 0x34e   :  { %5813 = vmatprep.subr.mxu1 %v6472_v31  ;;  %5848 = vmatprep.subr.mxu0 %v6472_v31 }
 0x34f   :  { %5814 = vmatpush3.msra.mxu1 %v7530_v42  ;;  %5849 = vmatpush3.msra.mxu0 %v7535_v43  ;;  %v8040_v42 = vld [vmem:[%s9067_s6 + $0x410] sm:$0xff] }
 0x350   :  { %5815 = vmatprep.subr.mxu1 %v6472_v31  ;;  %5850 = vmatprep.subr.mxu0 %v6472_v31  ;;  %v8045_v43 = vld [vmem:[%s9067_s6 + $0x490] sm:$0xff] }
 0x351   :  { %5816 = vmatpush3.msra.mxu1 %v7544_v44  ;;  %5851 = vmatpush3.msra.mxu0 %v7549_v45  ;;  %v8054_v44 = vld [vmem:[%s9067_s6 + $0x408] sm:$0xff] }
 0x352   :  { %5817 = vmatprep.subr.mxu1 %v6472_v31  ;;  %5852 = vmatprep.subr.mxu0 %v6472_v31  ;;  %v8059_v45 = vld [vmem:[%s9067_s6 + $0x488] sm:$0xff] }
 0x353   :  { %5818 = vmatpush3.msra.mxu1 %v7558_v6  ;;  %5853 = vmatpush3.msra.mxu0 %v7563_v7  ;;  %v8068_v6 = vld [vmem:[%s9067_s6 + $0x400] sm:$0xff] }
 0x354   :  { %5819 = vmatprep.subr.mxu1 %v6472_v31  ;;  %5854 = vmatprep.subr.mxu0 %v6472_v31  ;;  %v8075_v7 = vld [vmem:[%s9067_s6 + $0x480] sm:$0xff] }
 0x355   :  { %5820 = vmatpush3.msra.mxu1 %v7572_v8  ;;  %5855 = vmatpush3.msra.mxu0 %v7577_v9  ;;  %v8088_v8 = vld [vmem:[%s9067_s6 + $0x578] sm:$0xff] }
 0x356   :  { %5821 = vmatprep.subr.mxu1 %v6472_v31  ;;  %5856 = vmatprep.subr.mxu0 %v6472_v31  ;;  %v8093_v9 = vld [vmem:[%s9067_s6 + $0x5f8] sm:$0xff] }
 0x357   :  { %5822 = vmatpush3.msra.mxu1 %v7586_v10  ;;  %5857 = vmatpush3.msra.mxu0 %v7591_v11  ;;  %v8095_v10 = vld [vmem:[#allocation6] sm:$0xff] }
 0x358   :  { %5823 = vmatprep.subr.mxu1 %v6472_v31  ;;  %5858 = vmatprep.subr.mxu0 %v6472_v31  ;;  %v8104_v11 = vld [vmem:[%s9067_s6 + $0x570] sm:$0xff] }
 0x359   :  { %5824 = vmatpush3.msra.mxu1 %v7600_v12  ;;  %5859 = vmatpush3.msra.mxu0 %v7605_v13  ;;  %v8109_v12 = vld [vmem:[%s9067_s6 + $0x5f0] sm:$0xff]  ;;  %v8118_v13 = vld [vmem:[%s9067_s6 + $0x568] sm:$0xff] }
 0x35a   :  { %5825 = vmatprep.subr.mxu1 %v6472_v31  ;;  %5860 = vmatprep.subr.mxu0 %v6472_v31 }
 0x35b   :  { %5826 = vmatpush3.msra.mxu1 %v7614_v14  ;;  %5861 = vmatpush3.msra.mxu0 %v7619_v15  ;;  %v7821_v27 = vpop.f32.mrf.mxu1  ;;  %v7823_v34 = vpop.f32.mrf.mxu0  ;;  %v8123_v14 = vld [vmem:[%s9067_s6 + $0x5e8] sm:$0xff]  ;;  %v8132_v15 = vld [vmem:[%s9067_s6 + $0x560] sm:$0xff] }
 0x35c   :  { %9101 = vst [vmem:[#allocation15_spill] sm:$0xff] %v7821_v27  ;;  %9102 = vst [vmem:[#allocation16_spill] sm:$0xff] %v7823_v34  ;;  %5827 = vmatprep.subr.mxu1 %v6472_v31  ;;  %5862 = vmatprep.subr.mxu0 %v6472_v31  ;;  %v8262_v27 = vld [vmem:[%s9067_s6 + $0x518] sm:$0xff] }
 0x35d   :  { %5828 = vmatpush3.msra.mxu1 %v7628_v16  ;;  %5863 = vmatpush3.msra.mxu0 %v9103_v35  ;;  %v5419_v36 = vpop.f32.mrf.mxu1  ;;  %v5454_v37 = vpop.f32.mrf.mxu0  ;;  %v8137_v16 = vld [vmem:[%s9067_s6 + $0x5e0] sm:$0xff]  ;;  %v8202_v35 = vld [vmem:[%s9067_s6 + $0x538] sm:$0xff]  ;;  %9111 = vst [vmem:[#allocation19_spill] sm:$0xff] %v8262_v27 }
 0x35e   :  { %5829 = vmatprep.subr.mxu1 %v6472_v31  ;;  %5864 = vmatprep.subr.mxu0 %v6472_v31  ;;  %v8207_v36 = vld [vmem:[%s9067_s6 + $0x5b8] sm:$0xff]  ;;  %v8216_v37 = vld [vmem:[%s9067_s6 + $0x530] sm:$0xff] }
 0x35f   :  { %5830 = vmatpush3.msra.mxu1 %v9104_v46  ;;  %5865 = vmatpush3.msra.mxu0 %v9105_v47  ;;  %v8221_v46 = vld [vmem:[%s9067_s6 + $0x5b0] sm:$0xff]  ;;  %v8230_v47 = vld [vmem:[%s9067_s6 + $0x528] sm:$0xff] }
 0x360   :  { %5831 = vmatprep.subr.mxu1 %v6472_v31  ;;  %5866 = vmatprep.subr.mxu0 %v6472_v31 }
 0x361   :  { %5832 = vmatpush3.msra.mxu1 %v7656_v29  ;;  %5867 = vmatpush3.msra.mxu0 %v7661_v30  ;;  %v8165_v29 = vld [vmem:[%s9067_s6 + $0x5d0] sm:$0xff]  ;;  %v8174_v30 = vld [vmem:[%s9067_s6 + $0x548] sm:$0xff] }
 0x362   :  { %5833 = vmatprep.subr.mxu1 %v6472_v31  ;;  %5868 = vmatprep.subr.mxu0 %v6472_v31 }
 0x363   :  { %5834 = vmatpush3.msra.mxu1 %v7670_v32  ;;  %5869 = vmatpush3.msra.mxu0 %v7675_v17  ;;  %v8146_v17 = vld [vmem:[%s9067_s6 + $0x558] sm:$0xff]  ;;  %v8179_v32 = vld [vmem:[%s9067_s6 + $0x5c8] sm:$0xff] }
 0x364   :  { %5835 = vmatprep.subr.mxu1 %v6472_v31  ;;  %5870 = vmatprep.subr.mxu0 %v6472_v31 }
 0x365   :  { %5836 = vmatpush3.msra.mxu1 %v7684_v24  ;;  %5837 = vmatprep.mubr.msk.f32.mxu1 %vm6473_vm2, %v6472_v31  ;;  %v8160_v24 = vld [vmem:[%s9067_s6 + $0x550] sm:$0xff] }
 0x366   :  { %5871 = vmatpush3.msra.mxu0 %v7691_v21  ;;  %5872 = vmatprep.mubr.msk.f32.mxu0 %vm6473_vm2, %v6472_v31  ;;  %v8151_v21 = vld [vmem:[%s9067_s6 + $0x5d8] sm:$0xff] }
 0x367   :  { %5838 = vmatmul.mubr.f32.vlgmr.msra.gmra.mxu1 %v7859_v50  ;;  %5873 = vmatmul.mubr.f32.vlgmr.msra.gmra.mxu0 %v7859_v50 }
 0x368   :  { %5875 = vmatprep.subr.mxu1 %v6472_v31  ;;  %5910 = vmatprep.subr.mxu0 %v6472_v31 }
 0x369   :  { %5876 = vmatpush3.msra.mxu1 %v7852_v48  ;;  %5911 = vmatpush3.msra.mxu0 %v7857_v49 }
 0x36a   :  { %5877 = vmatprep.subr.mxu1 %v6472_v31  ;;  %5912 = vmatprep.subr.mxu0 %v6472_v31 }
 0x36b   :  { %5878 = vmatpush3.msra.mxu1 %v7868_v51  ;;  %5913 = vmatpush3.msra.mxu0 %v7873_v52 }
 0x36c   :  { %5879 = vmatprep.subr.mxu1 %v6472_v31  ;;  %5914 = vmatprep.subr.mxu0 %v6472_v31 }
 0x36d   :  { %5880 = vmatpush3.msra.mxu1 %v7882_v53  ;;  %5915 = vmatpush3.msra.mxu0 %v7887_v54 }
 0x36e   :  { %5881 = vmatprep.subr.mxu1 %v6472_v31  ;;  %5916 = vmatprep.subr.mxu0 %v6472_v31 }
 0x36f   :  { %5882 = vmatpush3.msra.mxu1 %v7896_v55  ;;  %5917 = vmatpush3.msra.mxu0 %v7901_v56 }
 0x370   :  { %5883 = vmatprep.subr.mxu1 %v6472_v31  ;;  %5918 = vmatprep.subr.mxu0 %v6472_v31 }
 0x371   :  { %5884 = vmatpush3.msra.mxu1 %v7910_v57  ;;  %5919 = vmatpush3.msra.mxu0 %v7915_v58 }
 0x372   :  { %5885 = vmatprep.subr.mxu1 %v6472_v31  ;;  %5920 = vmatprep.subr.mxu0 %v6472_v31 }
 0x373   :  { %5886 = vmatpush3.msra.mxu1 %v7924_v59  ;;  %5921 = vmatpush3.msra.mxu0 %v7929_v60 }
 0x374   :  { %5887 = vmatprep.subr.mxu1 %v6472_v31  ;;  %5922 = vmatprep.subr.mxu0 %v6472_v31 }
 0x375   :  { %5888 = vmatpush3.msra.mxu1 %v7938_v61  ;;  %5923 = vmatpush3.msra.mxu0 %v7943_v62 }
 0x376   :  { %5889 = vmatprep.subr.mxu1 %v6472_v31  ;;  %5924 = vmatprep.subr.mxu0 %v6472_v31 }
 0x377   :  { %5890 = vmatpush3.msra.mxu1 %v7952_v63  ;;  %5925 = vmatpush3.msra.mxu0 %v7957_v0 }
 0x378   :  { %5891 = vmatprep.subr.mxu1 %v6472_v31  ;;  %5926 = vmatprep.subr.mxu0 %v6472_v31 }
 0x379   :  { %5892 = vmatpush3.msra.mxu1 %v7966_v1  ;;  %5927 = vmatpush3.msra.mxu0 %v7971_v2 }
 0x37a   :  { %5893 = vmatprep.subr.mxu1 %v6472_v31  ;;  %5928 = vmatprep.subr.mxu0 %v6472_v31 }
 0x37b   :  { %5894 = vmatpush3.msra.mxu1 %v7980_v3  ;;  %5929 = vmatpush3.msra.mxu0 %v7985_v4 }
 0x37c   :  { %5895 = vmatprep.subr.mxu1 %v6472_v31  ;;  %5930 = vmatprep.subr.mxu0 %v6472_v31 }
 0x37d   :  { %5896 = vmatpush3.msra.mxu1 %v7994_v5  ;;  %5931 = vmatpush3.msra.mxu0 %v7999_v22  ;;  %v8017_v26 = vpop.f32.mrf.mxu1  ;;  %v8019_v28 = vpop.f32.mrf.mxu0 }
 0x37e   :  { %9106 = vst [vmem:[#allocation10_spill] sm:$0xff] %v8017_v26  ;;  %9107 = vst [vmem:[#allocation11_spill] sm:$0xff] %v8019_v28  ;;  %5897 = vmatprep.subr.mxu1 %v6472_v31  ;;  %5932 = vmatprep.subr.mxu0 %v6472_v31  ;;  %v8249_v28 = vld [vmem:[%s9067_s6 + $0x5a0] sm:$0xff] }
 0x37f   :  { %5898 = vmatpush3.msra.mxu1 %v8008_v23  ;;  %5933 = vmatpush3.msra.mxu0 %v8013_v25  ;;  %v5489_v40 = vpop.f32.mrf.mxu1  ;;  %v5524_v41 = vpop.f32.mrf.mxu0 }
 0x380   :  { %5899 = vmatprep.subr.mxu1 %v6472_v31  ;;  %5934 = vmatprep.subr.mxu0 %v6472_v31  ;;  %v8235_v40 = vld [vmem:[%s9067_s6 + $0x5a8] sm:$0xff]  ;;  %v8244_v41 = vld [vmem:[%s9067_s6 + $0x520] sm:$0xff] }
 0x381   :  { %5900 = vmatpush3.msra.mxu1 %v8026_v38  ;;  %5935 = vmatpush3.msra.mxu0 %v8031_v39  ;;  %9108 = vst [vmem:[#allocation12_spill] sm:$0xff] %v8235_v40 }
 0x382   :  { %5901 = vmatprep.subr.mxu1 %v6472_v31  ;;  %5936 = vmatprep.subr.mxu0 %v6472_v31 }
 0x383   :  { %5902 = vmatpush3.msra.mxu1 %v8040_v42  ;;  %5937 = vmatpush3.msra.mxu0 %v8045_v43 }
 0x384   :  { %5903 = vmatprep.subr.mxu1 %v6472_v31  ;;  %5938 = vmatprep.subr.mxu0 %v6472_v31 }
 0x385   :  { %5904 = vmatpush3.msra.mxu1 %v8054_v44  ;;  %5939 = vmatpush3.msra.mxu0 %v8059_v45 }
 0x386   :  { %5905 = vmatprep.subr.mxu1 %v6472_v31  ;;  %5940 = vmatprep.subr.mxu0 %v6472_v31 }
 0x387   :  { %5906 = vmatpush3.msra.mxu1 %v8068_v6  ;;  %5907 = vmatprep.mubr.msk.f32.mxu1 %vm6473_vm2, %v6472_v31 }
 0x388   :  { %5941 = vmatpush3.msra.mxu0 %v8075_v7  ;;  %5942 = vmatprep.mubr.msk.f32.mxu0 %vm6473_vm2, %v6472_v31 }
 0x389   :  { %5908 = vmatmul.mubr.f32.vlgmr.msra.gmra.mxu1 %v8095_v10  ;;  %5943 = vmatmul.mubr.f32.vlgmr.msra.gmra.mxu0 %v8095_v10 }
 0x38a   :  { %5945 = vmatprep.subr.mxu1 %v6472_v31  ;;  %5980 = vmatprep.subr.mxu0 %v6472_v31 }
 0x38b   :  { %5946 = vmatpush3.msra.mxu1 %v8088_v8  ;;  %5981 = vmatpush3.msra.mxu0 %v8093_v9 }
 0x38c   :  { %5947 = vmatprep.subr.mxu1 %v6472_v31  ;;  %5982 = vmatprep.subr.mxu0 %v6472_v31 }
 0x38d   :  { %5948 = vmatpush3.msra.mxu1 %v8104_v11  ;;  %5983 = vmatpush3.msra.mxu0 %v8109_v12 }
 0x38e   :  { %5949 = vmatprep.subr.mxu1 %v6472_v31  ;;  %5984 = vmatprep.subr.mxu0 %v6472_v31 }
 0x38f   :  { %5950 = vmatpush3.msra.mxu1 %v8118_v13  ;;  %5985 = vmatpush3.msra.mxu0 %v8123_v14 }
 0x390   :  { %5951 = vmatprep.subr.mxu1 %v6472_v31  ;;  %5986 = vmatprep.subr.mxu0 %v6472_v31 }
 0x391   :  { %5952 = vmatpush3.msra.mxu1 %v8132_v15  ;;  %5987 = vmatpush3.msra.mxu0 %v8137_v16 }
 0x392   :  { %5953 = vmatprep.subr.mxu1 %v6472_v31  ;;  %5988 = vmatprep.subr.mxu0 %v6472_v31 }
 0x393   :  { %5954 = vmatpush3.msra.mxu1 %v8146_v17  ;;  %5989 = vmatpush3.msra.mxu0 %v8151_v21 }
 0x394   :  { %5955 = vmatprep.subr.mxu1 %v6472_v31  ;;  %5990 = vmatprep.subr.mxu0 %v6472_v31 }
 0x395   :  { %5956 = vmatpush3.msra.mxu1 %v8160_v24  ;;  %5991 = vmatpush3.msra.mxu0 %v8165_v29 }
 0x396   :  { %5957 = vmatprep.subr.mxu1 %v6472_v31  ;;  %5992 = vmatprep.subr.mxu0 %v6472_v31 }
 0x397   :  { %5958 = vmatpush3.msra.mxu1 %v8174_v30  ;;  %5993 = vmatpush3.msra.mxu0 %v8179_v32 }
 0x398   :  { %5959 = vmatprep.subr.mxu1 %v6472_v31  ;;  %5994 = vmatprep.subr.mxu0 %v6472_v31 }
 0x399   :  { %5960 = vmatpush3.msra.mxu1 %v8188_v20  ;;  %5995 = vmatpush3.msra.mxu0 %v8193_v33 }
 0x39a   :  { %5961 = vmatprep.subr.mxu1 %v6472_v31  ;;  %5996 = vmatprep.subr.mxu0 %v6472_v31 }
 0x39b   :  { %5962 = vmatpush3.msra.mxu1 %v8202_v35  ;;  %5997 = vmatpush3.msra.mxu0 %v8207_v36 }
 0x39c   :  { %5963 = vmatprep.subr.mxu1 %v6472_v31  ;;  %5998 = vmatprep.subr.mxu0 %v6472_v31 }
 0x39d   :  { %5964 = vmatpush3.msra.mxu1 %v8216_v37  ;;  %5999 = vmatpush3.msra.mxu0 %v8221_v46 }
 0x39e   :  { %5965 = vmatprep.subr.mxu1 %v6472_v31  ;;  %6000 = vmatprep.subr.mxu0 %v6472_v31 }
 0x39f   :  { %5966 = vmatpush3.msra.mxu1 %v8230_v47  ;;  %6001 = vmatpush3.msra.mxu0 %v8235_v40  ;;  %v8253_v26 = vpop.f32.mrf.mxu1  ;;  %v8255_v34 = vpop.f32.mrf.mxu0  ;;  %v8281_v40 = vld [vmem:[%s9067_s6 + $0x590] sm:$0xff] }
 0x3a0   :  { %9109 = vst [vmem:[#allocation17_spill] sm:$0xff] %v8253_v26  ;;  %9110 = vst [vmem:[#allocation18_spill] sm:$0xff] %v8255_v34  ;;  %5967 = vmatprep.subr.mxu1 %v6472_v31  ;;  %6002 = vmatprep.subr.mxu0 %v6472_v31 }
 0x3a1   :  { %5968 = vmatpush3.msra.mxu1 %v8244_v41  ;;  %6003 = vmatpush3.msra.mxu0 %v8249_v28  ;;  %v5559_v26 = vpop.f32.mrf.mxu1  ;;  %v5594_v34 = vpop.f32.mrf.mxu0 }
 0x3a2   :  { %5969 = vmatprep.subr.mxu1 %v6472_v31  ;;  %6004 = vmatprep.subr.mxu0 %v6472_v31  ;;  %v8290_v34 = vld [vmem:[%s9067_s6 + $0x508] sm:$0xff] }
 0x3a3   :  { %5970 = vmatpush3.msra.mxu1 %v8262_v27  ;;  %6005 = vmatpush3.msra.mxu0 %v8267_v19  ;;  %v8295_v26 = vld [vmem:[%s9067_s6 + $0x588] sm:$0xff]  ;;  %v8304_v19 = vld [vmem:[%s9067_s6 + $0x500] sm:$0xff] }
 0x3a4   :  { %5971 = vmatprep.subr.mxu1 %v6472_v31  ;;  %6006 = vmatprep.subr.mxu0 %v6472_v31  ;;  %v8311_v27 = vld [vmem:[%s9067_s6 + $0x580] sm:$0xff] }
 0x3a5   :  { %5972 = vmatpush3.msra.mxu1 %v8276_v18  ;;  %6007 = vmatpush3.msra.mxu0 %v8281_v40 }
 0x3a6   :  { %5973 = vmatprep.subr.mxu1 %v6472_v31  ;;  %6008 = vmatprep.subr.mxu0 %v6472_v31 }
 0x3a7   :  { %5974 = vmatpush3.msra.mxu1 %v8290_v34  ;;  %6009 = vmatpush3.msra.mxu0 %v8295_v26 }
 0x3a8   :  { %5975 = vmatprep.subr.mxu1 %v6472_v31  ;;  %6010 = vmatprep.subr.mxu0 %v6472_v31 }
 0x3a9   :  { %5976 = vmatpush3.msra.mxu1 %v8304_v19  ;;  %5977 = vmatprep.mubr.msk.f32.mxu1 %vm6473_vm2, %v6472_v31 }
 0x3aa   :  { %6011 = vmatpush3.msra.mxu0 %v8311_v27  ;;  %6012 = vmatprep.mubr.msk.f32.mxu0 %vm6473_vm2, %v6472_v31 }
 0x3ab   :  { %5978 = vmatmul.mubr.f32.vlgmr.msra.gmra.mxu1 %v8095_v10  ;;  %6013 = vmatmul.mubr.f32.vlgmr.msra.gmra.mxu0 %v8095_v10 }
 0x3ac   :  { %6015 = vmatprep.subr.mxu1 %v6472_v31  ;;  %6050 = vmatprep.subr.mxu0 %v6472_v31 }
 0x3ad   :  { %6016 = vmatpush3.msra.mxu1 %v7852_v48  ;;  %6051 = vmatpush3.msra.mxu0 %v7857_v49 }
 0x3ae   :  { %6017 = vmatprep.subr.mxu1 %v6472_v31  ;;  %6052 = vmatprep.subr.mxu0 %v6472_v31 }
 0x3af   :  { %6018 = vmatpush3.msra.mxu1 %v7868_v51  ;;  %6053 = vmatpush3.msra.mxu0 %v7873_v52 }
 0x3b0   :  { %6019 = vmatprep.subr.mxu1 %v6472_v31  ;;  %6054 = vmatprep.subr.mxu0 %v6472_v31 }
 0x3b1   :  { %6020 = vmatpush3.msra.mxu1 %v7882_v53  ;;  %6055 = vmatpush3.msra.mxu0 %v7887_v54  ;;  %v9113_v53 = vld [vmem:[#allocation12_spill] sm:$0xff] }
 0x3b2   :  { %6021 = vmatprep.subr.mxu1 %v6472_v31  ;;  %6056 = vmatprep.subr.mxu0 %v6472_v31 }
 0x3b3   :  { %6022 = vmatpush3.msra.mxu1 %v7896_v55  ;;  %6057 = vmatpush3.msra.mxu0 %v7901_v56 }
 0x3b4   :  { %6023 = vmatprep.subr.mxu1 %v6472_v31  ;;  %6058 = vmatprep.subr.mxu0 %v6472_v31 }
 0x3b5   :  { %6024 = vmatpush3.msra.mxu1 %v7910_v57  ;;  %6059 = vmatpush3.msra.mxu0 %v7915_v58  ;;  %v9114_v58 = vld [vmem:[#allocation19_spill] sm:$0xff] }
 0x3b6   :  { %6025 = vmatprep.subr.mxu1 %v6472_v31  ;;  %6060 = vmatprep.subr.mxu0 %v6472_v31 }
 0x3b7   :  { %6026 = vmatpush3.msra.mxu1 %v7924_v59  ;;  %6061 = vmatpush3.msra.mxu0 %v7929_v60  ;;  %v9115_v59 = vld [vmem:[#allocation20_spill] sm:$0xff] }
 0x3b8   :  { %6027 = vmatprep.subr.mxu1 %v6472_v31  ;;  %6062 = vmatprep.subr.mxu0 %v6472_v31  ;;  %v4683_v60 = vld [vmem:[%s9068_s7] ss:$0 sm:$0xff] }
 0x3b9   :  { %6028 = vmatpush3.msra.mxu1 %v7938_v61  ;;  %6063 = vmatpush3.msra.mxu0 %v7943_v62  ;;  %v4687_v61 = vld [vmem:[%s9068_s7 + $0x4] ss:$0 sm:$0xff] }
 0x3ba   :  { %6029 = vmatprep.subr.mxu1 %v6472_v31  ;;  %6064 = vmatprep.subr.mxu0 %v6472_v31 }
 0x3bb   :  { %6030 = vmatpush3.msra.mxu1 %v7952_v63  ;;  %6065 = vmatpush3.msra.mxu0 %v7957_v0  ;;  %v4684_v63 = vld [vmem:[%s9068_s7 + $0x1] ss:$0 sm:$0xff] }
 0x3bc   :  { %6031 = vmatprep.subr.mxu1 %v6472_v31  ;;  %6066 = vmatprep.subr.mxu0 %v6472_v31 }
 0x3bd   :  { %6032 = vmatpush3.msra.mxu1 %v7966_v1  ;;  %6067 = vmatpush3.msra.mxu0 %v7971_v2  ;;  %v9117_v1 = vld [vmem:[#allocation14_spill] sm:$0xff] }
 0x3be   :  { %6033 = vmatprep.subr.mxu1 %v6472_v31  ;;  %6068 = vmatprep.subr.mxu0 %v6472_v31  ;;  %v653_v2 = vadd.f32 %v4684_v63, %v9117_v1 }
 0x3bf   :  { %6034 = vmatpush3.msra.mxu1 %v7980_v3  ;;  %6069 = vmatpush3.msra.mxu0 %v7985_v4  ;;  %v4689_v4 = vld [vmem:[%s9068_s7 + $0x6] ss:$0 sm:$0xff] }
 0x3c0   :  { %6035 = vmatprep.subr.mxu1 %v6472_v31  ;;  %6070 = vmatprep.subr.mxu0 %v6472_v31 }
 0x3c1   :  { %6036 = vmatpush3.msra.mxu1 %v7994_v5  ;;  %6071 = vmatpush3.msra.mxu0 %v7999_v22  ;;  %v8367_v48 = vpop.f32.mrf.mxu1  ;;  %v8369_v49 = vpop.f32.mrf.mxu0  ;;  %v1077_v5 = vmul.f32 0.17677669, %v653_v2  ;;  %v9118_v22 = vld [vmem:[#allocation15_spill] sm:$0xff]  ;;  %v4696_v2 = vld [vmem:[%s9066_s5 + $0x1] ss:$0 sm:$0xff] }
 0x3c2   :  { %6037 = vmatprep.subr.mxu1 %v6472_v31  ;;  %6072 = vmatprep.subr.mxu0 %v6472_v31  ;;  %v1175_v0 = vadd.f32 %v4687_v61, %v8367_v48 }
 0x3c3   :  { %6038 = vmatpush3.msra.mxu1 %v8008_v23  ;;  %6073 = vmatpush3.msra.mxu0 %v8013_v25  ;;  %v5629_v51 = vpop.f32.mrf.mxu1  ;;  %v5664_v52 = vpop.f32.mrf.mxu0  ;;  %v4686_v25 = vld [vmem:[%s9068_s7 + $0x3] ss:$0 sm:$0xff] }
 0x3c4   :  { %6039 = vmatprep.subr.mxu1 %v6472_v31  ;;  %6074 = vmatprep.subr.mxu0 %v6472_v31 }
 0x3c5   :  { %6040 = vmatpush3.msra.mxu1 %v8026_v38  ;;  %6075 = vmatpush3.msra.mxu0 %v8031_v39  ;;  %v4690_v38 = vld [vmem:[%s9068_s7 + $0x7] ss:$0 sm:$0xff] }
 0x3c6   :  { %6041 = vmatprep.subr.mxu1 %v6472_v31  ;;  %6076 = vmatprep.subr.mxu0 %v6472_v31 }
 0x3c7   :  { %6042 = vmatpush3.msra.mxu1 %v8040_v42  ;;  %6077 = vmatpush3.msra.mxu0 %v8045_v43  ;;  %v9119_v42 = vld [vmem:[#allocation16_spill] sm:$0xff] }
 0x3c8   :  { %6043 = vmatprep.subr.mxu1 %v6472_v31  ;;  %6078 = vmatprep.subr.mxu0 %v6472_v31  ;;  %v793_v43 = vadd.f32 %v4686_v25, %v9119_v42 }
 0x3c9   :  { %6044 = vmatpush3.msra.mxu1 %v8054_v44  ;;  %6079 = vmatpush3.msra.mxu0 %v8059_v45 }
 0x3ca   :  { %6045 = vmatprep.subr.mxu1 %v6472_v31  ;;  %6080 = vmatprep.subr.mxu0 %v6472_v31  ;;  %v1079_v45 = vmul.f32 0.17677669, %v793_v43 }
 0x3cb   :  { %6046 = vmatpush3.msra.mxu1 %v8068_v6  ;;  %6047 = vmatprep.mubr.msk.f32.mxu1 %vm6473_vm2, %v6472_v31  ;;  %v9120_v6 = vld [vmem:[#allocation10_spill] sm:$0xff] }
 0x3cc   :  { %6081 = vmatpush3.msra.mxu0 %v8075_v7  ;;  %6082 = vmatprep.mubr.msk.f32.mxu0 %vm6473_vm2, %v6472_v31  ;;  %v863_v7 = vadd.f32 %v4683_v60, %v9120_v6 }
 0x3cd   :  { %6048 = vmatmul.mubr.f32.vlgmr.msra.gmra.mxu1 %v7859_v50  ;;  %6083 = vmatmul.mubr.f32.vlgmr.msra.gmra.mxu0 %v7859_v50 }
 0x3ce   :  { %6085 = vmatprep.subr.mxu1 %v6472_v31  ;;  %6120 = vmatprep.subr.mxu0 %v6472_v31 }
 0x3cf   :  { %6086 = vmatpush3.msra.mxu1 %v8088_v8  ;;  %6121 = vmatpush3.msra.mxu0 %v8093_v9 }
 0x3d0   :  { %6087 = vmatprep.subr.mxu1 %v6472_v31  ;;  %6122 = vmatprep.subr.mxu0 %v6472_v31 }
 0x3d1   :  { %6088 = vmatpush3.msra.mxu1 %v8104_v11  ;;  %6123 = vmatpush3.msra.mxu0 %v8109_v12 }
 0x3d2   :  { %6089 = vmatprep.subr.mxu1 %v6472_v31  ;;  %6124 = vmatprep.subr.mxu0 %v6472_v31 }
 0x3d3   :  { %6090 = vmatpush3.msra.mxu1 %v8118_v13  ;;  %6125 = vmatpush3.msra.mxu0 %v8123_v14  ;;  %v1080_v13 = vmul.f32 0.17677669, %v863_v7  ;;  %v9121_v14 = vld [vmem:[#allocation11_spill] sm:$0xff]  ;;  %v4699_v7 = vld [vmem:[%s9066_s5 + $0x4] ss:$0 sm:$0xff] }
 0x3d4   :  { %6091 = vmatprep.subr.mxu1 %v6472_v31  ;;  %6126 = vmatprep.subr.mxu0 %v6472_v31 }
 0x3d5   :  { %6092 = vmatpush3.msra.mxu1 %v8132_v15  ;;  %6127 = vmatpush3.msra.mxu0 %v8137_v16  ;;  %v933_v15 = vadd.f32 %v4684_v63, %v9121_v14 }
 0x3d6   :  { %6093 = vmatprep.subr.mxu1 %v6472_v31  ;;  %6128 = vmatprep.subr.mxu0 %v6472_v31 }
 0x3d7   :  { %6094 = vmatpush3.msra.mxu1 %v8146_v17  ;;  %6129 = vmatpush3.msra.mxu0 %v8151_v21  ;;  %v1081_v17 = vmul.f32 0.17677669, %v933_v15  ;;  %v9122_v21 = vld [vmem:[#allocation17_spill] sm:$0xff] }
 0x3d8   :  { %6095 = vmatprep.subr.mxu1 %v6472_v31  ;;  %6130 = vmatprep.subr.mxu0 %v6472_v31 }
 0x3d9   :  { %6096 = vmatpush3.msra.mxu1 %v8160_v24  ;;  %6131 = vmatpush3.msra.mxu0 %v8165_v29 }
 0x3da   :  { %6097 = vmatprep.subr.mxu1 %v6472_v31  ;;  %6132 = vmatprep.subr.mxu0 %v6472_v31 }
 0x3db   :  { %6098 = vmatpush3.msra.mxu1 %v8174_v30  ;;  %6133 = vmatpush3.msra.mxu0 %v8179_v32 }
 0x3dc   :  { %6099 = vmatprep.subr.mxu1 %v6472_v31  ;;  %6134 = vmatprep.subr.mxu0 %v6472_v31 }
 0x3dd   :  { %6100 = vmatpush3.msra.mxu1 %v8188_v20  ;;  %6135 = vmatpush3.msra.mxu0 %v8193_v33 }
 0x3de   :  { %6101 = vmatprep.subr.mxu1 %v6472_v31  ;;  %6136 = vmatprep.subr.mxu0 %v6472_v31 }
 0x3df   :  { %6102 = vmatpush3.msra.mxu1 %v8202_v35  ;;  %6137 = vmatpush3.msra.mxu0 %v8207_v36  ;;  %v9123_v36 = vld [vmem:[#allocation18_spill] sm:$0xff] }
 0x3e0   :  { %6103 = vmatprep.subr.mxu1 %v6472_v31  ;;  %6138 = vmatprep.subr.mxu0 %v6472_v31 }
 0x3e1   :  { %6104 = vmatpush3.msra.mxu1 %v8216_v37  ;;  %6139 = vmatpush3.msra.mxu0 %v8221_v46  ;;  %v1073_v37 = vadd.f32 %v4686_v25, %v9123_v36 }
 0x3e2   :  { %6105 = vmatprep.subr.mxu1 %v6472_v31  ;;  %6140 = vmatprep.subr.mxu0 %v6472_v31 }
 0x3e3   :  { %6106 = vmatpush3.msra.mxu1 %v8230_v47  ;;  %6141 = vmatpush3.msra.mxu0 %v9113_v53  ;;  %v1314_v54 = vpop.f32.mrf.mxu1  ;;  %v1384_v55 = vpop.f32.mrf.mxu0  ;;  %v1083_v47 = vmul.f32 0.17677669, %v1073_v37 }
 0x3e4   :  { %6107 = vmatprep.subr.mxu1 %v6472_v31  ;;  %6142 = vmatprep.subr.mxu0 %v6472_v31  ;;  %v1385_v44 = vadd.f32 %v4690_v38, %v1384_v55 }
 0x3e5   :  { %6108 = vmatpush3.msra.mxu1 %v8244_v41  ;;  %6143 = vmatpush3.msra.mxu0 %v8249_v28  ;;  %v5699_v56 = vpop.f32.mrf.mxu1  ;;  %v5734_v57 = vpop.f32.mrf.mxu0  ;;  %v1315_v28 = vadd.f32 %v4689_v4, %v1314_v54  ;;  %v8555_v41 = vld [vmem:[%s9068_s7 + $0x9] ss:$0 sm:$0xff] }
 0x3e6   :  { %6109 = vmatprep.subr.mxu1 %v6472_v31  ;;  %6144 = vmatprep.subr.mxu0 %v6472_v31 }
 0x3e7   :  { %6110 = vmatpush3.msra.mxu1 %v9114_v58  ;;  %6145 = vmatpush3.msra.mxu0 %v9115_v59 }
 0x3e8   :  { %6111 = vmatprep.subr.mxu1 %v6472_v31  ;;  %6146 = vmatprep.subr.mxu0 %v6472_v31 }
 0x3e9   :  { %6112 = vmatpush3.msra.mxu1 %v8276_v18  ;;  %6147 = vmatpush3.msra.mxu0 %v8281_v40  ;;  %v9116_v18 = vld [vmem:[#allocation13_spill] sm:$0xff] }
 0x3ea   :  { %6113 = vmatprep.subr.mxu1 %v6472_v31  ;;  %6148 = vmatprep.subr.mxu0 %v6472_v31  ;;  %v583_v62 = vadd.f32 %v4683_v60, %v9116_v18  ;;  %v8550_v40 = vld [vmem:[%s9068_s7 + $0x8] ss:$0 sm:$0xff] }
 0x3eb   :  { %6114 = vmatpush3.msra.mxu1 %v8290_v34  ;;  %6149 = vmatpush3.msra.mxu0 %v8295_v26 }
 0x3ec   :  { %6115 = vmatprep.subr.mxu1 %v6472_v31  ;;  %6150 = vmatprep.subr.mxu0 %v6472_v31 }
 0x3ed   :  { %6116 = vmatpush3.msra.mxu1 %v8304_v19  ;;  %6117 = vmatprep.mubr.msk.f32.mxu1 %vm6473_vm2, %v6472_v31  ;;  %v4688_v19 = vld [vmem:[%s9068_s7 + $0x5] ss:$0 sm:$0xff] }
 0x3ee   :  { %6151 = vmatpush3.msra.mxu0 %v8311_v27  ;;  %6152 = vmatprep.mubr.msk.f32.mxu0 %vm6473_vm2, %v6472_v31  ;;  %v1076_v27 = vmul.f32 0.17677669, %v583_v62  ;;  %v1245_v3 = vadd.f32 %v4688_v19, %v8369_v49 }
 0x3ef   :  { %6118 = vmatmul.mubr.f32.vlgmr.msra.gmra.mxu1 %v7859_v50  ;;  %6153 = vmatmul.mubr.f32.vlgmr.msra.gmra.mxu0 %v7859_v50  ;;  %v4685_v50 = vld [vmem:[%s9068_s7 + $0x2] ss:$0 sm:$0xff] }
 0x3f0   :  { %6155 = vmatprep.subr.mxu1 %v6472_v31  ;;  %6157 = vmatprep.mubr.msk.f32.mxu1 %vm6473_vm2, %v6472_v31  ;;  %v723_v23 = vadd.f32 %v4685_v50, %v9118_v22  ;;  %v1003_v24 = vadd.f32 %v4685_v50, %v9122_v21  ;;  %v4697_v22 = vld [vmem:[%s9066_s5 + $0x2] ss:$0 sm:$0xff] }
 0x3f1   :  { %6156 = vmatpush3.xpose.msk.msra.mxu1 %vm2300_vm3, %v1175_v0  ;;  %6195 = vmatprep.subr.mxu0 %v6472_v31  ;;  %v4695_v0 = vld [vmem:[%s9066_s5] ss:$0 sm:$0xff] }
 0x3f2   :  { %6160 = vmatprep.subr.mxu1 %v6472_v31  ;;  %6197 = vmatprep.mubr.msk.f32.mxu0 %vm6473_vm2, %v6472_v31  ;;  %v1078_v39 = vmul.f32 0.17677669, %v723_v23  ;;  %v1082_v35 = vmul.f32 0.17677669, %v1003_v24 }
 0x3f4   :  { %6158 = vmatmul.mubr.msk.f32.vlgmr.msra.gmra.mxu1 %vm2300_vm3, %v1076_v27 }
 0x3f5   :  { %6161 = vmatpush3.xpose.msk.msra.mxu1 %vm2300_vm3, %v1245_v3  ;;  %6162 = vmatprep.mubr.msk.f32.mxu1 %vm6473_vm2, %v6472_v31 }
 0x3f6   :  { %6165 = vmatprep.subr.mxu1 %v6472_v31 }
 0x3f8   :  { %6163 = vmatmul.mubr.msk.f32.vlgmr.msra.gmra.mxu1 %vm2300_vm3, %v1077_v5 }
 0x3f9   :  { %6166 = vmatpush3.xpose.msk.msra.mxu1 %vm2300_vm3, %v1315_v28  ;;  %6167 = vmatprep.mubr.msk.f32.mxu1 %vm6473_vm2, %v6472_v31 }
 0x3fa   :  { %6170 = vmatprep.subr.mxu1 %v6472_v31 }
 0x3fc   :  { %6168 = vmatmul.mubr.msk.f32.vlgmr.msra.gmra.mxu1 %vm2300_vm3, %v1078_v39  ;;  %v4698_v39 = vld [vmem:[%s9066_s5 + $0x3] ss:$0 sm:$0xff] }
 0x3fd   :  { %6171 = vmatpush3.xpose.msk.msra.mxu1 %vm2300_vm3, %v1385_v44  ;;  %6172 = vmatprep.mubr.msk.f32.mxu1 %vm6473_vm2, %v6472_v31 }
 0x3fe   :  { %6175 = vmatprep.subr.mxu1 %v6472_v31 }
 0x400   :  { %6173 = vmatmul.mubr.msk.f32.vlgmr.msra.gmra.mxu1 %vm2300_vm3, %v1079_v45 }
 0x401   :  { %6177 = vmatprep.mubr.msk.f32.mxu1 %vm6473_vm2, %v6472_v31 }
 0x405   :  { %v1454_v8 = vpop.f32.mrf.mxu1  ;;  %v1524_v9 = vpop.f32.mrf.mxu0 }
 0x406   :  { %v1455_v10 = vadd.f32 %v4687_v61, %v1454_v8  ;;  %v1525_v16 = vadd.f32 %v4688_v19, %v1524_v9 }
 0x407   :  { %v5769_v11 = vpop.f32.mrf.mxu1  ;;  %v5804_v12 = vpop.f32.mrf.mxu0 }
 0x408   :  { %6176 = vmatpush3.xpose.msk.msra.mxu1 %vm2300_vm3, %v1455_v10  ;;  %v4700_v11 = vld [vmem:[%s9066_s5 + $0x5] ss:$0 sm:$0xff] }
 0x409   :  { %6180 = vmatprep.subr.mxu1 %v6472_v31 }
 0x40b   :  { %6178 = vmatmul.mubr.msk.f32.vlgmr.msra.gmra.mxu1 %vm2300_vm3, %v1080_v13 }
 0x40c   :  { %6181 = vmatpush3.xpose.msk.msra.mxu1 %vm2300_vm3, %v1525_v16  ;;  %6182 = vmatprep.mubr.msk.f32.mxu1 %vm6473_vm2, %v6472_v31 }
 0x40d   :  { %6185 = vmatprep.subr.mxu1 %v6472_v31 }
 0x40f   :  { %6183 = vmatmul.mubr.msk.f32.vlgmr.msra.gmra.mxu1 %vm2300_vm3, %v1081_v17  ;;  %v4701_v17 = vld [vmem:[%s9066_s5 + $0x6] ss:$0 sm:$0xff] }
 0x410   :  { %6187 = vmatprep.mubr.msk.f32.mxu1 %vm6473_vm2, %v6472_v31 }
 0x427   :  { %v1594_v29 = vpop.f32.mrf.mxu1  ;;  %v1664_v30 = vpop.f32.mrf.mxu0 }
 0x428   :  { %v1595_v32 = vadd.f32 %v4689_v4, %v1594_v29  ;;  %v1665_v46 = vadd.f32 %v4690_v38, %v1664_v30  ;;  %v4702_v30 = vld [vmem:[%s9066_s5 + $0x7] ss:$0 sm:$0xff] }
 0x429   :  { %v5839_v20 = vpop.f32.mrf.mxu1  ;;  %v5874_v33 = vpop.f32.mrf.mxu0 }
 0x42a   :  { %6186 = vmatpush3.xpose.msk.msra.mxu1 %vm2300_vm3, %v1595_v32 }
 0x42b   :  { %6190 = vmatprep.subr.mxu1 %v6472_v31 }
 0x42d   :  { %6188 = vmatmul.mubr.msk.f32.vlgmr.msra.gmra.mxu1 %vm2300_vm3, %v1082_v35 }
 0x42e   :  { %6191 = vmatpush3.xpose.msk.msra.mxu1 %vm2300_vm3, %v1665_v46  ;;  %6192 = vmatprep.mubr.msk.f32.mxu1 %vm6473_vm2, %v6472_v31 }
 0x42f   :  { %6200 = vmatprep.subr.mxu1 %v6472_v31 }
 0x431   :  { %6193 = vmatmul.mubr.msk.f32.vlgmr.msra.gmra.mxu1 %vm2300_vm3, %v1083_v47 }
 0x432   :  { %6202 = vmatprep.mubr.msk.f32.mxu1 %vm6473_vm2, %v6472_v31 }
 0x449   :  { %v1758_v34 = vpop.f32.mrf.mxu1  ;;  %v1828_v26 = vpop.f32.mrf.mxu0 }
 0x44a   :  { %v1759_v48 = vadd.f32 %v8550_v40, %v1758_v34  ;;  %v1829_v49 = vadd.f32 %v8555_v41, %v1828_v26 }
 0x44b   :  { %v5909_v51 = vpop.f32.mrf.mxu1  ;;  %v5944_v52 = vpop.f32.mrf.mxu0 }
 0x44c   :  { %6196 = vmatpush3.msra.mxu0 %v1759_v48  ;;  %6201 = vmatpush3.msra.mxu1 %v1829_v49 }
 0x44d   :  { %6205 = vmatprep.subr.mxu0 %v6472_v31  ;;  %6210 = vmatprep.subr.mxu1 %v6472_v31 }
 0x46b   :  { %v8561_v53 = vpop.f32.mrf.mxu1  ;;  %v8563_v54 = vpop.f32.mrf.mxu0 }
 0x46d   :  { %v5979_v55 = vpop.f32.mrf.mxu1  ;;  %v6014_v56 = vpop.f32.mrf.mxu0 }
 0x48d   :  { %v8565_v57 = vpop.f32.mrf.mxu1  ;;  %v8567_v58 = vpop.f32.mrf.mxu0 }
 0x48f   :  { %v6049_v59 = vpop.f32.mrf.mxu1  ;;  %v6084_v60 = vpop.f32.mrf.mxu0 }
 0x4af   :  { %v8569_v61 = vpop.f32.mrf.mxu1  ;;  %v8571_v18 = vpop.f32.mrf.mxu0 }
 0x4b1   :  { %v6119_v62 = vpop.f32.mrf.mxu1  ;;  %v6154_v63 = vpop.f32.mrf.mxu0 }
 0x4b4   :  { %v2373_v19 = vpop.f32.mrf.mxu1 }
 0x4b5   :  { %v2374_v27 = vadd.f32 %v4695_v0, %v2373_v19 }
 0x4b6   :  { %v6159_v1 = vpop.f32.mrf.mxu1 }
 0x4b7   :  { %v2910_v50 = vsel %vm2909_vm4, %v2374_v27, -inf }
 0x4b8   :  { %2911 = vmax.xlane.f32.xlu1 %v2910_v50  ;;  %v2449_v3 = vpop.f32.mrf.mxu1 }
 0x4b9   :  { %v2450_v4 = vadd.f32 %v4696_v2, %v2449_v3 }
 0x4ba   :  { %v6164_v5 = vpop.f32.mrf.mxu1 }
 0x4bb   :  { %v2913_v23 = vsel %vm2909_vm4, %v2450_v4, -inf }
 0x4bc   :  { %2914 = vmax.xlane.f32.xlu1 %v2913_v23  ;;  %v2525_v25 = vpop.f32.mrf.mxu1 }
 0x4bd   :  { %v2526_v28 = vadd.f32 %v4697_v22, %v2525_v25 }
 0x4be   :  { %v6169_v38 = vpop.f32.mrf.mxu1 }
 0x4bf   :  { %v2916_v42 = vsel %vm2909_vm4, %v2526_v28, -inf }
 0x4c0   :  { %2917 = vmax.xlane.f32.xlu1 %v2916_v42  ;;  %v2601_v43 = vpop.f32.mrf.mxu1 }
 0x4c1   :  { %v2602_v44 = vadd.f32 %v4698_v39, %v2601_v43 }
 0x4c2   :  { %v6174_v45 = vpop.f32.mrf.mxu1 }
 0x4c3   :  { %v2919_v6 = vsel %vm2909_vm4, %v2602_v44, -inf }
 0x4c4   :  { %2920 = vmax.xlane.f32.xlu1 %v2919_v6 }
 0x4cb   :  { %v2677_v8 = vpop.f32.mrf.mxu1 }
 0x4cc   :  { %v2678_v9 = vadd.f32 %v4699_v7, %v2677_v8 }
 0x4cd   :  { %v6179_v10 = vpop.f32.mrf.mxu1 }
 0x4ce   :  { %v2922_v12 = vsel %vm2909_vm4, %v2678_v9, -inf }
 0x4cf   :  { %2923 = vmax.xlane.f32.xlu1 %v2922_v12  ;;  %v2753_v13 = vpop.f32.mrf.mxu1 }
 0x4d0   :  { %v2754_v14 = vadd.f32 %v4700_v11, %v2753_v13 }
 0x4d1   :  { %v6184_v15 = vpop.f32.mrf.mxu1 }
 0x4d2   :  { %v2925_v16 = vsel %vm2909_vm4, %v2754_v14, -inf }
 0x4d3   :  { %2926 = vmax.xlane.f32.xlu1 %v2925_v16  ;;  %v4693_v16 = vld [vmem:[%s9068_s7 + $0xa] ss:$0 sm:$0xff] }
 0x4ed   :  { %v2829_v21 = vpop.f32.mrf.mxu1 }
 0x4ee   :  { %v2830_v24 = vadd.f32 %v4701_v17, %v2829_v21 }
 0x4ef   :  { %v6189_v29 = vpop.f32.mrf.mxu1 }
 0x4f0   :  { %v2928_v32 = vsel %vm2909_vm4, %v2830_v24, -inf  ;;  %v4694_v29 = vld [vmem:[%s9068_s7 + $0xb] ss:$0 sm:$0xff] }
 0x4f1   :  { %2929 = vmax.xlane.f32.xlu1 %v2928_v32  ;;  %v2905_v20 = vpop.f32.mrf.mxu1 }
 0x4f2   :  { %v2906_v33 = vadd.f32 %v4702_v30, %v2905_v20  ;;  %v1969_v20 = vadd.f32 %v4694_v29, %v8563_v54 }
 0x4f3   :  { %v6194_v35 = vpop.f32.mrf.mxu1 }
 0x4f4   :  { %v2931_v36 = vsel %vm2909_vm4, %v2906_v33, -inf }
 0x4f5   :  { %2932 = vmax.xlane.f32.xlu0 %v2931_v36  ;;  %v2039_v36 = vadd.f32 %v8550_v40, %v8565_v57 }
 0x541   :  { %v2912_v37 = vpop.xlane.xlu1 %2911 }
 0x542   :  { %v2934_v46 = vsub.f32 %v2374_v27, %v2912_v37 }
 0x544   :  { %v2942_v47 = vmul.f32 1.442695, %v2934_v46 }
 0x545   :  { %v2915_v34 = vpop.xlane.xlu1 %2914 }
 0x546   :  { %6352 = vpow2.f32 %v2942_v47  ;;  %v2935_v26 = vsub.f32 %v2450_v4, %v2915_v34  ;;  %v2109_v47 = vadd.f32 %v8555_v41, %v8567_v58  ;;  %v2179_v34 = vadd.f32 %v4693_v16, %v8569_v61 }
 0x547   :  { %v2249_v58 = vadd.f32 %v4694_v29, %v8571_v18  ;;  %v8675_v18 = vld [vmem:[%s9069_s8 + $0x10] sm:$0xff] }
 0x548   :  { %v2944_v48 = vmul.f32 1.442695, %v2935_v26 }
 0x549   :  { %v2918_v49 = vpop.xlane.xlu1 %2917 }
 0x54a   :  { %6354 = vpow2.f32 %v2944_v48  ;;  %v2936_v51 = vsub.f32 %v2526_v28, %v2918_v49 }
 0x54c   :  { %v2946_v52 = vmul.f32 1.442695, %v2936_v51 }
 0x54d   :  { %v2921_v55 = vpop.xlane.xlu1 %2920 }
 0x54e   :  { %6356 = vpow2.f32 %v2946_v52  ;;  %v2937_v56 = vsub.f32 %v2602_v44, %v2921_v55  ;;  %v8669_v52 = vld [vmem:[%s9069_s8 + $0x18] sm:$0xff] }
 0x550   :  { %v2948_v59 = vmul.f32 1.442695, %v2937_v56 }
 0x552   :  { %6358 = vpow2.f32 %v2948_v59  ;;  %v8685_v59 = vld [vmem:[%s9069_s8 + $0x8] sm:$0xff] }
 0x553   :  { %v6353_v60 = vpop.eup %6352 }
 0x554   :  { %v2958_v62 = vsel %vm2909_vm4, %v6353_v60, 0.0 }
 0x555   :  { %2959 = vadd.xlane.f32.xlu1 %v2958_v62  ;;  %v410_v62 = vld [vmem:[%s9069_s8] sm:$0xff] }
 0x557   :  { %v6355_v63 = vpop.eup %6354 }
 0x558   :  { %v2961_v0 = vsel %vm2909_vm4, %v6355_v63, 0.0  ;;  %v2924_v19 = vpop.xlane.xlu1 %2923 }
 0x559   :  { %2962 = vadd.xlane.f32.xlu0 %v2961_v0  ;;  %v2938_v27 = vsub.f32 %v2678_v9, %v2924_v19  ;;  %v415_v0 = vld [vmem:[%s9069_s8 + $0x28] sm:$0xff]  ;;  %v414_v19 = vld [vmem:[%s9069_s8 + $0x20] sm:$0xff] }
 0x55b   :  { %v6357_v1 = vpop.eup %6356  ;;  %v2950_v2 = vmul.f32 1.442695, %v2938_v27  ;;  %v421_v27 = vld [vmem:[%s9069_s8 + $0x58] sm:$0xff] }
 0x55c   :  { %v2964_v50 = vsel %vm2909_vm4, %v6357_v1, 0.0  ;;  %v2927_v3 = vpop.xlane.xlu1 %2926 }
 0x55d   :  { %2965 = vadd.xlane.f32.xlu1 %v2964_v50  ;;  %6360 = vpow2.f32 %v2950_v2  ;;  %v2939_v4 = vsub.f32 %v2754_v14, %v2927_v3  ;;  %v420_v2 = vld [vmem:[%s9069_s8 + $0x50] sm:$0xff]  ;;  %v419_v3 = vld [vmem:[%s9069_s8 + $0x48] sm:$0xff] }
 0x55f   :  { %v6359_v5 = vpop.eup %6358  ;;  %v2952_v22 = vmul.f32 1.442695, %v2939_v4  ;;  %v425_v4 = vld [vmem:[%s9069_s8 + $0x78] sm:$0xff] }
 0x560   :  { %v2967_v23 = vsel %vm2909_vm4, %v6359_v5, 0.0 }
 0x561   :  { %2968 = vadd.xlane.f32.xlu0 %v2967_v23  ;;  %6362 = vpow2.f32 %v2952_v22  ;;  %v418_v22 = vld [vmem:[%s9069_s8 + $0x40] sm:$0xff]  ;;  %v424_v23 = vld [vmem:[%s9069_s8 + $0x70] sm:$0xff] }
 0x56a   :  { %v8609_v25 = vpop.eup %6360 }
 0x56b   :  { %v2970_v28 = vsel %vm2909_vm4, %v8609_v25, 0.0 }
 0x56c   :  { %2971 = vadd.xlane.f32.xlu1 %v2970_v28  ;;  %v423_v28 = vld [vmem:[%s9069_s8 + $0x68] sm:$0xff] }
 0x56e   :  { %v8613_v38 = vpop.eup %6362 }
 0x56f   :  { %v2973_v39 = vsel %vm2909_vm4, %v8613_v38, 0.0 }
 0x570   :  { %2974 = vadd.xlane.f32.xlu0 %v2973_v39  ;;  %v422_v39 = vld [vmem:[%s9069_s8 + $0x60] sm:$0xff] }
 0x57a   :  { %v2930_v42 = vpop.xlane.xlu1 %2929 }
 0x57b   :  { %v2940_v43 = vsub.f32 %v2830_v24, %v2930_v42  ;;  %v1899_v24 = vadd.f32 %v4693_v16, %v8561_v53 }
 0x57d   :  { %v2954_v44 = vmul.f32 1.442695, %v2940_v43 }
 0x57e   :  { %v2933_v45 = vpop.xlane.xlu0 %2932 }
 0x57f   :  { %6364 = vpow2.f32 %v2954_v44  ;;  %v2941_v6 = vsub.f32 %v2906_v33, %v2933_v45 }
 0x581   :  { %v2956_v7 = vmul.f32 1.442695, %v2941_v6 }
 0x583   :  { %6366 = vpow2.f32 %v2956_v7 }
 0x58c   :  { %v8617_v8 = vpop.eup %6364 }
 0x58d   :  { %v2976_v9 = vsel %vm2909_vm4, %v8617_v8, 0.0 }
 0x58e   :  { %2977 = vadd.xlane.f32.xlu1 %v2976_v9 }
 0x590   :  { %v8621_v10 = vpop.eup %6366 }
 0x591   :  { %v2979_v11 = vsel %vm2909_vm4, %v8621_v10, 0.0 }
 0x592   :  { %2980 = vadd.xlane.f32.xlu0 %v2979_v11 }
 0x5de   :  { %v2960_v12 = vpop.xlane.xlu1 %2959 }
 0x5df   :  { %6368 = vrcp.f32 %v2960_v12 }
 0x5e2   :  { %v2963_v13 = vpop.xlane.xlu0 %2962 }
 0x5e3   :  { %6370 = vrcp.f32 %v2963_v13 }
 0x5e6   :  { %v2966_v14 = vpop.xlane.xlu1 %2965 }
 0x5e7   :  { %6372 = vrcp.f32 %v2966_v14 }
 0x5ea   :  { %v2969_v15 = vpop.xlane.xlu0 %2968 }
 0x5eb   :  { %6374 = vrcp.f32 %v2969_v15  ;;  %v9124_v15 = vlaneseq }
 0x5ec   :  { %v6369_v17 = vpop.eup %6368 }
 0x5ed   :  { %v2983_v21 = vmul.f32 %v6369_v17, %v6353_v60  ;;  %v417_v60 = vld [vmem:[%s9069_s8 + $0x38] sm:$0xff]  ;;  %v8785_v16 = vshrl.u32 %v9124_v15, 7 }
 0x5ee   :  { %v430_v15 = vld [vmem:[%s9071_s10 + $0x18] sm:$0xff] }
 0x5ef   :  { %6198 = vmatmul.mubr.msk.f32.vlgmr.msra.gmra.mxu0 %vm2909_vm4, %v2983_v21 }
 0x5f0   :  { %v6371_v30 = vpop.eup %6370  ;;  %6206 = vmatpush3.msra.mxu0 %v1899_v24  ;;  %6207 = vmatprep.mubr.msk.f32.mxu0 %vm6473_vm2, %v6472_v31  ;;  %v4174_v24 = vsub.s32 0, %v8785_v16 }
 0x5f1   :  { %v2985_v32 = vmul.f32 %v6371_v30, %v6355_v63  ;;  %6215 = vmatprep.subr.mxu0 %v6472_v31  ;;  %v416_v63 = vld [vmem:[%s9069_s8 + $0x30] sm:$0xff]  ;;  %v8791_v30 = vld [vmem:[%s9070_s9] sm:$0x3f] }
 0x5f3   :  { %6203 = vmatmul.mubr.msk.f32.vlgmr.msra.gmra.mxu1 %vm2909_vm4, %v2985_v32 }
 0x5f4   :  { %v6373_v33 = vpop.eup %6372  ;;  %6211 = vmatpush3.msra.mxu1 %v1969_v20  ;;  %6212 = vmatprep.mubr.msk.f32.mxu1 %vm6473_vm2, %v6472_v31 }
 0x5f5   :  { %v2987_v53 = vmul.f32 %v6373_v33, %v6357_v1  ;;  %6220 = vmatprep.subr.mxu1 %v6472_v31  ;;  %v2972_v35 = vpop.xlane.xlu1 %2971 }
 0x5f6   :  { %6376 = vrcp.f32 %v2972_v35 }
 0x5f7   :  { %6208 = vmatmul.mubr.msk.f32.vlgmr.msra.gmra.mxu0 %vm2909_vm4, %v2987_v53  ;;  %v4175_v53 = vrot.slane %v8791_v30, %v4174_v24 }
 0x5f8   :  { %v6375_v37 = vpop.eup %6374  ;;  %6216 = vmatpush3.msra.mxu0 %v2039_v36  ;;  %6217 = vmatprep.mubr.msk.f32.mxu0 %vm6473_vm2, %v6472_v31 }
 0x5f9   :  { %v2989_v54 = vmul.f32 %v6375_v37, %v6359_v5  ;;  %v2975_v46 = vpop.xlane.xlu0 %2974  ;;  %6225 = vmatprep.subr.mxu0 %v6472_v31 }
 0x5fa   :  { %6378 = vrcp.f32 %v2975_v46  ;;  %v6404_v46 = vld [vmem:[#allocation6] sm:$0xff] }
 0x5fb   :  { %6213 = vmatmul.mubr.msk.f32.vlgmr.msra.gmra.mxu1 %vm2909_vm4, %v2989_v54 }
 0x5fc   :  { %6221 = vmatpush3.msra.mxu1 %v2109_v47  ;;  %6222 = vmatprep.mubr.msk.f32.mxu1 %vm6473_vm2, %v6472_v31 }
 0x5fd   :  { %6230 = vmatprep.subr.mxu1 %v6472_v31 }
 0x603   :  { %v6377_v40 = vpop.eup %6376 }
 0x604   :  { %v2991_v57 = vmul.f32 %v6377_v40, %v8609_v25 }
 0x606   :  { %6218 = vmatmul.mubr.msk.f32.vlgmr.msra.gmra.mxu0 %vm2909_vm4, %v2991_v57 }
 0x607   :  { %v6379_v26 = vpop.eup %6378  ;;  %6226 = vmatpush3.msra.mxu0 %v2179_v34  ;;  %6227 = vmatprep.mubr.msk.f32.mxu0 %vm6473_vm2, %v6472_v31 }
 0x608   :  { %v2993_v41 = vmul.f32 %v6379_v26, %v8613_v38  ;;  %6235 = vmatprep.subr.mxu0 %v6472_v31 }
 0x60a   :  { %6223 = vmatmul.mubr.msk.f32.vlgmr.msra.gmra.mxu1 %vm2909_vm4, %v2993_v41 }
 0x60b   :  { %6231 = vmatpush3.msra.mxu1 %v2249_v58  ;;  %6232 = vmatprep.mubr.msk.f32.mxu1 %vm6473_vm2, %v6472_v31 }
 0x60c   :  { %6246 = vmatprep.subr.mxu1 %v6472_v31 }
 0x617   :  { %v2978_v61 = vpop.xlane.xlu1 %2977 }
 0x618   :  { %6380 = vrcp.f32 %v2978_v61 }
 0x61b   :  { %v2981_v48 = vpop.xlane.xlu0 %2980 }
 0x61c   :  { %6382 = vrcp.f32 %v2981_v48 }
 0x625   :  { %v6381_v49 = vpop.eup %6380 }
 0x626   :  { %v2995_v51 = vmul.f32 %v6381_v49, %v8617_v8 }
 0x628   :  { %6228 = vmatmul.mubr.msk.f32.vlgmr.msra.gmra.mxu0 %vm2909_vm4, %v2995_v51 }
 0x629   :  { %v6383_v55 = vpop.eup %6382  ;;  %6236 = vmatpush3.msra.mxu0 %v8669_v52  ;;  %6243 = vmatprep.mubr.msk.f32.mxu0 %vm6473_vm2, %v6472_v31 }
 0x62a   :  { %v2997_v56 = vmul.f32 %v6383_v55, %v8621_v10  ;;  %6237 = vmatprep.subr.mxu0 %v6472_v31  ;;  %v6405_v55 = vld [vmem:[#allocation6 + $0x8] sm:$0xff] }
 0x62b   :  { %6238 = vmatpush3.msra.mxu0 %v8675_v18 }
 0x62c   :  { %6233 = vmatmul.mubr.msk.f32.vlgmr.msra.gmra.mxu1 %vm2909_vm4, %v2997_v56  ;;  %6239 = vmatprep.subr.mxu0 %v6472_v31 }
 0x62d   :  { %6240 = vmatpush3.msra.mxu0 %v8685_v59  ;;  %6247 = vmatpush3.msra.mxu1 %v417_v60 }
 0x62e   :  { %6241 = vmatprep.subr.mxu0 %v6472_v31  ;;  %6248 = vmatprep.subr.mxu1 %v6472_v31 }
 0x62f   :  { %6254 = vmatprep.mubr.msk.f32.mxu1 %vm6473_vm2, %v6472_v31  ;;  %6242 = vmatpush3.msra.mxu0 %v410_v62 }
 0x630   :  { %6249 = vmatpush3.msra.mxu1 %v416_v63  ;;  %6257 = vmatprep.subr.mxu0 %v6472_v31 }
 0x631   :  { %6250 = vmatprep.subr.mxu1 %v6472_v31 }
 0x632   :  { %6251 = vmatpush3.msra.mxu1 %v415_v0 }
 0x633   :  { %6252 = vmatprep.subr.mxu1 %v6472_v31 }
 0x634   :  { %6253 = vmatpush3.msra.mxu1 %v414_v19 }
 0x635   :  { %6268 = vmatprep.subr.mxu1 %v6472_v31 }
 0x6af   :  { %v3067_v1 = vpop.f32.mrf.mxu0 }
 0x6b0   :  { %6244 = vmatmul.mubr.msk.f32.vlgmr.msra.gmra.mxu0 %vm2300_vm3, %v3067_v1  ;;  %v451_v1 = vld [vmem:[%s9071_s10 + $0xc0] sm:$0xff] }
 0x6b1   :  { %v6199_v50 = vpop.f32.mrf.mxu0  ;;  %6258 = vmatpush3.msra.mxu0 %v421_v27  ;;  %6265 = vmatprep.mubr.msk.f32.mxu0 %vm6473_vm2, %v6472_v31 }
 0x6b2   :  { %6259 = vmatprep.subr.mxu0 %v6472_v31 }
 0x6b3   :  { %v3140_v5 = vpop.f32.mrf.mxu1  ;;  %6260 = vmatpush3.msra.mxu0 %v420_v2 }
 0x6b4   :  { %6255 = vmatmul.mubr.msk.f32.vlgmr.msra.gmra.mxu1 %vm2300_vm3, %v3140_v5  ;;  %6261 = vmatprep.subr.mxu0 %v6472_v31  ;;  %v450_v5 = vld [vmem:[%s9071_s10 + $0xb8] sm:$0xff] }
 0x6b5   :  { %v6204_v25 = vpop.f32.mrf.mxu1  ;;  %6262 = vmatpush3.msra.mxu0 %v419_v3  ;;  %6269 = vmatpush3.msra.mxu1 %v425_v4 }
 0x6b6   :  { %6263 = vmatprep.subr.mxu0 %v6472_v31  ;;  %6270 = vmatprep.subr.mxu1 %v6472_v31  ;;  %v447_v25 = vld [vmem:[%s9071_s10 + $0xa0] sm:$0xff] }
 0x6b7   :  { %v3213_v38 = vpop.f32.mrf.mxu0  ;;  %6264 = vmatpush3.msra.mxu0 %v418_v22  ;;  %6271 = vmatpush3.msra.mxu1 %v424_v23 }
 0x6b8   :  { %6266 = vmatmul.mubr.msk.f32.vlgmr.msra.gmra.mxu0 %vm2300_vm3, %v3213_v38  ;;  %6272 = vmatprep.subr.mxu1 %v6472_v31  ;;  %v445_v38 = vld [vmem:[%s9071_s10 + $0x90] sm:$0xff] }
 0x6b9   :  { %v6209_v42 = vpop.f32.mrf.mxu0  ;;  %6273 = vmatpush3.msra.mxu1 %v423_v28  ;;  %6276 = vmatprep.mubr.msk.f32.mxu1 %vm6473_vm2, %v6472_v31 }
 0x6ba   :  { %6274 = vmatprep.subr.mxu1 %v6472_v31  ;;  %6279 = vmatprep.subr.mxu0 %v6472_v31  ;;  %v443_v42 = vld [vmem:[%s9071_s10 + $0x80] sm:$0xff] }
 0x6bb   :  { %v3286_v43 = vpop.f32.mrf.mxu1  ;;  %6275 = vmatpush3.msra.mxu1 %v422_v39  ;;  %6280 = vmatpush3.msra.mxu0 %v8669_v52 }
 0x6bc   :  { %6277 = vmatmul.mubr.msk.f32.vlgmr.msra.gmra.mxu1 %vm2300_vm3, %v3286_v43  ;;  %6281 = vmatprep.subr.mxu0 %v6472_v31  ;;  %v442_v43 = vld [vmem:[%s9071_s10 + $0x78] sm:$0xff] }
 0x6bd   :  { %v6214_v44 = vpop.f32.mrf.mxu1  ;;  %6282 = vmatpush3.msra.mxu0 %v8675_v18  ;;  %6290 = vmatprep.subr.mxu1 %v6472_v31 }
 0x6be   :  { %6283 = vmatprep.subr.mxu0 %v6472_v31  ;;  %6291 = vmatpush3.msra.mxu1 %v417_v60  ;;  %v457_v60 = vld [vmem:[%s9071_s10 + $0xf0] sm:$0xff] }
 0x6bf   :  { %6284 = vmatpush3.msra.mxu0 %v8685_v59  ;;  %6292 = vmatprep.subr.mxu1 %v6472_v31  ;;  %v458_v59 = vld [vmem:[%s9071_s10 + $0xf8] sm:$0xff]  ;;  %v441_v44 = vld [vmem:[%s9071_s10 + $0x70] sm:$0xff] }
 0x6c0   :  { %6285 = vmatprep.subr.mxu0 %v6472_v31  ;;  %6287 = vmatprep.mubr.msk.f32.mxu0 %vm6473_vm2, %v6472_v31 }
 0x6c1   :  { %6286 = vmatpush3.msra.mxu0 %v410_v62  ;;  %6293 = vmatpush3.msra.mxu1 %v416_v63  ;;  %v456_v62 = vld [vmem:[%s9071_s10 + $0xe8] sm:$0xff]  ;;  %v455_v63 = vld [vmem:[%s9071_s10 + $0xe0] sm:$0xff] }
 0x6c2   :  { %6294 = vmatprep.subr.mxu1 %v6472_v31  ;;  %6298 = vmatprep.mubr.msk.f32.mxu1 %vm6473_vm2, %v6472_v31 }
 0x6c3   :  { %6295 = vmatpush3.msra.mxu1 %v415_v0  ;;  %6301 = vmatprep.subr.mxu0 %v6472_v31  ;;  %v454_v0 = vld [vmem:[%s9071_s10 + $0xd8] sm:$0xff] }
 0x6c4   :  { %6296 = vmatprep.subr.mxu1 %v6472_v31 }
 0x6c5   :  { %6297 = vmatpush3.msra.mxu1 %v414_v19  ;;  %v453_v19 = vld [vmem:[%s9071_s10 + $0xd0] sm:$0xff] }
 0x6c6   :  { %v3359_v45 = vpop.f32.mrf.mxu0  ;;  %6312 = vmatprep.subr.mxu1 %v6472_v31 }
 0x6c7   :  { %6288 = vmatmul.mubr.msk.f32.vlgmr.msra.gmra.mxu0 %vm2300_vm3, %v3359_v45  ;;  %v440_v45 = vld [vmem:[%s9071_s10 + $0x68] sm:$0xff] }
 0x6c8   :  { %v6219_v6 = vpop.f32.mrf.mxu0  ;;  %6302 = vmatpush3.msra.mxu0 %v421_v27  ;;  %6309 = vmatprep.mubr.msk.f32.mxu0 %vm6473_vm2, %v6472_v31  ;;  %v452_v27 = vld [vmem:[%s9071_s10 + $0xc8] sm:$0xff] }
 0x6c9   :  { %6303 = vmatprep.subr.mxu0 %v6472_v31  ;;  %v439_v6 = vld [vmem:[%s9071_s10 + $0x60] sm:$0xff] }
 0x6ca   :  { %v3432_v7 = vpop.f32.mrf.mxu1  ;;  %6304 = vmatpush3.msra.mxu0 %v420_v2 }
 0x6cb   :  { %6299 = vmatmul.mubr.msk.f32.vlgmr.msra.gmra.mxu1 %vm2300_vm3, %v3432_v7  ;;  %6305 = vmatprep.subr.mxu0 %v6472_v31  ;;  %v438_v7 = vld [vmem:[%s9071_s10 + $0x58] sm:$0xff] }
 0x6cc   :  { %v6224_v8 = vpop.f32.mrf.mxu1  ;;  %6306 = vmatpush3.msra.mxu0 %v419_v3  ;;  %6313 = vmatpush3.msra.mxu1 %v425_v4 }
 0x6cd   :  { %6307 = vmatprep.subr.mxu0 %v6472_v31  ;;  %6314 = vmatprep.subr.mxu1 %v6472_v31  ;;  %v437_v8 = vld [vmem:[%s9071_s10 + $0x50] sm:$0xff] }
 0x6ce   :  { %6308 = vmatpush3.msra.mxu0 %v418_v22  ;;  %6315 = vmatpush3.msra.mxu1 %v424_v23  ;;  %v449_v22 = vld [vmem:[%s9071_s10 + $0xb0] sm:$0xff]  ;;  %v448_v23 = vld [vmem:[%s9071_s10 + $0xa8] sm:$0xff] }
 0x6cf   :  { %6316 = vmatprep.subr.mxu1 %v6472_v31  ;;  %6320 = vmatprep.mubr.msk.f32.mxu1 %vm6473_vm2, %v6472_v31 }
 0x6d0   :  { %6317 = vmatpush3.msra.mxu1 %v423_v28  ;;  %4225 = vmatprep.subr.mxu0 %v458_v59  ;;  %v446_v28 = vld [vmem:[%s9071_s10 + $0x98] sm:$0xff]  ;;  %v490_v59 = vld [vmem:[%s9073_s12 + $0xf0] sm:$0xff] }
 0x6d1   :  { %6318 = vmatprep.subr.mxu1 %v6472_v31 }
 0x6d2   :  { %6319 = vmatpush3.msra.mxu1 %v422_v39  ;;  %v444_v39 = vld [vmem:[%s9071_s10 + $0x88] sm:$0xff] }
 0x6e8   :  { %v3505_v9 = vpop.f32.mrf.mxu0 }
 0x6e9   :  { %6310 = vmatmul.mubr.msk.f32.vlgmr.msra.gmra.mxu0 %vm2300_vm3, %v3505_v9  ;;  %v436_v9 = vld [vmem:[%s9071_s10 + $0x48] sm:$0xff] }
 0x6ea   :  { %v6229_v10 = vpop.f32.mrf.mxu0  ;;  %4289 = vmatprep.mubr.f32.mxu0 %v6472_v31  ;;  %4226 = vmatpush1.msra.mxu0 %v457_v60  ;;  %v474_v60 = vld [vmem:[%s9073_s12 + $0x70] sm:$0xff] }
 0x6eb   :  { %4227 = vmatprep.subr.mxu0 %v456_v62  ;;  %v435_v10 = vld [vmem:[%s9071_s10 + $0x40] sm:$0xff]  ;;  %v489_v62 = vld [vmem:[%s9073_s12 + $0xe8] sm:$0xff] }
 0x6ec   :  { %v3578_v11 = vpop.f32.mrf.mxu1  ;;  %4228 = vmatpush1.msra.mxu0 %v455_v63  ;;  %v473_v63 = vld [vmem:[%s9073_s12 + $0x68] sm:$0xff] }
 0x6ed   :  { %6321 = vmatmul.mubr.msk.f32.vlgmr.msra.gmra.mxu1 %vm2300_vm3, %v3578_v11  ;;  %4229 = vmatprep.subr.mxu0 %v454_v0  ;;  %v434_v11 = vld [vmem:[%s9071_s10 + $0x38] sm:$0xff]  ;;  %v488_v0 = vld [vmem:[%s9073_s12 + $0xe0] sm:$0xff] }
 0x6ee   :  { %v6234_v12 = vpop.f32.mrf.mxu1  ;;  %4230 = vmatpush1.msra.mxu0 %v453_v19  ;;  %v472_v19 = vld [vmem:[%s9073_s12 + $0x60] sm:$0xff] }
 0x6ef   :  { %4231 = vmatprep.subr.mxu0 %v452_v27  ;;  %v433_v12 = vld [vmem:[%s9071_s10 + $0x30] sm:$0xff]  ;;  %v487_v27 = vld [vmem:[%s9073_s12 + $0xd8] sm:$0xff] }
 0x6f0   :  { %4232 = vmatpush1.msra.mxu0 %v451_v1  ;;  %v471_v1 = vld [vmem:[%s9073_s12 + $0x58] sm:$0xff] }
 0x6f1   :  { %4233 = vmatprep.subr.mxu0 %v450_v5  ;;  %v484_v5 = vld [vmem:[%s9073_s12 + $0xc0] sm:$0xff] }
 0x6f2   :  { %4234 = vmatpush1.msra.mxu0 %v449_v22  ;;  %v468_v22 = vld [vmem:[%s9073_s12 + $0x40] sm:$0xff] }
 0x6f3   :  { %4235 = vmatprep.subr.mxu0 %v448_v23  ;;  %v483_v23 = vld [vmem:[%s9073_s12 + $0xb8] sm:$0xff] }
 0x6f4   :  { %4236 = vmatpush1.msra.mxu0 %v447_v25  ;;  %v467_v25 = vld [vmem:[%s9073_s12 + $0x38] sm:$0xff] }
 0x6f5   :  { %4237 = vmatprep.subr.mxu0 %v446_v28  ;;  %v482_v28 = vld [vmem:[%s9073_s12 + $0xb0] sm:$0xff] }
 0x6f6   :  { %4238 = vmatpush1.msra.mxu0 %v445_v38  ;;  %v466_v38 = vld [vmem:[%s9073_s12 + $0x30] sm:$0xff] }
 0x6f7   :  { %4239 = vmatprep.subr.mxu0 %v444_v39  ;;  %v481_v39 = vld [vmem:[%s9073_s12 + $0xa8] sm:$0xff] }
 0x6f8   :  { %4240 = vmatpush1.msra.mxu0 %v443_v42  ;;  %v465_v42 = vld [vmem:[%s9073_s12 + $0x28] sm:$0xff] }
 0x6f9   :  { %4241 = vmatprep.subr.mxu0 %v442_v43  ;;  %v480_v43 = vld [vmem:[%s9073_s12 + $0xa0] sm:$0xff] }
 0x6fa   :  { %4242 = vmatpush1.msra.mxu0 %v441_v44  ;;  %v464_v44 = vld [vmem:[%s9073_s12 + $0x20] sm:$0xff] }
 0x6fb   :  { %4243 = vmatprep.subr.mxu0 %v440_v45  ;;  %v479_v45 = vld [vmem:[%s9073_s12 + $0x98] sm:$0xff] }
 0x6fc   :  { %4244 = vmatpush1.msra.mxu0 %v439_v6  ;;  %v463_v6 = vld [vmem:[%s9073_s12 + $0x18] sm:$0xff] }
 0x6fd   :  { %4245 = vmatprep.subr.mxu0 %v438_v7  ;;  %v478_v7 = vld [vmem:[%s9073_s12 + $0x90] sm:$0xff] }
 0x6fe   :  { %4246 = vmatpush1.msra.mxu0 %v437_v8  ;;  %v462_v8 = vld [vmem:[%s9073_s12 + $0x10] sm:$0xff] }
 0x6ff   :  { %4247 = vmatprep.subr.mxu0 %v436_v9  ;;  %v477_v9 = vld [vmem:[%s9073_s12 + $0x88] sm:$0xff] }
 0x700   :  { %4248 = vmatpush1.msra.mxu0 %v435_v10  ;;  %v461_v10 = vld [vmem:[%s9073_s12 + $0x8] sm:$0xff] }
 0x701   :  { %4249 = vmatprep.subr.mxu0 %v434_v11  ;;  %v476_v11 = vld [vmem:[%s9073_s12 + $0x80] sm:$0xff] }
 0x702   :  { %4250 = vmatpush1.msra.mxu0 %v433_v12  ;;  %v460_v12 = vld [vmem:[%s9073_s12] sm:$0xff] }
 0x770   :  { %v3651_v13 = vpop.f32.mrf.mxu0 }
 0x772   :  { %v6245_v14 = vpop.f32.mrf.mxu0 }
 0x773   :  { %v431_v14 = vld [vmem:[%s9071_s10 + $0x20] sm:$0xff] }
 0x774   :  { %v3724_v17 = vpop.f32.mrf.mxu1 }
 0x775   :  { %v4166_v32 = vadd.f32 %v3724_v17, %v3651_v13  ;;  %v432_v13 = vld [vmem:[%s9071_s10 + $0x28] sm:$0xff]  ;;  %v429_v17 = vld [vmem:[%s9071_s10 + $0x10] sm:$0xff] }
 0x776   :  { %v6256_v21 = vpop.f32.mrf.mxu1  ;;  %4251 = vmatprep.subr.mxu0 %v432_v13  ;;  %v459_v13 = vld [vmem:[%s9072_s11] sm:$0x3] }
 0x777   :  { %4252 = vmatpush1.msra.mxu0 %v431_v14  ;;  %v428_v21 = vld [vmem:[%s9071_s10 + $0x8] sm:$0xff]  ;;  %v4218_v14 = vrot.slane %v459_v13, %v4174_v24 }
 0x778   :  { %v3797_v29 = vpop.f32.mrf.mxu0  ;;  %4253 = vmatprep.subr.mxu0 %v430_v15 }
 0x779   :  { %v4167_v33 = vadd.f32 %v4166_v32, %v3797_v29  ;;  %v427_v29 = vld [vmem:[%s9071_s10] sm:$0xff]  ;;  %4254 = vmatpush1.msra.mxu0 %v429_v17 }
 0x77a   :  { %v6267_v20 = vpop.f32.mrf.mxu0  ;;  %4255 = vmatprep.subr.mxu0 %v428_v21 }
 0x77b   :  { %4256 = vmatpush1.msra.mxu0 %v427_v29 }
 0x77c   :  { %v3870_v35 = vpop.f32.mrf.mxu1  ;;  %6323 = vmatprep.subr.mxu0 %v6472_v31 }
 0x77d   :  { %v4168_v36 = vadd.f32 %v4167_v33, %v3870_v35 }
 0x77e   :  { %v6278_v37 = vpop.f32.mrf.mxu1 }
 0x77f   :  { %v4176_v54 = vadd.f32 %v4175_v53, %v4168_v36 }
 0x781   :  { %v4178_v47 = vadd.f32 %v6404_v46, %v4176_v54  ;;  %v4204_v54 = vsub.s32 1, %v8785_v16  ;;  %v4210_v46 = vsub.s32 2, %v8785_v16 }
 0x783   :  { %4180 = vadd.xlane.f32.xlu1 %v4178_v47  ;;  %v4222_v15 = vrot.slane %v459_v13, %v4204_v54 }
 0x787   :  { %v3943_v40 = vpop.f32.mrf.mxu0 }
 0x789   :  { %v6289_v57 = vpop.f32.mrf.mxu0 }
 0x78b   :  { %v4016_v34 = vpop.f32.mrf.mxu1 }
 0x78c   :  { %v4169_v58 = vadd.f32 %v4016_v34, %v3943_v40  ;;  %v4211_v34 = vrot.slane %v8791_v30, %v4210_v46 }
 0x78d   :  { %v6300_v26 = vpop.f32.mrf.mxu1 }
 0x7a9   :  { %v4089_v41 = vpop.f32.mrf.mxu0 }
 0x7aa   :  { %v4170_v48 = vadd.f32 %v4169_v58, %v4089_v41 }
 0x7ab   :  { %v6311_v61 = vpop.f32.mrf.mxu0 }
 0x7ad   :  { %v4162_v49 = vpop.f32.mrf.mxu1 }
 0x7ae   :  { %v4171_v51 = vadd.f32 %v4170_v48, %v4162_v49 }
 0x7af   :  { %v6322_v52 = vpop.f32.mrf.mxu1 }
 0x7b0   :  { %v4177_v18 = vadd.f32 %v4175_v53, %v4171_v51 }
 0x7b2   :  { %v8796_v56 = vadd.f32 %v6405_v55, %v4177_v18  ;;  %v491_v55 = vld [vmem:[%s9073_s12 + $0xf8] sm:$0xff] }
 0x7b3   :  { %5236 = vmatprep.subr.mxu1 %v491_v55 }
 0x7b4   :  { %4182 = vadd.xlane.f32.xlu0 %v8796_v56 }
 0x80c   :  { %v4181_v2 = vpop.xlane.xlu1 %4180 }
 0x80d   :  { %v4184_v50 = vmul.f32 0.0078125, %v4181_v2  ;;  %v486_v2 = vld [vmem:[%s9073_s12 + $0xd0] sm:$0xff] }
 0x80f   :  { %v8823_v3 = vsub.f32 %v4178_v47, %v4184_v50  ;;  %v4205_v47 = vrot.slane %v8791_v30, %v4204_v54  ;;  %v470_v50 = vld [vmem:[%s9073_s12 + $0x50] sm:$0xff] }
 0x811   :  { %v4188_v4 = vmul.f32 %v8823_v3, %v8823_v3 }
 0x813   :  { %4190 = vadd.xlane.f32.xlu1 %v4188_v4  ;;  %v469_v4 = vld [vmem:[%s9073_s12 + $0x48] sm:$0xff] }
 0x83d   :  { %v4183_v32 = vpop.xlane.xlu0 %4182 }
 0x83e   :  { %v4185_v20 = vmul.f32 0.0078125, %v4183_v32 }
 0x840   :  { %v4187_v33 = vsub.f32 %v8796_v56, %v4185_v20  ;;  %v475_v56 = vld [vmem:[%s9073_s12 + $0x78] sm:$0xff] }
 0x841   :  { %5237 = vmatpush3.msra.mxu1 %v475_v56 }
 0x842   :  { %v4189_v53 = vmul.f32 %v4187_v33, %v4187_v33  ;;  %5238 = vmatprep.subr.mxu1 %v490_v59 }
 0x843   :  { %5239 = vmatpush3.msra.mxu1 %v474_v60 }
 0x844   :  { %4192 = vadd.xlane.f32.xlu0 %v4189_v53  ;;  %5240 = vmatprep.subr.mxu1 %v489_v62 }
 0x845   :  { %5241 = vmatpush3.msra.mxu1 %v473_v63 }
 0x846   :  { %5242 = vmatprep.subr.mxu1 %v488_v0 }
 0x847   :  { %5243 = vmatpush3.msra.mxu1 %v472_v19 }
 0x848   :  { %5244 = vmatprep.subr.mxu1 %v487_v27 }
 0x849   :  { %5245 = vmatpush3.msra.mxu1 %v471_v1 }
 0x84a   :  { %5246 = vmatprep.subr.mxu1 %v486_v2 }
 0x84b   :  { %5247 = vmatpush3.msra.mxu1 %v470_v50 }
 0x89c   :  { %v4191_v35 = vpop.xlane.xlu1 %4190 }
 0x89d   :  { %v4194_v36 = vmul.f32 0.0078125, %v4191_v35 }
 0x89f   :  { %v4196_v37 = vadd.f32 1e-12, %v4194_v36 }
 0x8a1   :  { %6384 = vrsqrt.f32 %v4196_v37 }
 0x8ae   :  { %v6385_v40 = vpop.eup %6384 }
 0x8af   :  { %v4200_v57 = vmul.f32 %v6385_v40, %v8823_v3  ;;  %v485_v3 = vld [vmem:[%s9073_s12 + $0xc8] sm:$0xff] }
 0x8b0   :  { %5248 = vmatprep.subr.mxu1 %v485_v3 }
 0x8b1   :  { %v4206_v26 = vmul.f32 %v4205_v47, %v4200_v57  ;;  %5249 = vmatpush3.msra.mxu1 %v469_v4 }
 0x8b2   :  { %5250 = vmatprep.subr.mxu1 %v484_v5 }
 0x8b3   :  { %v8908_v41 = vadd.f32 %v4211_v34, %v4206_v26  ;;  %5251 = vmatpush3.msra.mxu1 %v468_v22 }
 0x8b4   :  { %5252 = vmatprep.subr.mxu1 %v483_v23 }
 0x8b5   :  { %4290 = vmatmul.mubr.f32.vlgmr.msra.gmra.mxu0 %v8908_v41  ;;  %5253 = vmatpush3.msra.mxu1 %v467_v25 }
 0x8b6   :  { %4295 = vmatprep.mubr.f32.mxu0 %v6472_v31  ;;  %5254 = vmatprep.subr.mxu1 %v482_v28 }
 0x8b7   :  { %5255 = vmatpush3.msra.mxu1 %v466_v38 }
 0x8b8   :  { %5256 = vmatprep.subr.mxu1 %v481_v39  ;;  %v4456_v39 = vld [vmem:[%s9065_s4 + $0x8] sm:$0xff] }
 0x8b9   :  { %5257 = vmatpush3.msra.mxu1 %v465_v42  ;;  %v4455_v42 = vld [vmem:[%s9065_s4] sm:$0xff]  ;;  %s6474_s4 = smov [#allocation2]  }
 0x8ba   :  { %5258 = vmatprep.subr.mxu1 %v480_v43  ;;  %v4459_v43 = vmul.u32 8, %v8785_v16  ;;  %s4637_s29 = sshll.u32 %s6474_s4, 4  ;;  %s4638_s29 = int_to_ptr.vmem [resolvable:$true] %s4637_s29 }
 0x8bb   :  { %5259 = vmatpush3.msra.mxu1 %v464_v44  ;;  %v4461_v44 = vadd.s32 1, %v8785_v16  ;;  %s6406_s30 = scalar_lea.vmem %s4638_s29, 256  ;;  %p6411_p1 = scmp.lt.s32.totalorder %s4638_s29, %s4638_s29 }
 0x8bc   :  { %5260 = vmatprep.subr.mxu1 %v479_v45  ;;  %v9125_v45 = vld [vmem:[#allocation9_spill] sm:$0xff]  ;;  %p6407_p0 = scmp.ne.s32.totalorder %s4638_s29, %s6406_s30  ;;  %p6412_p2 = scmp.lt.s32.totalorder %s6406_s30, %s6406_s30 }
 0x8bd   :  { %5261 = vmatpush3.msra.mxu1 %v463_v6  ;;  %vm4460_vm5 = vcmp.ge.s32.totalorder %v9125_v45, %v4459_v43  ;;  %v4462_v6 = vmul.u32 8, %v4461_v44 }
 0x8be   :  { %5262 = vmatprep.subr.mxu1 %v478_v7  ;;  %p6413_p3 = por %p6412_p2, %p6411_p1 }
 0x8bf   :  { %5263 = vmatpush3.msra.mxu1 %v462_v8  ;;  %vm4463_vm6 = vcmp.lt.s32.totalorder %v9125_v45, %v4462_v6  ;;  %v4340_v8 = vsub.s32 3, %v8785_v16 }
 0x8c0   :  { %5264 = vmatprep.subr.mxu1 %v477_v9  ;;  %vm4464_vm8 = vmand %vm4460_vm5, %vm4463_vm6  ;;  %p6414_p4 = pnand %p6413_p3, %p6407_p0 }
 0x8c1   :  { %5265 = vmatpush3.msra.mxu1 %v461_v10  ;;  %v4735_v7 = vsel %vm4464_vm8, 1.0, %v6472_v31  ;;  %v4341_v10 = vrot.slane %v8791_v30, %v4340_v8 }
 0x8c2   :  { %5266 = vmatprep.subr.mxu1 %v476_v11 }
 0x8c3   :  { %5267 = vmatpush3.msra.mxu1 %v460_v12 }
 0x8c4   :  { %6330 = vmatprep.subr.mxu1 %v6472_v31 }
 0x8cd   :  { %v4193_v58 = vpop.xlane.xlu0 %4192 }
 0x8ce   :  { %v4195_v61 = vmul.f32 0.0078125, %v4193_v58 }
 0x8d0   :  { %v4197_v48 = vadd.f32 1e-12, %v4195_v61 }
 0x8d2   :  { %6386 = vrsqrt.f32 %v4197_v48 }
 0x8df   :  { %v6387_v49 = vpop.eup %6386 }
 0x8e0   :  { %v4201_v51 = vmul.f32 %v6387_v49, %v4187_v33 }
 0x8e2   :  { %v4207_v52 = vmul.f32 %v4205_v47, %v4201_v51 }
 0x8e4   :  { %v8912_v18 = vadd.f32 %v4211_v34, %v4207_v52 }
 0x8e6   :  { %4296 = vmatmul.mubr.f32.gmra.mxu0 %v8912_v18 }
 0x8e7   :  { %6327 = vmatprep.mubr.msk.f32.mxu0 %vm6473_vm2, %v6472_v31 }
 0x975   :  { %v4291_v17 = vpop.f32.mrf.mxu0 }
 0x976   :  { %v4292_v21 = vadd.f32 %v4291_v17, %v4218_v14 }
 0x977   :  { %v4293_v29 = vpop.f32.mrf.mxu0 }
 0x978   :  { %v4302_v32 = vmul.f32 %v4292_v21, %v4292_v21  ;;  %v4294_v20 = vadd.f32 %v4293_v29, %v4222_v15 }
 0x97a   :  { %v4306_v33 = vmul.f32 %v4302_v32, %v4292_v21  ;;  %v4303_v53 = vmul.f32 %v4294_v20, %v4294_v20 }
 0x97c   :  { %v4310_v35 = vmul.f32 0.044715, %v4306_v33  ;;  %v4307_v36 = vmul.f32 %v4303_v53, %v4294_v20 }
 0x97e   :  { %v4314_v37 = vadd.f32 %v4310_v35, %v4292_v21  ;;  %v4311_v46 = vmul.f32 0.044715, %v4307_v36 }
 0x980   :  { %v4318_v47 = vmul.f32 0.7978846, %v4314_v37  ;;  %v4315_v40 = vadd.f32 %v4311_v46, %v4294_v20 }
 0x982   :  { %6388 = vtanh.f32 %v4318_v47  ;;  %v4319_v57 = vmul.f32 0.7978846, %v4315_v40 }
 0x984   :  { %6390 = vtanh.f32 %v4319_v57 }
 0x98f   :  { %v6389_v24 = vpop.eup %6388 }
 0x990   :  { %v4326_v34 = vadd.f32 1.0, %v6389_v24 }
 0x991   :  { %v6391_v26 = vpop.eup %6390 }
 0x992   :  { %v4327_v54 = vadd.f32 1.0, %v6391_v26  ;;  %v4330_v58 = vmul.f32 0.5, %v4326_v34  ;;  %v4443_v26 = vsub.s32 4, %v8785_v16 }
 0x994   :  { %v4331_v61 = vmul.f32 0.5, %v4327_v54  ;;  %v4334_v49 = vmul.f32 %v4330_v58, %v4292_v21  ;;  %v4449_v54 = vsub.s32 5, %v8785_v16  ;;  %v4444_v58 = vrot.slane %v8791_v30, %v4443_v26 }
 0x996   :  { %v4335_v48 = vmul.f32 %v4331_v61, %v4294_v20 }
 0x998   :  { %4406 = vmatprep.mubr.f32.mxu1 %v4335_v48 }
 0x999   :  { %4407 = vmatmul.mubr.f32.vlgmr.msra.gmra.mxu1 %v4334_v49  ;;  %v4450_v49 = vrot.slane %v8791_v30, %v4449_v54 }
 0x99a   :  { %6331 = vmatpush3.msra.mxu1 %v4456_v39 }
 0x99b   :  { %6332 = vmatprep.subr.mxu1 %v6472_v31 }
 0x99c   :  { %6333 = vmatpush3.msra.mxu1 %v4455_v42 }
 0x9a6   :  { %v4297_v51 = vpop.f32.mrf.mxu0 }
 0x9a7   :  { %v4298_v52 = vadd.f32 %v4297_v51, %v4218_v14 }
 0x9a8   :  { %v4299_v55 = vpop.f32.mrf.mxu0 }
 0x9a9   :  { %v4304_v56 = vmul.f32 %v4298_v52, %v4298_v52  ;;  %v4300_v59 = vadd.f32 %v4299_v55, %v4222_v15 }
 0x9ab   :  { %v4308_v60 = vmul.f32 %v4304_v56, %v4298_v52  ;;  %v4305_v62 = vmul.f32 %v4300_v59, %v4300_v59 }
 0x9ad   :  { %v4312_v63 = vmul.f32 0.044715, %v4308_v60  ;;  %v4309_v0 = vmul.f32 %v4305_v62, %v4300_v59 }
 0x9af   :  { %v4316_v19 = vadd.f32 %v4312_v63, %v4298_v52  ;;  %v4313_v27 = vmul.f32 0.044715, %v4309_v0 }
 0x9b1   :  { %v4320_v1 = vmul.f32 0.7978846, %v4316_v19  ;;  %v4317_v2 = vadd.f32 %v4313_v27, %v4300_v59 }
 0x9b3   :  { %6392 = vtanh.f32 %v4320_v1  ;;  %v4321_v50 = vmul.f32 0.7978846, %v4317_v2 }
 0x9b5   :  { %6394 = vtanh.f32 %v4321_v50 }
 0x9c0   :  { %v6393_v3 = vpop.eup %6392 }
 0x9c1   :  { %v4328_v4 = vadd.f32 1.0, %v6393_v3 }
 0x9c2   :  { %v6395_v5 = vpop.eup %6394 }
 0x9c3   :  { %v4329_v22 = vadd.f32 1.0, %v6395_v5  ;;  %v4332_v23 = vmul.f32 0.5, %v4328_v4 }
 0x9c5   :  { %v4333_v25 = vmul.f32 0.5, %v4329_v22  ;;  %v4336_v38 = vmul.f32 %v4332_v23, %v4298_v52 }
 0x9c7   :  { %v4337_v28 = vmul.f32 %v4333_v25, %v4300_v59 }
 0x9c9   :  { %4411 = vmatprep.mubr.f32.mxu1 %v4337_v28 }
 0x9ca   :  { %4412 = vmatmul.mubr.f32.gmra.mxu1 %v4336_v38 }
 0x9cb   :  { %6334 = vmatprep.mubr.msk.f32.mxu1 %vm6473_vm2, %v6472_v31 }
 0x9ce   :  { %6335 = vmatmul.mubr.msk.f32.vlgmr.msra.gmra.mxu1 %vm4479_vm7, %v4735_v7 }
 0xa59   :  { %v5268_v9 = vpop.f32.mrf.mxu1 }
 0xa5b   :  { %v5269_v11 = vpop.f32.mrf.mxu1 }
 0xa5c   :  { %v5270_v12 = vadd.f32 %v5269_v11, %v5268_v9 }
 0xa5e   :  { %v4409_v13 = vadd.f32 %v5270_v12, %v4341_v10 }
 0xa60   :  { %v4417_v14 = vadd.f32 %v4409_v13, %v8908_v41 }
 0xa62   :  { %4419 = vadd.xlane.f32.xlu0 %v4417_v14 }
 0xa8a   :  { %v5271_v15 = vpop.f32.mrf.mxu1 }
 0xa8c   :  { %v5272_v17 = vpop.f32.mrf.mxu1 }
 0xa8d   :  { %v5273_v21 = vadd.f32 %v5272_v17, %v5271_v15 }
 0xa8e   :  { %v4619_v20 = vpop.f32.mrf.mxu1 }
 0xa8f   :  { %v4414_v29 = vadd.f32 %v5273_v21, %v4341_v10  ;;  %v4623_v57 = vmax.f32 %v4619_v20, 1.0 }
 0xa90   :  { %v6336_v33 = vpop.f32.mrf.mxu1 }
 0xa91   :  { %v4418_v32 = vadd.f32 %v4414_v29, %v8912_v18 }
 0xa93   :  { %4421 = vadd.xlane.f32.xlu1 %v4418_v32 }
 0xaeb   :  { %v4420_v53 = vpop.xlane.xlu0 %4419 }
 0xaec   :  { %v4423_v35 = vmul.f32 0.0078125, %v4420_v53 }
 0xaee   :  { %v4425_v36 = vsub.f32 %v4417_v14, %v4423_v35 }
 0xaf0   :  { %v4427_v37 = vmul.f32 %v4425_v36, %v4425_v36 }
 0xaf2   :  { %4429 = vadd.xlane.f32.xlu0 %v4427_v37 }
 0xb08   :  { %4469 = vperm.xlu0 %6346, %v4455_v42  }
 0xb1c   :  { %v4422_v46 = vpop.xlane.xlu1 %4421 }
 0xb1d   :  { %v4424_v47 = vmul.f32 0.0078125, %v4422_v46 }
 0xb1f   :  { %v4426_v40 = vsub.f32 %v4418_v32, %v4424_v47 }
 0xb21   :  { %v4428_v41 = vmul.f32 %v4426_v40, %v4426_v40 }
 0xb23   :  { %4431 = vadd.xlane.f32.xlu1 %v4428_v41 }
 0xb34   :  { %4474 = vperm.xlu1 %6347, %v4456_v39  }
 0xb38   :  { %4626 = vperm.xlu1 %6347, %v4623_v57  }
 0xb7b   :  { %v4430_v24 = vpop.xlane.xlu0 %4429 }
 0xb7c   :  { %v4433_v34 = vmul.f32 0.0078125, %v4430_v24 }
 0xb7e   :  { %v4435_v18 = vadd.f32 1e-12, %v4433_v34 }
 0xb80   :  { %6396 = vrsqrt.f32 %v4435_v18 }
 0xb83   :  { %v4470_v27 = vpop.permute.xlu0 %4469 }
 0xb8d   :  { %v6397_v61 = vpop.eup %6396 }
 0xb8e   :  { %v4439_v48 = vmul.f32 %v6397_v61, %v4425_v36 }
 0xb90   :  { %v4445_v51 = vmul.f32 %v4444_v58, %v4439_v48 }
 0xb92   :  { %v4451_v52 = vadd.f32 %v4450_v49, %v4445_v51 }
 0xb94   :  { %4453 = vst [vmem:[#allocation2] sm:$0xff] %v4451_v52  ;;  %v4477_v1 = vmul.f32 %v4470_v27, %v4451_v52 }
 0xbac   :  { %v4432_v55 = vpop.xlane.xlu1 %4431 }
 0xbad   :  { %v4434_v56 = vmul.f32 0.0078125, %v4432_v55 }
 0xbaf   :  { %v4436_v59 = vadd.f32 1e-12, %v4434_v56 }
 0xbb0   :  { %v4475_v19 = vpop.permute.xlu1 %4474 }
 0xbb1   :  { %6398 = vrsqrt.f32 %v4436_v59 }
 0xbbe   :  { %v6399_v60 = vpop.eup %6398 }
 0xbbf   :  { %v4440_v62 = vmul.f32 %v6399_v60, %v4426_v40 }
 0xbc1   :  { %v4446_v63 = vmul.f32 %v4444_v58, %v4440_v62 }
 0xbc3   :  { %v4452_v0 = vadd.f32 %v4450_v49, %v4446_v63 }
 0xbc5   :  { %4454 = vst [vmem:[#allocation2 + $0x8] sm:$0xff] %v4452_v0  ;;  %v4478_v16 = vmul.f32 %v4475_v19, %v4452_v0 }
 0xbc7   :  { %6324 = vmatpush3.msra.mxu0 %v4478_v16 }
 0xbc8   :  { %6325 = vmatprep.subr.mxu0 %v6472_v31 }
 0xbc9   :  { %6326 = vmatpush3.msra.mxu0 %v4477_v1 }
 0xbca   :  { %6328 = vmatmul.mubr.msk.f32.vlgmr.msra.gmra.mxu0 %vm4479_vm7, %v4735_v7 }
 0xbcb   :  { %6417 = shalt.err (!%p6414_p4)
}
 0xbcc   :  { %s6475_s16 = smov 128   ;;  %s6476_s7 = smov 8   ;;  %v4627_v31 = vpop.permute.xlu1 %4626 }
 0xbcd   :  { %4643 = dma.vmem_to_hbm [thread:$0]  %s4638_s29, 256, %s9074_s13, [#allocation3], %s6475_s16, %s6475_s16, %s6476_s7   ;;  %6400 = vrcp.f32 %v4627_v31 }
 0xbce   :  { %s6477_s18 = smov [#allocation4]   ;;  %s6478_s0 = smov [#allocation6]  }
 0xbcf   :  { %s4650_s10 = sshll.u32 %s6477_s18, 4  ;;  %s4659_s19 = sshll.u32 %s6478_s0, 4  ;;  %s4651_s10 = int_to_ptr.vmem [resolvable:$true] %s4650_s10  ;;  %s4660_s19 = int_to_ptr.vmem [resolvable:$true] %s4659_s19 }
 0xbd0   :  { %s6426_s20 = scalar_lea.vmem %s4651_s10, 32  ;;  %p6431_p6 = scmp.lt.s32.totalorder %s4651_s10, %s4651_s10 }
 0xbd1   :  { %p6427_p5 = scmp.ne.s32.totalorder %s4651_s10, %s6426_s20  ;;  %p6432_p7 = scmp.lt.s32.totalorder %s6426_s20, %s6426_s20 }
 0xbd3   :  { %p6433_p8 = por %p6432_p7, %p6431_p6 }
 0xbd5   :  { %p6434_p9 = pnand %p6433_p8, %p6427_p5 }
 0xbda   :  { %v6401_v30 = vpop.eup %6400 }
 0xc8a   :  { %v4549_v2 = vpop.f32.mrf.mxu0 }
 0xc8b   :  { %v4630_v50 = vmul.f32 %v6401_v30, %v4549_v2 }
 0xc8c   :  { %v6329_v3 = vpop.f32.mrf.mxu0 }
 0xc8d   :  { %4631 = vst [vmem:[#allocation4] sm:$0x3] %v4630_v50 }
 0xc8e   :  { %6437 = shalt.err (!%p6434_p9)
}
 0xc8f   :  { %4653 = dma.vmem_to_hbm [thread:$0]  %s4651_s10, 32, %s9075_s14, [#allocation5]  }
 0xc90   :  { %s6446_s22 = scalar_lea.vmem %s4660_s19, 256  ;;  %p6451_p11 = scmp.lt.s32.totalorder %s4660_s19, %s4660_s19 }
 0xc91   :  { %p6447_p10 = scmp.ne.s32.totalorder %s4660_s19, %s6446_s22  ;;  %p6452_p12 = scmp.lt.s32.totalorder %s6446_s22, %s6446_s22 }
 0xc93   :  { %p6453_p13 = por %p6452_p12, %p6451_p11 }
 0xc95   :  { %p6454_p0 = pnand %p6453_p13, %p6447_p10 }
 0xc97   :  { %6457 = shalt.err (!%p6454_p0)
}
 0xc98   :  { %4665 = dma.vmem_to_hbm [thread:$0]  %s4660_s19, 256, %s9076_s15, [#allocation5], %s6475_s16, %s6475_s16, %s6476_s7  }
 0xc99   :  { %6466 = dma.done.wait [#allocation3], 256  }
 0xc9a   :  { %6467 = vsyncadd [#allocation3], 4294967040 }
 0xc9b   :  { %6468 = dma.done.wait [#allocation5], 288  }
 0xc9c   :  { %6469 = vsyncadd [#allocation5], 4294967008 }
 0xc9d   :  { %4675 = vsyncpa [#allocation3], 1 }
 0xc9e   :  { %4676 = vsyncpa [#allocation5], 1 }

</bundles_post_ra>
